<compile_context>
chip_gen: v6e
topology: v6e:2x2x1
jax: 0.10.0
libtpu: 0.0.40
codegen_flags: <defaults>
</compile_context>

<pallas_src>
import itertools

import numpy as np
import jax
import jax.numpy as jnp
from jax.experimental import pallas as pl
from jax.experimental.pallas import tpu as pltpu


def _make_kernel(H, kd, d, N, Nq, out_dim):
    nhkd = H * kd
    dh = H * d
    kvw = nhkd + dh          # packed kv output width ([k all heads | v all heads])
    qw = nhkd                # packed q output width
    bf16 = jnp.bfloat16
    f32 = jnp.float32

    def kernel(x_ref, xs_ref, w_ref, b_ref, ab_ref, wp_ref, o_ref):
        Bblk = x_ref.shape[0]
        C = x_ref.shape[2]

        # Fold the per-step batch into the row dim -> lane-dense 2-D projections.
        x2 = x_ref[...].reshape(Bblk * N, C)            # (Bblk*N,  C) bf16
        xs2 = xs_ref[...].reshape(Bblk * Nq, C)         # (Bblk*Nq, C) bf16

        kv = jnp.dot(x2, w_ref[:, :kvw], preferred_element_type=f32)
        kv = kv + b_ref[:, :kvw]                        # (Bblk*N, nhkd+dh) f32
        qf = jnp.dot(xs2, w_ref[:, kvw:], preferred_element_type=f32)
        qf = qf + b_ref[:, kvw:kvw + qw]                # (Bblk*Nq, nhkd) f32

        # Head split (host packs kv columns head-major as [k heads | v heads]);
        # relayout to a merged (Bblk*H) leading batch dim for the attention
        # einsums.  These are tiny XLU relayouts sitting in an otherwise idle
        # slot; cheaper than lane-sparse per-head matmuls.
        k = kv[:, :nhkd].reshape(Bblk, N, H, kd)
        v = kv[:, nhkd:].reshape(Bblk, N, H, d)
        q = qf.reshape(Bblk, Nq, H, kd)
        k = jnp.swapaxes(k, 1, 2).reshape(Bblk * H, N, kd)
        v = jnp.swapaxes(v, 1, 2).reshape(Bblk * H, N, d)
        q = jnp.swapaxes(q, 1, 2).reshape(Bblk * H, Nq, kd)

        # Scores + bias, numerically stable softmax (attention scale is folded
        # into w_q/b_q on the host).
        s = jnp.einsum('bqk,bnk->bqn', q.astype(bf16), k.astype(bf16),
                       preferred_element_type=f32)      # (Bblk*H, Nq, N)
        s = (s.reshape(Bblk, H, Nq, N) + ab_ref[...].astype(f32)
             ).reshape(Bblk * H, Nq, N)
        s = s - jnp.max(s, axis=-1, keepdims=True)
        p = jnp.exp(s)
        p = p * pl.reciprocal(jnp.sum(p, axis=-1, keepdims=True), approx=True)

        # attn @ v, per (batch, head).
        o = jnp.einsum('bqn,bnd->bqd', p.astype(bf16), v.astype(bf16),
                       preferred_element_type=f32)      # (Bblk*H, Nq, d)

        # Hardswish (elementwise, identical per-head or concatenated).
        o = o * jnp.clip(o + 3.0, 0.0, 6.0) * (1.0 / 6.0)

        # Head concat -> a single lane-dense proj matmul with a 128-deep
        # contraction against the unsplit w_proj.
        o2 = jnp.swapaxes(o.reshape(Bblk, H, Nq, d), 1, 2).reshape(Bblk * Nq, dh)
        y = jnp.dot(o2.astype(bf16), wp_ref[...], preferred_element_type=f32)
        y = y + b_ref[:, kvw + qw:]                     # (Bblk*Nq, out_dim)
        o_ref[...] = y.reshape(Bblk, Nq, out_dim).astype(o_ref.dtype)

    return kernel


def _pick_block_batch(B):
    """Batch elements per grid step.  v7x has 2 TensorCores -> keep >=2
    'parallel' grid steps; single-TC v5e/v6e -> fold the whole batch into one
    step (the grid is just a serial loop there)."""
    try:
        kind = jax.devices()[0].device_kind.lower()
    except Exception:  # pragma: no cover - defensive
        kind = ""
    want_steps = 2 if "v7" in kind else 1
    bblk = max(1, B // max(1, want_steps))
    while B % bblk:
        bblk -= 1
    return bblk


def compression_module_t(x, x_sub, params, cfg, block_batch=None):
    B, N, C = x.shape
    Nq = x_sub.shape[1]
    H = cfg["num_heads"]
    kd = cfg["key_dim"]
    d = cfg["d"]
    out_dim = cfg["out_dim"]
    scale = cfg["scale"]
    f32, bf16 = jnp.float32, jnp.bfloat16
    nhkd = H * kd
    dh = H * d

    if block_batch is None:
        block_batch = _pick_block_batch(B)
    assert B % block_batch == 0

    # ---- host-side prep: fold eval-mode BN scale/shift and the attention
    # ---- scale into the weights; repack kv columns head-major [k | v];
    # ---- consolidate everything into two slabs (weights, biases).
    w_kv = (params["w_kv"] * params["kv_scale"]).reshape(C, H, kd + d)
    b_kv = params["kv_shift"].reshape(H, kd + d)
    w_k = w_kv[:, :, :kd].reshape(C, nhkd)
    w_v = w_kv[:, :, kd:].reshape(C, dh)
    b_k = b_kv[:, :kd].reshape(1, nhkd)
    b_v = b_kv[:, kd:].reshape(1, dh)

    w_q = params["w_q"] * params["q_scale"] * scale          # (C, nhkd)
    b_q = (params["q_shift"] * scale).reshape(1, nhkd)

    w_p = (params["w_proj"] * params["p_scale"]).astype(bf16)  # (dh, out) unsplit
    b_p = params["p_shift"].reshape(1, out_dim)

    w_all = jnp.concatenate([w_k, w_v, w_q], axis=1).astype(bf16)      # (C, 2*nhkd+dh)
    b_all = jnp.concatenate([b_k, b_v, b_q, b_p], axis=1).astype(f32)  # (1, 2*nhkd+dh+out)

    ab = params["ab"].astype(bf16)       # (H, Nq, N) -- largest input, ship bf16

    xb = x.astype(bf16)
    xsb = x_sub.astype(bf16)

    kernel = _make_kernel(H, kd, d, N, Nq, out_dim)

    def full(arr):
        n = arr.ndim
        return pl.BlockSpec(arr.shape, lambda b, n=n: (0,) * n)

    grid = (B // block_batch,)
    in_specs = [
        pl.BlockSpec((block_batch, N, C), lambda b: (b, 0, 0)),
        pl.BlockSpec((block_batch, Nq, C), lambda b: (b, 0, 0)),
        full(w_all), full(b_all), full(ab), full(w_p),
    ]

    return pl.pallas_call(
        kernel,
        out_shape=jax.ShapeDtypeStruct((B, Nq, out_dim), jnp.float32),
        grid=grid,
        in_specs=in_specs,
        out_specs=pl.BlockSpec((block_batch, Nq, out_dim), lambda b: (b, 0, 0)),
        compiler_params=pltpu.CompilerParams(dimension_semantics=("parallel",)),
    )(xb, xsb, w_all, b_all, ab, w_p)


def reference(x, x_sub, params, cfg):
    """Pure-JAX f32 reference with identical math for correctness check."""
    H, key_dim, d = cfg["num_heads"], cfg["key_dim"], cfg["d"]
    kv = x @ params["w_kv"] * params["kv_scale"] + params["kv_shift"]
    q = x_sub @ params["w_q"] * params["q_scale"] + params["q_shift"]
    B, N, _ = x.shape
    Nq = x_sub.shape[1]
    kv = kv.reshape(B, N, H, key_dim + d)
    k, v = kv[..., :key_dim], kv[..., key_dim:]
    k = jnp.transpose(k, (0, 2, 1, 3))      # (B,H,N,key_dim)
    v = jnp.transpose(v, (0, 2, 1, 3))      # (B,H,N,d)
    q = jnp.transpose(q.reshape(B, Nq, H, key_dim), (0, 2, 1, 3))
    attn = jnp.einsum("bhqk,bhnk->bhqn", q, k) * cfg["scale"] + params["ab"][None]
    attn = jax.nn.softmax(attn, axis=-1)
    out = jnp.einsum("bhqn,bhnd->bhqd", attn, v)
    out = jnp.transpose(out, (0, 2, 1, 3)).reshape(B, Nq, cfg["dh"])
    out = out * jnp.clip(out + 3.0, 0.0, 6.0) / 6.0
    return out @ params["w_proj"] * params["p_scale"] + params["p_shift"]


if __name__ == "__main__":
    # ---- config (small, consistent with the module) ----
    in_dim, out_dim = 32, 32
    key_dim, num_heads, attn_ratio = 16, 4, 2
    d = int(attn_ratio * key_dim)          # 32
    dh = d * num_heads                     # 128
    nh_kd = key_dim * num_heads            # 64
    res, stride = 8, 2
    N = res * res                          # 64 tokens
    res_ = (res - 1) // stride + 1
    Nq = res_ * res_                       # 16 compressed tokens (resolution_2)
    B = 2
    cfg = dict(num_heads=num_heads, key_dim=key_dim, d=d, dh=dh,
               out_dim=out_dim, scale=key_dim ** -0.5)

    key = jax.random.PRNGKey(0)
    ks = jax.random.split(key, 6)

    x = jax.random.normal(ks[0], (B, N, in_dim), dtype=jnp.float32)
    # subsample queries on the res x res grid (the Subsample inside self.q)
    x_sub = x.reshape(B, res, res, in_dim)[:, ::stride, ::stride, :].reshape(B, Nq, in_dim)

    # Linear weights (bias=False in Linear_BN)
    w_kv = jax.random.normal(ks[1], (in_dim, nh_kd + dh), dtype=jnp.float32) * 0.05
    w_q = jax.random.normal(ks[2], (in_dim, nh_kd), dtype=jnp.float32) * 0.05
    w_proj = jax.random.normal(ks[3], (dh, out_dim), dtype=jnp.float32) * 0.05

    # Eval-mode BatchNorm1d folded: gamma=1, beta=0, mean=0, var=1, eps=1e-5
    def bn_fold(dim, gamma_init=1.0):
        gamma = jnp.full((1, dim), gamma_init, jnp.float32)
        beta = jnp.zeros((1, dim), jnp.float32)
        mean = jnp.zeros((1, dim), jnp.float32)
        var = jnp.ones((1, dim), jnp.float32)
        scl = gamma / jnp.sqrt(var + 1e-5)
        return scl, beta - mean * scl

    kv_scale, kv_shift = bn_fold(nh_kd + dh)
    q_scale, q_shift = bn_fold(nh_kd)
    p_scale, p_shift = bn_fold(out_dim)

    # attention biases: trainable table indexed by relative offsets (LeViT style)
    points = list(itertools.product(range(res), range(res)))
    points_ = list(itertools.product(range(0, res, stride), range(0, res, stride)))
    offsets, idxs = {}, []
    for p1 in points_:
        for p2 in points:
            off = (abs(p1[0] - p2[0]), abs(p1[1] - p2[1]))
            if off not in offsets:
                offsets[off] = len(offsets)
            idxs.append(offsets[off])
    idxs = np.array(idxs, dtype=np.int32).reshape(Nq, N)
    biases = jax.random.normal(ks[4], (num_heads, len(offsets)), dtype=jnp.float32) * 0.1
    ab = biases[:, idxs]                   # (H, Nq, N), == attention_biases[:, attention_bias_idxs]

    params = dict(w_kv=w_kv, kv_scale=kv_scale, kv_shift=kv_shift,
                  w_q=w_q, q_scale=q_scale, q_shift=q_shift,
                  ab=ab,
                  w_proj=w_proj, p_scale=p_scale, p_shift=p_shift)

    out = compression_module_t(x, x_sub, params, cfg)
    out = jax.block_until_ready(out)

    ref = jax.block_until_ready(reference(x, x_sub, params, cfg))
    np.testing.assert_allclose(np.asarray(out), np.asarray(ref), rtol=1e-2, atol=1e-2)

    print("KERNEL_OK")
</pallas_src>

<mosaic_0001>
module attributes {stable_mosaic.version = 11 : i64} {
  func.func @kernel(%arg0: i32, %arg1: memref<2x64x32xbf16, #tpu.memory_space<vmem>>, %arg2: memref<2x16x32xbf16, #tpu.memory_space<vmem>>, %arg3: memref<32x256xbf16, #tpu.memory_space<vmem>>, %arg4: memref<1x288xf32, #tpu.memory_space<vmem>>, %arg5: memref<4x16x64xbf16, #tpu.memory_space<vmem>>, %arg6: memref<128x32xbf16, #tpu.memory_space<vmem>>, %arg7: memref<2x16x32xf32, #tpu.memory_space<vmem>>) attributes {dimension_semantics = [#tpu.dimension_semantics<parallel>], iteration_bounds = array<i64: 1>, scalar_prefetch = 0 : i64, scratch_operands = 0 : i64, tpu.core_type = #tpu.core_type<tc>, window_params = [{transform_indices = @transform_0, window_bounds = array<i64: 2, 64, 32>}, {transform_indices = @transform_1, window_bounds = array<i64: 2, 16, 32>}, {pipeline_mode = #tpu.pipeline_mode<synchronous>, transform_indices = @transform_2, window_bounds = array<i64: 32, 256>}, {pipeline_mode = #tpu.pipeline_mode<synchronous>, transform_indices = @transform_3, window_bounds = array<i64: 1, 288>}, {pipeline_mode = #tpu.pipeline_mode<synchronous>, transform_indices = @transform_4, window_bounds = array<i64: 4, 16, 64>}, {pipeline_mode = #tpu.pipeline_mode<synchronous>, transform_indices = @transform_5, window_bounds = array<i64: 128, 32>}, {transform_indices = @transform_6, window_bounds = array<i64: 2, 16, 32>}]} {
    %c0 = arith.constant 0 : index
    %c0_0 = arith.constant 0 : index
    %c0_1 = arith.constant 0 : index
    %0 = vector.load %arg1[%c0, %c0_0, %c0_1] : memref<2x64x32xbf16, #tpu.memory_space<vmem>>, vector<2x64x32xbf16>
    %1 = vector.shape_cast %0 : vector<2x64x32xbf16> to vector<128x32xbf16>
    %c0_2 = arith.constant 0 : index
    %c0_3 = arith.constant 0 : index
    %c0_4 = arith.constant 0 : index
    %2 = vector.load %arg2[%c0_2, %c0_3, %c0_4] : memref<2x16x32xbf16, #tpu.memory_space<vmem>>, vector<2x16x32xbf16>
    %3 = vector.shape_cast %2 : vector<2x16x32xbf16> to vector<32x32xbf16>
    %c0_5 = arith.constant 0 : index
    %c0_6 = arith.constant 0 : index
    %4 = vector.load %arg3[%c0_5, %c0_6] : memref<32x256xbf16, #tpu.memory_space<vmem>>, vector<32x192xbf16>
    %cst = arith.constant dense<0.000000e+00> : vector<128x192xf32>
    %5 = tpu.matmul %1, %4, %cst {dimension_numbers = #tpu.dot_dimension_numbers<[1], [0], [0], [1], [0, 0, 1, 1], [], []>} : vector<128x32xbf16>, vector<32x192xbf16>, vector<128x192xf32> -> vector<128x192xf32>
    %c0_7 = arith.constant 0 : index
    %c0_8 = arith.constant 0 : index
    %6 = vector.load %arg4[%c0_7, %c0_8] : memref<1x288xf32, #tpu.memory_space<vmem>>, vector<1x192xf32>
    %7 = vector.broadcast %6 : vector<1x192xf32> to vector<128x192xf32>
    %8 = arith.addf %5, %7 : vector<128x192xf32>
    %c0_9 = arith.constant 0 : index
    %c192 = arith.constant 192 : index
    %9 = vector.load %arg3[%c0_9, %c192] : memref<32x256xbf16, #tpu.memory_space<vmem>>, vector<32x64xbf16>
    %cst_10 = arith.constant dense<0.000000e+00> : vector<32x64xf32>
    %10 = tpu.matmul %3, %9, %cst_10 {dimension_numbers = #tpu.dot_dimension_numbers<[1], [0], [0], [1], [0, 0, 1, 1], [], []>} : vector<32x32xbf16>, vector<32x64xbf16>, vector<32x64xf32> -> vector<32x64xf32>
    %c0_11 = arith.constant 0 : index
    %c192_12 = arith.constant 192 : index
    %11 = vector.load %arg4[%c0_11, %c192_12] : memref<1x288xf32, #tpu.memory_space<vmem>>, vector<1x64xf32>
    %12 = vector.broadcast %11 : vector<1x64xf32> to vector<32x64xf32>
    %13 = arith.addf %10, %12 : vector<32x64xf32>
    %14 = vector.extract_strided_slice %8 {offsets = [0, 0], sizes = [128, 64], strides = [1, 1]} : vector<128x192xf32> to vector<128x64xf32>
    %15 = vector.shape_cast %14 : vector<128x64xf32> to vector<2x64x4x16xf32>
    %16 = vector.extract_strided_slice %8 {offsets = [0, 64], sizes = [128, 128], strides = [1, 1]} : vector<128x192xf32> to vector<128x128xf32>
    %17 = vector.shape_cast %16 : vector<128x128xf32> to vector<2x64x4x32xf32>
    %18 = vector.shape_cast %13 : vector<32x64xf32> to vector<2x16x4x16xf32>
    %19 = tpu.transpose %15, [0, 2, 1, 3] : vector<2x64x4x16xf32> -> vector<2x4x64x16xf32>
    %20 = vector.shape_cast %19 : vector<2x4x64x16xf32> to vector<8x64x16xf32>
    %21 = tpu.transpose %17, [0, 2, 1, 3] : vector<2x64x4x32xf32> -> vector<2x4x64x32xf32>
    %22 = vector.shape_cast %21 : vector<2x4x64x32xf32> to vector<8x64x32xf32>
    %23 = tpu.transpose %18, [0, 2, 1, 3] : vector<2x16x4x16xf32> -> vector<2x4x16x16xf32>
    %24 = vector.shape_cast %23 : vector<2x4x16x16xf32> to vector<8x16x16xf32>
    %25 = arith.truncf %24 : vector<8x16x16xf32> to vector<8x16x16xbf16>
    %26 = arith.truncf %20 : vector<8x64x16xf32> to vector<8x64x16xbf16>
    "tpu.trace_start"() <{level = 10 : i32, message = "bqk,bnk->bqn"}> : () -> ()
    %cst_13 = arith.constant dense<0.000000e+00> : vector<8x16x64xf32>
    %27 = tpu.matmul %25, %26, %cst_13 {dimension_numbers = #tpu.dot_dimension_numbers<[2], [2], [1], [1], [0, 0, 0, 1, 1, 1], [0], [0]>} : vector<8x16x16xbf16>, vector<8x64x16xbf16>, vector<8x16x64xf32> -> vector<8x16x64xf32>
    "tpu.trace_stop"() : () -> ()
    %28 = vector.shape_cast %27 : vector<8x16x64xf32> to vector<2x4x16x64xf32>
    %c0_14 = arith.constant 0 : index
    %c0_15 = arith.constant 0 : index
    %c0_16 = arith.constant 0 : index
    %29 = vector.load %arg5[%c0_14, %c0_15, %c0_16] : memref<4x16x64xbf16, #tpu.memory_space<vmem>>, vector<4x16x64xbf16>
    %30 = arith.extf %29 : vector<4x16x64xbf16> to vector<4x16x64xf32>
    %31 = vector.shape_cast %30 : vector<4x16x64xf32> to vector<1x4x16x64xf32>
    %32 = vector.broadcast %31 : vector<1x4x16x64xf32> to vector<2x4x16x64xf32>
    %33 = arith.addf %28, %32 : vector<2x4x16x64xf32>
    %34 = vector.shape_cast %33 : vector<2x4x16x64xf32> to vector<8x16x64xf32>
    %cst_17 = arith.constant dense<0xFF800000> : vector<8x16xf32>
    %35 = vector.multi_reduction <maximumf>, %34, %cst_17 [2] : vector<8x16x64xf32> to vector<8x16xf32>
    %36 = vector.shape_cast %35 : vector<8x16xf32> to vector<8x16x1xf32>
    %37 = vector.broadcast %36 : vector<8x16x1xf32> to vector<8x16x64xf32>
    %38 = arith.subf %34, %37 : vector<8x16x64xf32>
    %39 = math.exp %38 : vector<8x16x64xf32>
    %cst_18 = arith.constant dense<0.000000e+00> : vector<8x16xf32>
    %40 = vector.multi_reduction <add>, %39, %cst_18 [2] : vector<8x16x64xf32> to vector<8x16xf32>
    %41 = vector.shape_cast %40 : vector<8x16xf32> to vector<8x16x1xf32>
    %42 = tpu.reciprocal %41 {approx = true} : vector<8x16x1xf32> -> vector<8x16x1xf32>
    %43 = vector.broadcast %42 : vector<8x16x1xf32> to vector<8x16x64xf32>
    %44 = arith.mulf %39, %43 : vector<8x16x64xf32>
    %45 = arith.truncf %44 : vector<8x16x64xf32> to vector<8x16x64xbf16>
    %46 = arith.truncf %22 : vector<8x64x32xf32> to vector<8x64x32xbf16>
    "tpu.trace_start"() <{level = 10 : i32, message = "bqn,bnd->bqd"}> : () -> ()
    %cst_19 = arith.constant dense<0.000000e+00> : vector<8x16x32xf32>
    %47 = tpu.matmul %45, %46, %cst_19 {dimension_numbers = #tpu.dot_dimension_numbers<[2], [1], [1], [2], [0, 0, 0, 1, 1, 2], [0], [0]>} : vector<8x16x64xbf16>, vector<8x64x32xbf16>, vector<8x16x32xf32> -> vector<8x16x32xf32>
    "tpu.trace_stop"() : () -> ()
    %cst_20 = arith.constant 3.000000e+00 : f32
    %48 = vector.broadcast %cst_20 : f32 to vector<8x16x32xf32>
    %49 = arith.addf %47, %48 : vector<8x16x32xf32>
    %cst_21 = arith.constant 0.000000e+00 : f32
    %cst_22 = arith.constant 6.000000e+00 : f32
    %50 = vector.broadcast %cst_21 : f32 to vector<8x16x32xf32>
    %51 = arith.maximumf %50, %49 : vector<8x16x32xf32>
    %52 = vector.broadcast %cst_22 : f32 to vector<8x16x32xf32>
    %53 = arith.minimumf %52, %51 : vector<8x16x32xf32>
    %54 = arith.mulf %47, %53 : vector<8x16x32xf32>
    %cst_23 = arith.constant 0.166666672 : f32
    %55 = vector.broadcast %cst_23 : f32 to vector<8x16x32xf32>
    %56 = arith.mulf %54, %55 : vector<8x16x32xf32>
    %57 = vector.shape_cast %56 : vector<8x16x32xf32> to vector<2x4x16x32xf32>
    %58 = tpu.transpose %57, [0, 2, 1, 3] : vector<2x4x16x32xf32> -> vector<2x16x4x32xf32>
    %59 = vector.shape_cast %58 : vector<2x16x4x32xf32> to vector<32x128xf32>
    %60 = arith.truncf %59 : vector<32x128xf32> to vector<32x128xbf16>
    %c0_24 = arith.constant 0 : index
    %c0_25 = arith.constant 0 : index
    %61 = vector.load %arg6[%c0_24, %c0_25] : memref<128x32xbf16, #tpu.memory_space<vmem>>, vector<128x32xbf16>
    %cst_26 = arith.constant dense<0.000000e+00> : vector<32x32xf32>
    %62 = tpu.matmul %60, %61, %cst_26 {dimension_numbers = #tpu.dot_dimension_numbers<[1], [0], [0], [1], [0, 0, 1, 1], [], []>} : vector<32x128xbf16>, vector<128x32xbf16>, vector<32x32xf32> -> vector<32x32xf32>
    %c0_27 = arith.constant 0 : index
    %c256 = arith.constant 256 : index
    %63 = vector.load %arg4[%c0_27, %c256] : memref<1x288xf32, #tpu.memory_space<vmem>>, vector<1x32xf32>
    %64 = vector.broadcast %63 : vector<1x32xf32> to vector<32x32xf32>
    %65 = arith.addf %62, %64 : vector<32x32xf32>
    %66 = vector.shape_cast %65 : vector<32x32xf32> to vector<2x16x32xf32>
    %c0_28 = arith.constant 0 : index
    %c0_29 = arith.constant 0 : index
    %c0_30 = arith.constant 0 : index
    %67 = vector.load %arg7[%c0_28, %c0_29, %c0_30] : memref<2x16x32xf32, #tpu.memory_space<vmem>>, vector<2x16x32xf32>
    tpu.vector_store %arg7[%c0_28, %c0_29, %c0_30], %66 {strides = array<i32>} : memref<2x16x32xf32, #tpu.memory_space<vmem>>, vector<2x16x32xf32>,
    return
  }
  func.func @transform_0(%arg0: i32) -> (i32, i32, i32) {
    %c0_i32 = arith.constant 0 : i32
    %c0_i32_0 = arith.constant 0 : i32
    %c0_i32_1 = arith.constant 0 : i32
    return %arg0, %c0_i32, %c0_i32_0 : i32, i32, i32
  }
  func.func @transform_1(%arg0: i32) -> (i32, i32, i32) {
    %c0_i32 = arith.constant 0 : i32
    %c0_i32_0 = arith.constant 0 : i32
    %c0_i32_1 = arith.constant 0 : i32
    return %arg0, %c0_i32, %c0_i32_0 : i32, i32, i32
  }
  func.func @transform_2(%arg0: i32) -> (i32, i32) {
    %c0_i32 = arith.constant 0 : i32
    %c0_i32_0 = arith.constant 0 : i32
    %c0_i32_1 = arith.constant 0 : i32
    return %c0_i32, %c0_i32_0 : i32, i32
  }
  func.func @transform_3(%arg0: i32) -> (i32, i32) {
    %c0_i32 = arith.constant 0 : i32
    %c0_i32_0 = arith.constant 0 : i32
    %c0_i32_1 = arith.constant 0 : i32
    return %c0_i32, %c0_i32_0 : i32, i32
  }
  func.func @transform_4(%arg0: i32) -> (i32, i32, i32) {
    %c0_i32 = arith.constant 0 : i32
    %c0_i32_0 = arith.constant 0 : i32
    %c0_i32_1 = arith.constant 0 : i32
    %c0_i32_2 = arith.constant 0 : i32
    return %c0_i32, %c0_i32_0, %c0_i32_1 : i32, i32, i32
  }
  func.func @transform_5(%arg0: i32) -> (i32, i32) {
    %c0_i32 = arith.constant 0 : i32
    %c0_i32_0 = arith.constant 0 : i32
    %c0_i32_1 = arith.constant 0 : i32
    return %c0_i32, %c0_i32_0 : i32, i32
  }
  func.func @transform_6(%arg0: i32) -> (i32, i32, i32) {
    %c0_i32 = arith.constant 0 : i32
    %c0_i32_0 = arith.constant 0 : i32
    %c0_i32_1 = arith.constant 0 : i32
    return %arg0, %c0_i32, %c0_i32_0 : i32, i32, i32
  }
}

</mosaic_0001>

<bundles_post_ra>
// kernel: tpu_custom_call.1
= control target key start
LH: loop header
LB: loop body
LE: loop exit
PB: predicated region body
PF: predicated region fallthrough
CT: control target
= control target key end

     0   :  { %s8262_s25 = smov 64   ;;  %v8263_v3 = vmov 0   ;;  %vm121_vm0 = vcmask 261120   ;;  %s11450_s0 = inlined_call_operand.vmem [shape: bf16[2,64,32], index: 0, kind: input, shape index: {}]   ;;  %s11451_s1 = inlined_call_operand.vmem [shape: bf16[2,16,32], index: 1, kind: input, shape index: {}]   ;;  %s11452_s2 = inlined_call_operand.vmem [shape: bf16[32,256], index: 2, kind: input, shape index: {}]   ;;  %s11453_s3 = inlined_call_operand.vmem [shape: f32[1,288], index: 3, kind: input, shape index: {}]   ;;  %s11454_s4 = inlined_call_operand.vmem [shape: bf16[4,16,64], index: 4, kind: input, shape index: {}]   ;;  %s11455_s5 = inlined_call_operand.vmem [shape: bf16[128,32], index: 5, kind: input, shape index: {}]   ;;  %s11456_s6 = inlined_call_operand.hbm [shape: f32[2,16,32], index: 6, kind: output, shape index: {}]  }
   0x1   :  { %v8150_v0 = vld [vmem:[%s11452_s2 + $0x14] ss:$8 sps:$4 sm:$0xff]   ;;  %v8153_v2 = vld [vmem:[%s11452_s2 + $0x10] ss:$8 sps:$4 sm:$0xff]   ;;  %178 = vmatprep.mubr.bf16.mxu0 %v8263_v3  ;;  %v8154_v4 = vld [vmem:[%s11452_s2 + $0x4] ss:$8 sps:$4 sm:$0xff]   ;;  %238 = vmatprep.mubr.bf16.mxu1 %v8263_v3 }
   0x2   :  { %v8151_v1 = vld [vmem:[%s11452_s2 + $0x14] ss:$8 sps:$4 sm:$0xff]   ;;  %291 = vrot.lane.b32.xlu0 %v8150_v0, %s8262_s25  ;;  %v8155_v5 = vld [vmem:[%s11452_s2 + $0x4] ss:$8 sps:$4 sm:$0xff]   ;;  %v8157_v6 = vld [vmem:[%s11452_s2] ss:$8 sps:$4 sm:$0xff]  }
   0x3   :  { %158 = vmatprep.subr.bf16.mxu0 %v8151_v1  ;;  %8103 = vmatprep.subr.bf16.mxu1 %v8151_v1  ;;  %v8158_v7 = vld [vmem:[%s11450_s0] sm:$0xff]   ;;  %v8162_v8 = vld [vmem:[%s11450_s0 + $0x30] sm:$0xff]   ;;  %v8159_v9 = vld [vmem:[%s11450_s0 + $0x8] sm:$0xff]  }
   0x4   :  { %159 = vmatpush1.bf16.msra.mxu0 %v8153_v2  ;;  %8105 = vmatpush1.bf16.msra.mxu1 %v8153_v2  ;;  %v8163_v10 = vld [vmem:[%s11450_s0 + $0x38] sm:$0xff]   ;;  %v8164_v11 = vld [vmem:[%s11451_s1] sm:$0xff]  }
   0x5   :  { %160 = vmatprep.subr.bf16.mxu0 %v8155_v5  ;;  %8104 = vmatprep.subr.bf16.mxu1 %v8155_v5 }
   0x6   :  { %289 = vrot.lane.b32.xlu0 %v8154_v4, %s8262_s25 }
   0x8   :  { %161 = vmatpush1.bf16.msra.mxu0 %v8157_v6  ;;  %8106 = vmatpush1.bf16.msra.mxu1 %v8157_v6 }
   0xb   :  { %7650 = vmatmul.mubr.msk.bf16.vlgmr.msra.gmra.mxu0 %vm121_vm0, %v8158_v7  ;;  %7656 = vmatmul.mubr.msk.bf16.vlgmr.msra.gmra.mxu1 %vm121_vm0, %v8162_v8 }
   0xc   :  { %188 = vmatprep.mubr.bf16.mxu0 %v8263_v3  ;;  %248 = vmatprep.mubr.bf16.mxu1 %v8263_v3 }
  0x13   :  { %7651 = vmatmul.mubr.msk.bf16.gmra.mxu0 %vm121_vm0, %v8159_v9  ;;  %7657 = vmatmul.mubr.msk.bf16.gmra.mxu1 %vm121_vm0, %v8163_v10 }
  0x14   :  { %198 = vmatprep.mubr.bf16.mxu0 %v8263_v3  ;;  %7887 = vmatprep.mubr.msk.bf16.mxu1 %vm121_vm0, %v8164_v11 }
  0x15   :  { %11 = vsyncpa [#allocation3], 0  ;;  %v8160_v12 = vld [vmem:[%s11450_s0 + $0x10] sm:$0xff]   ;;  %v8161_v13 = vld [vmem:[%s11450_s0 + $0x18] sm:$0xff]   ;;  %v51_v20 = vlaneseq  ;;  %s8265_s9 = smov 96   ;;  %s8266_s10 = smov 80  }
  0x16   :  { %v8166_v14 = vld [vmem:[%s11450_s0 + $0x20] sm:$0xff]   ;;  %v8167_v15 = vld [vmem:[%s11450_s0 + $0x28] sm:$0xff]   ;;  %v11457_v11 = vmov 0.0   ;;  %vm8270_vm1 = vmmov 0   ;;  %vm5761_vm2 = vcmask 130048   ;;  %s8271_s11 = smov 32  }
  0x17   :  { %v7658_v16 = vld [vmem:[%s11453_s3 + $0x1] ss:$0 sm:$0xff]  ;;  %v8165_v19 = vld [vmem:[%s11451_s1 + $0x8] sm:$0xff]   ;;  %v8374_v21 = vshrl.u32 %v51_v20, 7  ;;  %s8264_s1 = smov 112   ;;  %7903 = vmatprep.subr.bf16.mxu0 %v11457_v11  ;;  %vm6242_vm3 = vcmask 523264  }
  0x18   :  { %295 = vrot.lane.b32.xlu1 %v7658_v16, %s8262_s25  ;;  %v49_v23 = vld [vmem:[%s11453_s3] sm:$0x3]  ;;  %vm7491_vm4 = vcmask 785408  }
  0x19   :  { %v57_v22 = vsub.s32 1, %v8374_v21  ;;  %v53_v39 = vsub.s32 0, %v8374_v21 }
  0x1b   :  { %7652 = vmatmul.mubr.msk.bf16.gmra.mxu0 %vm121_vm0, %v8160_v12  ;;  %v8380_v24 = vrot.slane %v49_v23, %v57_v22  ;;  %v8411_v45 = vrot.slane %v49_v23, %v53_v39 }
  0x1c   :  { %208 = vmatprep.mubr.bf16.mxu0 %v8263_v3 }
  0x23   :  { %7653 = vmatmul.mubr.msk.bf16.gmra.mxu0 %vm121_vm0, %v8161_v13 }
  0x24   :  { %218 = vmatprep.mubr.bf16.mxu0 %v8263_v3 }
  0x2b   :  { %7654 = vmatmul.mubr.msk.bf16.gmra.mxu0 %vm121_vm0, %v8166_v14 }
  0x2c   :  { %228 = vmatprep.mubr.bf16.mxu0 %v8263_v3 }
  0x33   :  { %7655 = vmatmul.mubr.msk.bf16.gmra.mxu0 %vm121_vm0, %v8167_v15 }
  0x34   :  { %7911 = vmatprep.mubr.msk.bf16.mxu0 %vm8270_vm1, %v11457_v11 }
  0x74   :  { %v292_v17 = vpop.permute.xlu0 %291 }
  0x75   :  { %7883 = vmatprep.subr.bf16.mxu1 %v292_v17 }
  0x76   :  { %7884 = vmatpush3.bf16.msra.mxu1 %v292_v17 }
  0x78   :  { %v290_v18 = vpop.permute.xlu0 %289 }
  0x79   :  { %7885 = vmatprep.subr.bf16.mxu1 %v290_v18 }
  0x7a   :  { %7886 = vmatpush3.bf16.msra.mxu1 %v290_v18 }
  0x7b   :  { %7891 = vmatprep.subr.bf16.mxu1 %v11457_v11 }
  0x7d   :  { %7888 = vmatmul.mubr.msk.bf16.vlgmr.msra.gmra.mxu1 %vm121_vm0, %v8165_v19 }
  0x7e   :  { %7899 = vmatprep.mubr.msk.bf16.mxu1 %vm8270_vm1, %v11457_v11 }
  0x8a   :  { %v296_v16 = vpop.permute.xlu1 %295 }
  0xcb   :  { %v8382_v25 = vpop.f32.mrf.mxu0  ;;  %v8384_v26 = vpop.f32.mrf.mxu1 }
  0xcc   :  { %v8492_v10 = vadd.f32 %v8382_v25, %v8411_v45  ;;  %v8268_v25 = vmov 1983009808  }
  0xcd   :  { %v182_v27 = vpop.f32.mrf.mxu0  ;;  %v242_v28 = vpop.f32.mrf.mxu1 }
  0xce   :  { %v8387_v29 = vadd.f32 %v182_v27, %v8380_v24  ;;  %v8390_v30 = vadd.f32 %v242_v28, %v8380_v24  ;;  %11566 = vst [vmem:[#allocation15_spill] sm:$0xff] %v8492_v10  ;;  %v516_v27 = vunpack.c.l.s4 %v8268_v25  ;;  %v8269_v28 = vmov 1934713408  }
  0xcf   :  { %v8392_v31 = vpop.f32.mrf.mxu0  ;;  %v8394_v32 = vpop.f32.mrf.mxu1 }
  0xd0   :  { %v8506_v12 = vadd.f32 %v8392_v31, %v8411_v45  ;;  %v548_v31 = vunpack.c.l.s4 %v8269_v28 }
  0xd1   :  { %v186_v33 = vpop.f32.mrf.mxu0  ;;  %v246_v34 = vpop.f32.mrf.mxu1 }
  0xd2   :  { %v8397_v35 = vadd.f32 %v186_v33, %v8380_v24  ;;  %v8400_v36 = vadd.f32 %v246_v34, %v8380_v24  ;;  %11567 = vst [vmem:[#allocation16_spill] sm:$0xff] %v8506_v12 }
  0xd3   :  { %v190_v37 = vpop.f32.mrf.mxu0  ;;  %v8402_v38 = vpop.f32.mrf.mxu1 }
  0xd4   :  { %11556 = vst [vmem:[#allocation5_spill] sm:$0xff] %v8400_v36  ;;  %v8465_v4 = vadd.f32 %v190_v37, %v8411_v45  ;;  %v8536_v23 = vadd.f32 %v8402_v38, %v8411_v45  ;;  %v517_v37 = vunpack.c.0.s8 %v516_v27  ;;  %v549_v38 = vunpack.c.0.s8 %v548_v31 }
  0xd5   :  { %v192_v40 = vpop.f32.mrf.mxu0  ;;  %v252_v41 = vpop.f32.mrf.mxu1 }
  0xd6   :  { %v8406_v42 = vadd.f32 %v192_v40, %v8380_v24  ;;  %v8409_v43 = vadd.f32 %v252_v41, %v8380_v24  ;;  %11562 = vst [vmem:[#allocation11_spill] sm:$0xff] %v8465_v4  ;;  %11570 = vst [vmem:[#allocation19_spill] sm:$0xff] %v8536_v23  ;;  %v8556_v41 = vsub.s32 %v517_v37, %v8374_v21 }
  0xd7   :  { %v194_v44 = vpop.f32.mrf.mxu0  ;;  %v254_v13 = vpop.f32.mrf.mxu1 }
  0xd8   :  { %v8477_v8 = vadd.f32 %v194_v44, %v8411_v45  ;;  %v8543_v33 = vadd.f32 %v254_v13, %v8411_v45 }
  0xd9   :  { %v196_v46 = vpop.f32.mrf.mxu0  ;;  %v8518_v14 = vpop.f32.mrf.mxu1 }
  0xda   :  { %v8414_v47 = vadd.f32 %v196_v46, %v8380_v24  ;;  %11564 = vst [vmem:[#allocation13_spill] sm:$0xff] %v8477_v8  ;;  %11571 = vst [vmem:[#allocation20_spill] sm:$0xff] %v8543_v33 }
  0xdb   :  { %v200_v48 = vpop.f32.mrf.mxu0 }
  0xdc   :  { %v8417_v49 = vadd.f32 %v200_v48, %v8411_v45  ;;  %v8563_v48 = vsub.s32 %v549_v38, %v8374_v21 }
  0xdd   :  { %v202_v50 = vpop.f32.mrf.mxu0 }
  0xde   :  { %11557 = vst [vmem:[#allocation6_spill] sm:$0xff] %v8417_v49  ;;  %v8420_v51 = vadd.f32 %v202_v50, %v8380_v24  ;;  %377 = vrot.lane.b32.xlu1 %v8417_v49, %s8264_s1  ;;  %v8567_v50 = vadd.f32 %v8384_v26, %v8411_v45 }
  0xdf   :  { %v204_v52 = vpop.f32.mrf.mxu0 }
  0xe0   :  { %v8425_v53 = vadd.f32 %v204_v52, %v8411_v45  ;;  %11573 = vst [vmem:[#allocation22_spill] sm:$0xff] %v8567_v50 }
  0xe1   :  { %v206_v54 = vpop.f32.mrf.mxu0 }
  0xe2   :  { %11558 = vst [vmem:[#allocation7_spill] sm:$0xff] %v8425_v53  ;;  %379 = vrot.lane.b32.xlu0 %v8425_v53, %s8264_s1  ;;  %425 = vrot.lane.b32.xlu1 %v8417_v49, %s8265_s9  ;;  %v8432_v55 = vadd.f32 %v206_v54, %v8380_v24 }
  0xe3   :  { %v210_v56 = vpop.f32.mrf.mxu0 }
  0xe4   :  { %v8439_v58 = vadd.f32 %v210_v56, %v8411_v45 }
  0xe5   :  { %v212_v57 = vpop.f32.mrf.mxu0 }
  0xe6   :  { %427 = vrot.lane.b32.xlu0 %v8425_v53, %s8265_s9  ;;  %473 = vrot.lane.b32.xlu1 %v8417_v49, %s8266_s10  ;;  %11559 = vst [vmem:[#allocation8_spill] sm:$0xff] %v8439_v58  ;;  %v8442_v59 = vadd.f32 %v212_v57, %v8380_v24  ;;  %v8577_v57 = vadd.f32 %v8394_v32, %v8411_v45 }
  0xe7   :  { %v214_v60 = vpop.f32.mrf.mxu0 }
  0xe8   :  { %v8451_v62 = vadd.f32 %v214_v60, %v8411_v45  ;;  %11575 = vst [vmem:[#allocation24_spill] sm:$0xff] %v8577_v57 }
  0xe9   :  { %v8444_v61 = vpop.f32.mrf.mxu0 }
  0xea   :  { %475 = vrot.lane.b32.xlu0 %v8425_v53, %s8266_s10  ;;  %381 = vrot.lane.b32.xlu1 %v8439_v58, %s8264_s1  ;;  %11560 = vst [vmem:[#allocation9_spill] sm:$0xff] %v8451_v62  ;;  %v8573_v56 = vadd.f32 %v8444_v61, %v8380_v24 }
  0xeb   :  { %v8453_v63 = vpop.f32.mrf.mxu0 }
  0xec   :  { %v8585_v21 = vadd.f32 %v8453_v63, %v8411_v45 }
  0xed   :  { %v222_v0 = vpop.f32.mrf.mxu0 }
  0xee   :  { %383 = vrot.lane.b32.xlu0 %v8451_v62, %s8264_s1  ;;  %429 = vrot.lane.b32.xlu1 %v8439_v58, %s8265_s9  ;;  %v8460_v1 = vadd.f32 %v222_v0, %v8380_v24  ;;  %11576 = vst [vmem:[#allocation25_spill] sm:$0xff] %v8585_v21 }
  0xef   :  { %v8462_v2 = vpop.f32.mrf.mxu0 }
  0xf0   :  { %11561 = vst [vmem:[#allocation10_spill] sm:$0xff] %v8460_v1  ;;  %v8589_v26 = vadd.f32 %v8462_v2, %v8411_v45 }
  0xf1   :  { %v226_v3 = vpop.f32.mrf.mxu0 }
  0xf2   :  { %431 = vrot.lane.b32.xlu0 %v8451_v62, %s8265_s9  ;;  %477 = vrot.lane.b32.xlu1 %v8439_v58, %s8266_s10  ;;  %v8472_v5 = vadd.f32 %v226_v3, %v8380_v24  ;;  %11577 = vst [vmem:[#allocation26_spill] sm:$0xff] %v8589_v26 }
  0xf3   :  { %v8474_v6 = vpop.f32.mrf.mxu0 }
  0xf4   :  { %11563 = vst [vmem:[#allocation12_spill] sm:$0xff] %v8472_v5  ;;  %v8593_v32 = vadd.f32 %v8474_v6, %v8411_v45 }
  0xf5   :  { %v232_v7 = vpop.f32.mrf.mxu0 }
  0xf6   :  { %479 = vrot.lane.b32.xlu0 %v8451_v62, %s8266_s10  ;;  %373 = vrot.lane.b32.xlu1 %v8465_v4, %s8264_s1  ;;  %v8484_v9 = vadd.f32 %v232_v7, %v8380_v24  ;;  %11578 = vst [vmem:[#allocation27_spill] sm:$0xff] %v8593_v32 }
  0xf8   :  { %11565 = vst [vmem:[#allocation14_spill] sm:$0xff] %v8484_v9 }
  0xfa   :  { %375 = vrot.lane.b32.xlu0 %v8477_v8, %s8264_s1  ;;  %421 = vrot.lane.b32.xlu1 %v8465_v4, %s8265_s9 }
  0xfe   :  { %423 = vrot.lane.b32.xlu0 %v8477_v8, %s8265_s9  ;;  %469 = vrot.lane.b32.xlu1 %v8465_v4, %s8266_s10 }
 0x102   :  { %471 = vrot.lane.b32.xlu0 %v8477_v8, %s8266_s10  ;;  %369 = vrot.lane.b32.xlu1 %v8492_v10, %s8264_s1 }
 0x106   :  { %371 = vrot.lane.b32.xlu0 %v8506_v12, %s8264_s1  ;;  %417 = vrot.lane.b32.xlu1 %v8492_v10, %s8265_s9 }
 0x10a   :  { %419 = vrot.lane.b32.xlu0 %v8506_v12, %s8265_s9  ;;  %465 = vrot.lane.b32.xlu1 %v8492_v10, %s8266_s10 }
 0x10e   :  { %467 = vrot.lane.b32.xlu0 %v8506_v12, %s8266_s10 }
 0x13d   :  { %v7889_v15 = vpop.f32.mrf.mxu1 }
 0x13e   :  { %v8601_v63 = vadd.f32 %v7889_v15, %v296_v16 }
 0x13f   :  { %v338_v17 = vpop.f32.mrf.mxu1 }
 0x140   :  { %v8520_v18 = vadd.f32 %v338_v17, %v296_v16  ;;  %v234_v17 = vpop.f32.mrf.mxu0  ;;  %11579 = vst [vmem:[#allocation28_spill] sm:$0xff] %v8601_v63 }
 0x141   :  { %v7890_v19 = vpop.f32.mrf.mxu1  ;;  %v8610_v27 = vadd.f32 %v234_v17, %v8411_v45 }
 0x142   :  { %11568 = vst [vmem:[#allocation17_spill] sm:$0xff] %v8520_v18  ;;  %2965 = vrot.lane.b32.xlu1 %v8520_v18, %s8264_s1  ;;  %v8614_v37 = vadd.f32 %v7890_v19, %v296_v16 }
 0x143   :  { %v341_v20 = vpop.f32.mrf.mxu1  ;;  %11580 = vst [vmem:[#allocation29_spill] sm:$0xff] %v8610_v27 }
 0x144   :  { %v8524_v22 = vadd.f32 %v341_v20, %v296_v16 }
 0x146   :  { %11569 = vst [vmem:[#allocation18_spill] sm:$0xff] %v8524_v22  ;;  %2967 = vrot.lane.b32.xlu0 %v8524_v22, %s8264_s1  ;;  %2977 = vrot.lane.b32.xlu1 %v8520_v18, %s8265_s9 }
 0x14a   :  { %2979 = vrot.lane.b32.xlu0 %v8524_v22, %s8265_s9  ;;  %2989 = vrot.lane.b32.xlu1 %v8520_v18, %s8266_s10 }
 0x14e   :  { %2991 = vrot.lane.b32.xlu0 %v8524_v22, %s8266_s10  ;;  %397 = vrot.lane.b32.xlu1 %v8536_v23, %s8264_s1 }
 0x150   :  { %v378_v34 = vpop.permute.xlu1 %377 }
 0x152   :  { %399 = vrot.lane.b32.xlu0 %v8543_v33, %s8264_s1  ;;  %445 = vrot.lane.b32.xlu1 %v8536_v23, %s8265_s9 }
 0x154   :  { %v380_v39 = vpop.permute.xlu0 %379  ;;  %v8549_v40 = vpop.permute.xlu1 %425 }
 0x155   :  { %11572 = vst [vmem:[#allocation21_spill] sm:$0xff] %v8549_v40  ;;  %v785_v44 = vcombine.low %v8417_v49, %v8549_v40  ;;  %v786_v46 = vcombine.high %v8417_v49, %v8549_v40 }
 0x156   :  { %447 = vrot.lane.b32.xlu0 %v8543_v33, %s8265_s9  ;;  %493 = vrot.lane.b32.xlu1 %v8536_v23, %s8266_s10 }
 0x157   :  { %v793_v61 = vrot.slane %v785_v44, %v8556_v41  ;;  %v800_v3 = vrot.slane %v786_v46, %v8556_v41 }
 0x158   :  { %v8569_v52 = vpop.permute.xlu0 %427  ;;  %v474_v54 = vpop.permute.xlu1 %473 }
 0x159   :  { %11574 = vst [vmem:[#allocation23_spill] sm:$0xff] %v8569_v52  ;;  %v801_v60 = vcombine.low %v378_v34, %v474_v54  ;;  %v802_v0 = vcombine.high %v378_v34, %v474_v54  ;;  %v853_v2 = vcombine.low %v8425_v53, %v8569_v52  ;;  %v854_v6 = vcombine.high %v8425_v53, %v8569_v52 }
 0x15a   :  { %495 = vrot.lane.b32.xlu0 %v8543_v33, %s8266_s10  ;;  %393 = vrot.lane.b32.xlu1 %v8567_v50, %s8264_s1 }
 0x15b   :  { %v809_v7 = vrot.slane %v801_v60, %v8556_v41  ;;  %v816_v13 = vrot.slane %v802_v0, %v8556_v41  ;;  %v861_v0 = vrot.slane %v853_v2, %v8556_v41  ;;  %v868_v16 = vrot.slane %v854_v6, %v8556_v41 }
 0x15c   :  { %v476_v20 = vpop.permute.xlu0 %475  ;;  %v8607_v25 = vpop.permute.xlu1 %381 }
 0x15d   :  { %v817_v28 = vcombine.low %v793_v61, %v809_v7  ;;  %v818_v31 = vcombine.high %v793_v61, %v809_v7  ;;  %v833_v34 = vcombine.low %v800_v3, %v816_v13  ;;  %v834_v15 = vcombine.high %v800_v3, %v816_v13 }
 0x15e   :  { %v869_v38 = vcombine.low %v380_v39, %v476_v20  ;;  %v870_v44 = vcombine.high %v380_v39, %v476_v20  ;;  %395 = vrot.lane.b32.xlu0 %v8577_v57, %s8264_s1  ;;  %441 = vrot.lane.b32.xlu1 %v8567_v50, %s8265_s9 }
 0x15f   :  { %v825_v45 = vrot.slane %v817_v28, %v8563_v48  ;;  %v832_v46 = vrot.slane %v818_v31, %v8563_v48  ;;  %v841_v54 = vrot.slane %v833_v34, %v8563_v48  ;;  %v848_v60 = vrot.slane %v834_v15, %v8563_v48 }
 0x160   :  { %v877_v19 = vrot.slane %v869_v38, %v8556_v41  ;;  %v884_v39 = vrot.slane %v870_v44, %v8556_v41  ;;  %v384_v61 = vpop.permute.xlu0 %383  ;;  %v8628_v3 = vpop.permute.xlu1 %429 }
 0x161   :  { %11581 = vst [vmem:[#allocation30_spill] sm:$0xff] %v8628_v3  ;;  %v3545_v7 = vcombine.low %v825_v45, %v832_v46  ;;  %v7673_v13 = vcombine.high %v825_v45, %v832_v46  ;;  %v3561_v17 = vcombine.low %v841_v54, %v848_v60  ;;  %v7674_v20 = vcombine.high %v841_v54, %v848_v60 }
 0x162   :  { %v885_v28 = vcombine.low %v861_v0, %v877_v19  ;;  %v886_v31 = vcombine.high %v861_v0, %v877_v19  ;;  %v901_v34 = vcombine.low %v868_v16, %v884_v39  ;;  %v902_v11 = vcombine.high %v868_v16, %v884_v39  ;;  %443 = vrot.lane.b32.xlu0 %v8577_v57, %s8265_s9 }
 0x163   :  { %v921_v2 = vcombine.low %v8439_v58, %v8628_v3  ;;  %v922_v6 = vcombine.high %v8439_v58, %v8628_v3  ;;  %489 = vrot.lane.b32.xlu1 %v8567_v50, %s8266_s10  ;;  %v8639_v15 = vrot.slane %v3545_v7, %v8556_v41  ;;  %v8642_v38 = vrot.slane %v7673_v13, %v8556_v41 }
 0x164   :  { %v893_v44 = vrot.slane %v885_v28, %v8563_v48  ;;  %v900_v45 = vrot.slane %v886_v31, %v8563_v48  ;;  %v909_v46 = vrot.slane %v901_v34, %v8563_v48  ;;  %v916_v54 = vrot.slane %v902_v11, %v8563_v48  ;;  %v8648_v60 = vpop.permute.xlu0 %431  ;;  %v478_v0 = vpop.permute.xlu1 %477 }
 0x165   :  { %11582 = vst [vmem:[#allocation31_spill] sm:$0xff] %v8648_v60  ;;  %v929_v16 = vrot.slane %v921_v2, %v8556_v41  ;;  %v936_v19 = vrot.slane %v922_v6, %v8556_v41  ;;  %v989_v39 = vcombine.low %v8451_v62, %v8648_v60  ;;  %v990_v7 = vcombine.high %v8451_v62, %v8648_v60 }
 0x166   :  { %v3613_v13 = vcombine.low %v893_v44, %v900_v45  ;;  %v7675_v28 = vcombine.high %v893_v44, %v900_v45  ;;  %v3629_v31 = vcombine.low %v909_v46, %v916_v54  ;;  %v7676_v3 = vcombine.high %v909_v46, %v916_v54  ;;  %491 = vrot.lane.b32.xlu0 %v8577_v57, %s8266_s10 }
 0x167   :  { %v997_v11 = vrot.slane %v989_v39, %v8556_v41  ;;  %v1004_v34 = vrot.slane %v990_v7, %v8556_v41  ;;  %v937_v2 = vcombine.low %v8607_v25, %v478_v0  ;;  %v938_v6 = vcombine.high %v8607_v25, %v478_v0  ;;  %389 = vrot.lane.b32.xlu1 %v8593_v32, %s8264_s1 }
 0x168   :  { %v480_v40 = vpop.permute.xlu0 %479  ;;  %v8664_v60 = vpop.permute.xlu1 %373  ;;  %v8667_v44 = vrot.slane %v3561_v17, %v8556_v41  ;;  %v8670_v45 = vrot.slane %v7674_v20, %v8556_v41  ;;  %v3577_v46 = vcombine.low %v8639_v15, %v8642_v38  ;;  %v8675_v54 = vrot.slane %v3613_v13, %v8556_v41 }
 0x169   :  { %v945_v25 = vrot.slane %v937_v2, %v8556_v41  ;;  %v952_v0 = vrot.slane %v938_v6, %v8556_v41  ;;  %v1005_v39 = vcombine.low %v384_v61, %v480_v40  ;;  %v1006_v7 = vcombine.high %v384_v61, %v480_v40 }
 0x16a   :  { %391 = vrot.lane.b32.xlu0 %v8610_v27, %s8264_s1  ;;  %v8682_v17 = vrot.slane %v3577_v46, %v8563_v48  ;;  %v3593_v20 = vcombine.low %v8667_v44, %v8670_v45  ;;  %v8687_v52 = vrot.slane %v7675_v28, %v8556_v41  ;;  %v8690_v13 = vrot.slane %v3629_v31, %v8556_v41 }
 0x16b   :  { %v953_v2 = vcombine.low %v929_v16, %v945_v25  ;;  %v954_v57 = vcombine.high %v929_v16, %v945_v25  ;;  %v969_v6 = vcombine.low %v936_v19, %v952_v0  ;;  %v970_v50 = vcombine.high %v936_v19, %v952_v0  ;;  %437 = vrot.lane.b32.xlu1 %v8593_v32, %s8265_s9 }
 0x16c   :  { %v1013_v40 = vrot.slane %v1005_v39, %v8556_v41  ;;  %v1020_v61 = vrot.slane %v1006_v7, %v8556_v41  ;;  %v376_v46 = vpop.permute.xlu0 %375  ;;  %v8696_v53 = vpop.permute.xlu1 %421  ;;  %v8699_v28 = vrot.slane %v3593_v20, %v8563_v48  ;;  %v8702_v31 = vrot.slane %v7676_v3, %v8556_v41 }
 0x16d   :  { %11583 = vst [vmem:[#allocation32_spill] sm:$0xff] %v8696_v53  ;;  %v961_v16 = vrot.slane %v953_v2, %v8563_v48  ;;  %v968_v19 = vrot.slane %v954_v57, %v8563_v48  ;;  %v977_v25 = vrot.slane %v969_v6, %v8563_v48  ;;  %v984_v0 = vrot.slane %v970_v50, %v8563_v48 }
 0x16e   :  { %v1021_v39 = vcombine.low %v997_v11, %v1013_v40  ;;  %v1022_v49 = vcombine.high %v997_v11, %v1013_v40  ;;  %v1037_v7 = vcombine.low %v1004_v34, %v1020_v61  ;;  %v1038_v33 = vcombine.high %v1004_v34, %v1020_v61  ;;  %439 = vrot.lane.b32.xlu0 %v8610_v27, %s8265_s9 }
 0x16f   :  { %v3681_v20 = vcombine.low %v961_v16, %v968_v19  ;;  %v7677_v23 = vcombine.high %v961_v16, %v968_v19  ;;  %v3697_v5 = vcombine.low %v977_v25, %v984_v0  ;;  %v7678_v3 = vcombine.high %v977_v25, %v984_v0  ;;  %485 = vrot.lane.b32.xlu1 %v8593_v32, %s8266_s10 }
 0x170   :  { %v1029_v57 = vrot.slane %v1021_v39, %v8563_v48  ;;  %v1036_v2 = vrot.slane %v1022_v49, %v8563_v48  ;;  %v8715_v50 = vrot.slane %v1037_v7, %v8563_v48  ;;  %v8718_v11 = vrot.slane %v1038_v33, %v8563_v48  ;;  %v8720_v34 = vpop.permute.xlu0 %423  ;;  %v470_v6 = vpop.permute.xlu1 %469 }
 0x171   :  { %11584 = vst [vmem:[#allocation33_spill] sm:$0xff] %v8720_v34  ;;  %v649_v40 = vcombine.low %v8465_v4, %v8696_v53  ;;  %v650_v61 = vcombine.high %v8465_v4, %v8696_v53  ;;  %v717_v16 = vcombine.low %v8477_v8, %v8720_v34  ;;  %v718_v49 = vcombine.high %v8477_v8, %v8720_v34 }
 0x172   :  { %v3749_v19 = vcombine.low %v1029_v57, %v1036_v2  ;;  %v7679_v25 = vcombine.high %v1029_v57, %v1036_v2  ;;  %487 = vrot.lane.b32.xlu0 %v8610_v27, %s8266_s10  ;;  %v665_v57 = vcombine.low %v8664_v60, %v470_v6  ;;  %v666_v2 = vcombine.high %v8664_v60, %v470_v6 }
 0x173   :  { %v657_v39 = vrot.slane %v649_v40, %v8556_v41  ;;  %v664_v7 = vrot.slane %v650_v61, %v8556_v41  ;;  %v725_v53 = vrot.slane %v717_v16, %v8556_v41  ;;  %v732_v32 = vrot.slane %v718_v49, %v8556_v41  ;;  %385 = vrot.lane.b32.xlu1 %v8585_v21, %s8264_s1 }
 0x174   :  { %v472_v33 = vpop.permute.xlu0 %471  ;;  %v8744_v0 = vpop.permute.xlu1 %369  ;;  %v8747_v34 = vrot.slane %v3681_v20, %v8556_v41  ;;  %v8750_v40 = vrot.slane %v7677_v23, %v8556_v41  ;;  %v8753_v49 = vrot.slane %v3697_v5, %v8556_v41  ;;  %v8756_v27 = vrot.slane %v7678_v3, %v8556_v41 }
 0x175   :  { %v733_v61 = vcombine.low %v376_v46, %v472_v33  ;;  %v734_v16 = vcombine.high %v376_v46, %v472_v33  ;;  %v673_v4 = vrot.slane %v665_v57, %v8556_v41  ;;  %v680_v60 = vrot.slane %v666_v2, %v8556_v41 }
 0x176   :  { %387 = vrot.lane.b32.xlu0 %v8589_v26, %s8264_s1  ;;  %v3713_v20 = vcombine.low %v8747_v34, %v8750_v40  ;;  %v8765_v23 = vrot.slane %v3749_v19, %v8556_v41  ;;  %v3729_v3 = vcombine.low %v8753_v49, %v8756_v27  ;;  %v8774_v6 = vrot.slane %v7679_v25, %v8556_v41 }
 0x177   :  { %v741_v46 = vrot.slane %v733_v61, %v8556_v41  ;;  %v748_v5 = vrot.slane %v734_v16, %v8556_v41  ;;  %433 = vrot.lane.b32.xlu1 %v8585_v21, %s8265_s9  ;;  %v681_v33 = vcombine.low %v657_v39, %v673_v4  ;;  %v682_v57 = vcombine.high %v657_v39, %v673_v4 }
 0x178   :  { %v697_v2 = vcombine.low %v664_v7, %v680_v60  ;;  %v698_v8 = vcombine.high %v664_v7, %v680_v60  ;;  %v8776_v1 = vpop.permute.xlu0 %371  ;;  %v8778_v19 = vpop.permute.xlu1 %417  ;;  %v3737_v60 = vrot.slane %v3729_v3, %v8563_v48 }
 0x179   :  { %11585 = vst [vmem:[#allocation34_spill] sm:$0xff] %v8778_v19  ;;  %v749_v61 = vcombine.low %v725_v53, %v741_v46  ;;  %v750_v62 = vcombine.high %v725_v53, %v741_v46  ;;  %v765_v16 = vcombine.low %v732_v32, %v748_v5  ;;  %v766_v58 = vcombine.high %v732_v32, %v748_v5 }
 0x17a   :  { %v8781_v22 = vrot.slane %v681_v33, %v8563_v48  ;;  %v8784_v9 = vrot.slane %v682_v57, %v8563_v48  ;;  %v8787_v25 = vrot.slane %v697_v2, %v8563_v48  ;;  %v8790_v4 = vrot.slane %v698_v8, %v8563_v48  ;;  %435 = vrot.lane.b32.xlu0 %v8589_v26, %s8265_s9 }
 0x17b   :  { %v8795_v39 = vrot.slane %v749_v61, %v8563_v48  ;;  %v8798_v53 = vrot.slane %v750_v62, %v8563_v48  ;;  %v8801_v32 = vrot.slane %v765_v16, %v8563_v48  ;;  %v8804_v7 = vrot.slane %v766_v58, %v8563_v48  ;;  %481 = vrot.lane.b32.xlu1 %v8585_v21, %s8266_s10 }
 0x17c   :  { %v8816_v5 = vpop.permute.xlu0 %419  ;;  %v466_v33 = vpop.permute.xlu1 %465  ;;  %v513_v16 = vcombine.low %v8492_v10, %v8778_v19  ;;  %v514_v62 = vcombine.high %v8492_v10, %v8778_v19  ;;  %v3721_v61 = vrot.slane %v3713_v20, %v8563_v48  ;;  %v11587_v20 = vcombine.low %v8715_v50, %v8718_v11 }
 0x17d   :  { %11586 = vst [vmem:[#allocation35_spill] sm:$0xff] %v8816_v5  ;;  %v581_v46 = vcombine.low %v8506_v12, %v8816_v5  ;;  %v582_v58 = vcombine.high %v8506_v12, %v8816_v5  ;;  %v529_v2 = vcombine.low %v8744_v0, %v466_v33  ;;  %v530_v57 = vcombine.high %v8744_v0, %v466_v33 }
 0x17e   :  { %483 = vrot.lane.b32.xlu0 %v8589_v26, %s8266_s10  ;;  %v521_v8 = vrot.slane %v513_v16, %v8556_v41  ;;  %v528_v21 = vrot.slane %v514_v62, %v8556_v41  ;;  %v3745_v33 = vcombine.low %v3721_v61, %v3737_v60  ;;  %v8852_v3 = vrot.slane %v11587_v20, %v8556_v41 }
 0x17f   :  { %2969 = vrot.lane.b32.xlu1 %v8601_v63, %s8264_s1  ;;  %v589_v5 = vrot.slane %v581_v46, %v8556_v41  ;;  %v596_v19 = vrot.slane %v582_v58, %v8556_v41  ;;  %v537_v12 = vrot.slane %v529_v2, %v8556_v41  ;;  %v544_v0 = vrot.slane %v530_v57, %v8556_v41 }
 0x180   :  { %v468_v26 = vpop.permute.xlu0 %467  ;;  %v11588_v62 = vcombine.high %v8715_v50, %v8718_v11  ;;  %v3781_v46 = vcombine.low %v8765_v23, %v8774_v6  ;;  %v3746_v58 = vcombine.high %v3721_v61, %v3737_v60 }
 0x181   :  { %v597_v2 = vcombine.low %v8776_v1, %v468_v26  ;;  %v545_v57 = vcombine.low %v521_v8, %v537_v12  ;;  %v546_v10 = vcombine.high %v521_v8, %v537_v12  ;;  %v561_v18 = vcombine.low %v528_v21, %v544_v0 }
 0x182   :  { %v8858_v16 = vrot.slane %v11588_v62, %v8556_v41  ;;  %2971 = vrot.lane.b32.xlu0 %v8614_v37, %s8264_s1  ;;  %v562_v20 = vcombine.high %v528_v21, %v544_v0  ;;  %v3789_v50 = vrot.slane %v3781_v46, %v8563_v48  ;;  %v598_v60 = vcombine.high %v8776_v1, %v468_v26 }
 0x183   :  { %2981 = vrot.lane.b32.xlu1 %v8601_v63, %s8265_s9  ;;  %v605_v61 = vrot.slane %v597_v2, %v8556_v41  ;;  %v8873_v62 = vrot.slane %v545_v57, %v8563_v48  ;;  %v8876_v12 = vrot.slane %v546_v10, %v8563_v48  ;;  %v8879_v21 = vrot.slane %v561_v18, %v8563_v48 }
 0x184   :  { %v3797_v11 = vcombine.low %v8852_v3, %v8858_v16  ;;  %v8882_v8 = vrot.slane %v562_v20, %v8563_v48  ;;  %v612_v46 = vrot.slane %v598_v60, %v8556_v41 }
 0x185   :  { %v613_v36 = vcombine.low %v589_v5, %v605_v61  ;;  %v614_v1 = vcombine.high %v589_v5, %v605_v61  ;;  %v3273_v26 = vcombine.low %v8873_v62, %v8876_v12  ;;  %v7665_v10 = vcombine.high %v8873_v62, %v8876_v12 }
 0x186   :  { %v3805_v0 = vrot.slane %v3797_v11, %v8563_v48  ;;  %2983 = vrot.lane.b32.xlu0 %v8614_v37, %s8265_s9  ;;  %v3289_v18 = vcombine.low %v8879_v21, %v8882_v8  ;;  %v7666_v2 = vcombine.high %v8879_v21, %v8882_v8  ;;  %v629_v60 = vcombine.low %v596_v19, %v612_v46 }
 0x187   :  { %2993 = vrot.lane.b32.xlu1 %v8601_v63, %s8266_s10  ;;  %v8899_v20 = vrot.slane %v613_v36, %v8563_v48  ;;  %v8902_v11 = vrot.slane %v614_v1, %v8563_v48  ;;  %v630_v61 = vcombine.high %v596_v19, %v612_v46  ;;  %v3609_v62 = vcombine.low %v8682_v17, %v8699_v28 }
 0x188   :  { %v3813_v57 = vcombine.low %v3789_v50, %v3805_v0  ;;  %v3814_v5 = vcombine.high %v3789_v50, %v3805_v0  ;;  %v3645_v12 = vcombine.low %v8675_v54, %v8687_v52  ;;  %v637_v50 = vrot.slane %v629_v60, %v8563_v48 }
 0x189   :  { %v3341_v63 = vcombine.low %v8899_v20, %v8902_v11  ;;  %v7667_v36 = vcombine.high %v8899_v20, %v8902_v11  ;;  %v644_v19 = vrot.slane %v630_v61, %v8563_v48  ;;  %v3661_v46 = vcombine.low %v8690_v13, %v8702_v31 }
 0x18a   :  { %v5732_v21 = vpack.c.bf16 %v3813_v57, %v3745_v33  ;;  %v5736_v8 = vpack.c.bf16 %v3814_v5, %v3746_v58  ;;  %2995 = vrot.lane.b32.xlu0 %v8614_v37, %s8266_s10  ;;  %v3653_v0 = vrot.slane %v3645_v12, %v8563_v48  ;;  %v3610_v1 = vcombine.high %v8682_v17, %v8699_v28 }
 0x18b   :  { %1631 = vrot.lane.b32.xlu1 %v8573_v56, %s8262_s25  ;;  %v11589_v57 = vcombine.low %v8781_v22, %v8784_v9  ;;  %v3357_v20 = vcombine.low %v637_v50, %v644_v19  ;;  %v7668_v11 = vcombine.high %v637_v50, %v644_v19  ;;  %v3669_v60 = vrot.slane %v3661_v46, %v8563_v48 }
 0x18c   :  { %v5775_v33 = vsel %vm5761_vm2, %v5732_v21, 0  ;;  %v5831_v58 = vsel %vm5761_vm2, %v5736_v8, 0  ;;  %v11590_v61 = vmov 0.0   ;;  %v11591_v17 = vcombine.high %v8781_v22, %v8784_v9 }
 0x18d   :  { %v8929_v5 = vrot.slane %v11589_v57, %v8556_v41  ;;  %7892 = vmatpush3.bf16.xpose.msra.mxu1 %v5775_v33  ;;  %7904 = vmatpush3.bf16.xpose.msra.mxu0 %v5831_v58  ;;  %v11592_v12 = vcombine.low %v8787_v25, %v8790_v4  ;;  %v11593_v8 = vcombine.high %v8787_v25, %v8790_v4 }
 0x18e   :  { %7893 = vmatprep.subr.bf16.mxu1 %v11590_v61  ;;  %7905 = vmatprep.subr.bf16.mxu0 %v11590_v61  ;;  %v8938_v28 = vrot.slane %v11591_v17, %v8556_v41  ;;  %v3677_v19 = vcombine.low %v3653_v0, %v3669_v60  ;;  %v3678_v46 = vcombine.high %v3653_v0, %v3669_v60 }
 0x18f   :  { %v8944_v21 = vrot.slane %v11592_v12, %v8556_v41  ;;  %v8950_v50 = vrot.slane %v11593_v8, %v8556_v41  ;;  %v11594_v9 = vcombine.low %v8795_v39, %v8798_v53  ;;  %v11595_v33 = vcombine.high %v8795_v39, %v8798_v53  ;;  %1629 = vrot.lane.b32.xlu0 %v8442_v59, %s8262_s25 }
 0x190   :  { %v3441_v25 = vcombine.low %v8929_v5, %v8938_v28  ;;  %v11596_v0 = vcombine.low %v8801_v32, %v8804_v7  ;;  %v11597_v39 = vcombine.high %v8801_v32, %v8804_v7  ;;  %1661 = vrot.lane.b32.xlu1 %v8442_v59, %s8271_s11  ;;  %v5731_v60 = vpack.c.bf16 %v3677_v19, %v3609_v62 }
 0x191   :  { %v8956_v22 = vrot.slane %v11594_v9, %v8556_v41  ;;  %v8962_v58 = vrot.slane %v11595_v33, %v8556_v41  ;;  %v3457_v4 = vcombine.low %v8944_v21, %v8950_v50  ;;  %v5735_v17 = vpack.c.bf16 %v3678_v46, %v3610_v1 }
 0x192   :  { %v8974_v57 = vrot.slane %v11596_v0, %v8556_v41  ;;  %v8980_v53 = vrot.slane %v11597_v39, %v8556_v41  ;;  %v8987_v8 = vrot.slane %v3273_v26, %v8556_v41  ;;  %v3449_v9 = vrot.slane %v3441_v25, %v8563_v48 }
 0x193   :  { %v3509_v12 = vcombine.low %v8956_v22, %v8962_v58  ;;  %v3465_v33 = vrot.slane %v3457_v4, %v8563_v48  ;;  %v8994_v7 = vrot.slane %v7665_v10, %v8556_v41  ;;  %v5772_v59 = vsel %vm5761_vm2, %v5731_v60, 0  ;;  %1663 = vrot.lane.b32.xlu0 %v8573_v56, %s8271_s11 }
 0x194   :  { %v3525_v32 = vcombine.low %v8974_v57, %v8980_v53  ;;  %v5828_v62 = vsel %vm5761_vm2, %v5735_v17, 0  ;;  %v9002_v26 = vrot.slane %v3289_v18, %v8556_v41  ;;  %1625 = vrot.lane.b32.xlu1 %v8420_v51, %s8262_s25  ;;  %v9008_v10 = vrot.slane %v7666_v2, %v8556_v41 }
 0x195   :  { %v3517_v1 = vrot.slane %v3509_v12, %v8563_v48  ;;  %v3473_v19 = vcombine.low %v3449_v9, %v3465_v33  ;;  %v3474_v25 = vcombine.high %v3449_v9, %v3465_v33  ;;  %7894 = vmatpush3.bf16.xpose.msra.mxu1 %v5772_v59  ;;  %7906 = vmatpush3.bf16.xpose.msra.mxu0 %v5828_v62 }
 0x196   :  { %v3533_v46 = vrot.slane %v3525_v32, %v8563_v48  ;;  %v3305_v4 = vcombine.low %v8987_v8, %v8994_v7  ;;  %v9013_v56 = vrot.slane %v3341_v63, %v8556_v41  ;;  %v9016_v18 = vrot.slane %v7667_v36, %v8556_v41  ;;  %7895 = vmatprep.subr.bf16.mxu1 %v11590_v61 }
 0x197   :  { %7907 = vmatprep.subr.bf16.mxu0 %v11590_v61  ;;  %v3321_v2 = vcombine.low %v9002_v26, %v9008_v10  ;;  %v9024_v17 = vrot.slane %v3357_v20, %v8556_v41  ;;  %v9027_v63 = vrot.slane %v7668_v11, %v8556_v41  ;;  %1627 = vrot.lane.b32.xlu0 %v8432_v55, %s8262_s25 }
 0x198   :  { %v3541_v0 = vcombine.low %v3517_v1, %v3533_v46  ;;  %v3542_v39 = vcombine.high %v3517_v1, %v3533_v46  ;;  %v3313_v60 = vrot.slane %v3305_v4, %v8563_v48  ;;  %v3373_v36 = vcombine.low %v9013_v56, %v9016_v18  ;;  %1657 = vrot.lane.b32.xlu1 %v8420_v51, %s8271_s11 }
 0x199   :  { %v3329_v33 = vrot.slane %v3321_v2, %v8563_v48  ;;  %v3714_v20 = vcombine.high %v8747_v34, %v8750_v40  ;;  %v3389_v11 = vcombine.low %v9024_v17, %v9027_v63  ;;  %v3730_v59 = vcombine.high %v8753_v49, %v8756_v27 }
 0x19a   :  { %v5730_v12 = vpack.c.bf16 %v3541_v0, %v3473_v19  ;;  %v5734_v9 = vpack.c.bf16 %v3542_v39, %v3474_v25  ;;  %v3381_v32 = vrot.slane %v3373_v36, %v8563_v48  ;;  %v3782_v62 = vcombine.high %v8765_v23, %v8774_v6 }
 0x19b   :  { %v3337_v46 = vcombine.low %v3313_v60, %v3329_v33  ;;  %v3338_v51 = vcombine.high %v3313_v60, %v3329_v33  ;;  %v3397_v25 = vrot.slane %v3389_v11, %v8563_v48  ;;  %1659 = vrot.lane.b32.xlu0 %v8432_v55, %s8271_s11  ;;  %v3728_v34 = vrot.slane %v3714_v20, %v8563_v48 }
 0x19c   :  { %v5769_v1 = vsel %vm5761_vm2, %v5730_v12, 0  ;;  %v5825_v19 = vsel %vm5761_vm2, %v5734_v9, 0  ;;  %v3744_v40 = vrot.slane %v3730_v59, %v8563_v48  ;;  %v3796_v27 = vrot.slane %v3782_v62, %v8563_v48  ;;  %1623 = vrot.lane.b32.xlu1 %v8414_v47, %s8262_s25 }
 0x19d   :  { %v3798_v49 = vcombine.high %v8852_v3, %v8858_v16  ;;  %v3578_v23 = vcombine.high %v8639_v15, %v8642_v38  ;;  %v3594_v6 = vcombine.high %v8667_v44, %v8670_v45  ;;  %v3646_v55 = vcombine.high %v8675_v54, %v8687_v52  ;;  %7896 = vmatpush3.bf16.xpose.msra.mxu1 %v5769_v1 }
 0x19e   :  { %7908 = vmatpush3.bf16.xpose.msra.mxu0 %v5825_v19  ;;  %v3405_v4 = vcombine.low %v3381_v32, %v3397_v25  ;;  %v3406_v0 = vcombine.high %v3381_v32, %v3397_v25  ;;  %v3747_v39 = vcombine.low %v3728_v34, %v3744_v40  ;;  %7897 = vmatprep.subr.bf16.mxu1 %v11590_v61 }
 0x19f   :  { %7909 = vmatprep.subr.bf16.mxu0 %v11590_v61  ;;  %v3812_v3 = vrot.slane %v3798_v49, %v8563_v48  ;;  %v3748_v16 = vcombine.high %v3728_v34, %v3744_v40  ;;  %v3592_v15 = vrot.slane %v3578_v23, %v8563_v48  ;;  %1621 = vrot.lane.b32.xlu0 %v8406_v42, %s8262_s25 }
 0x1a0   :  { %v5729_v38 = vpack.c.bf16 %v3405_v4, %v3337_v46  ;;  %v5733_v2 = vpack.c.bf16 %v3406_v0, %v3338_v51  ;;  %v3608_v52 = vrot.slane %v3594_v6, %v8563_v48  ;;  %v3660_v44 = vrot.slane %v3646_v55, %v8563_v48  ;;  %1653 = vrot.lane.b32.xlu1 %v8406_v42, %s8271_s11  ;;  %v236_v4 = vpop.f32.mrf.mxu0  ;;  %v11599_v0 = vld [vmem:[#allocation17_spill] sm:$0xff] }
 0x1a1   :  { %v3815_v45 = vcombine.low %v3796_v27, %v3812_v3  ;;  %v3816_v54 = vcombine.high %v3796_v27, %v3812_v3  ;;  %v3662_v60 = vcombine.high %v8690_v13, %v8702_v31  ;;  %v3442_v36 = vcombine.high %v8929_v5, %v8938_v28 }
 0x1a2   :  { %v5766_v12 = vsel %vm5761_vm2, %v5729_v38, 0  ;;  %v5822_v9 = vsel %vm5761_vm2, %v5733_v2, 0  ;;  %v3611_v33 = vcombine.low %v3592_v15, %v3608_v52  ;;  %v3612_v20 = vcombine.high %v3592_v15, %v3608_v52 }
 0x1a3   :  { %v9079_v32 = vpack.c.bf16 %v3815_v45, %v3747_v39  ;;  %v9081_v11 = vpack.c.bf16 %v3816_v54, %v3748_v16  ;;  %v3676_v42 = vrot.slane %v3662_v60, %v8563_v48  ;;  %v3456_v59 = vrot.slane %v3442_v36, %v8563_v48  ;;  %1655 = vrot.lane.b32.xlu0 %v8414_v47, %s8271_s11  ;;  %v11601_v60 = vld [vmem:[#allocation18_spill] sm:$0xff] }
 0x1a4   :  { %v3458_v13 = vcombine.high %v8944_v21, %v8950_v50  ;;  %v3510_v31 = vcombine.high %v8956_v22, %v8962_v58  ;;  %v3526_v5 = vcombine.high %v8974_v57, %v8980_v53  ;;  %v3306_v28 = vcombine.high %v8987_v8, %v8994_v7  ;;  %1617 = vrot.lane.b32.xlu1 %v8387_v29, %s8262_s25 }
 0x1a5   :  { %v3679_v62 = vcombine.low %v3660_v44, %v3676_v42  ;;  %v3680_v1 = vcombine.high %v3660_v44, %v3676_v42  ;;  %7898 = vmatpush3.bf16.xpose.msra.mxu1 %v5766_v12  ;;  %v3322_v46 = vcombine.high %v9002_v26, %v9008_v10  ;;  %v3374_v51 = vcombine.high %v9013_v56, %v9016_v18 }
 0x1a6   :  { %7910 = vmatpush3.bf16.xpose.msra.mxu0 %v5822_v9  ;;  %v3472_v47 = vrot.slane %v3458_v13, %v8563_v48  ;;  %v3524_v21 = vrot.slane %v3510_v31, %v8563_v48  ;;  %v3540_v50 = vrot.slane %v3526_v5, %v8563_v48  ;;  %7915 = vmatprep.subr.bf16.mxu1 %v11590_v61 }
 0x1a7   :  { %7927 = vmatprep.subr.bf16.mxu0 %v11590_v61  ;;  %v9102_v22 = vpack.c.bf16 %v3679_v62, %v3611_v33  ;;  %v9104_v58 = vpack.c.bf16 %v3680_v1, %v3612_v20  ;;  %1619 = vrot.lane.b32.xlu0 %v8397_v35, %s8262_s25  ;;  %v3320_v19 = vrot.slane %v3306_v28, %v8563_v48 }
 0x1a8   :  { %v3475_v57 = vcombine.low %v3456_v59, %v3472_v47  ;;  %v3543_v53 = vcombine.low %v3524_v21, %v3540_v50  ;;  %v3476_v8 = vcombine.high %v3456_v59, %v3472_v47  ;;  %v3544_v7 = vcombine.high %v3524_v21, %v3540_v50  ;;  %1649 = vrot.lane.b32.xlu1 %v8387_v29, %s8271_s11 }
 0x1a9   :  { %v3390_v40 = vcombine.high %v9024_v17, %v9027_v63  ;;  %v257_v27 = vadd.f32 %v8518_v14, %v8380_v24  ;;  %v3336_v29 = vrot.slane %v3322_v46, %v8563_v48  ;;  %v3388_v49 = vrot.slane %v3374_v51, %v8563_v48  ;;  %v11598_v63 = vld [vmem:[#allocation5_spill] sm:$0xff] }
 0x1aa   :  { %v9115_v25 = vpack.c.bf16 %v3543_v53, %v3475_v57  ;;  %v9117_v34 = vpack.c.bf16 %v3544_v7, %v3476_v8  ;;  %v237_v38 = vadd.f32 %v236_v4, %v8380_v24  ;;  %v11602_v53 = vld [vmem:[#allocation8_spill] sm:$0xff] }
 0x1ab   :  { %1651 = vrot.lane.b32.xlu0 %v8397_v35, %s8271_s11  ;;  %v3404_v26 = vrot.slane %v3390_v40, %v8563_v48  ;;  %v3339_v10 = vcombine.low %v3320_v19, %v3336_v29  ;;  %v3340_v56 = vcombine.high %v3320_v19, %v3336_v29 }
 0x1ac   :  { %1647 = vrot.lane.b32.xlu1 %v257_v27, %s8262_s25 }
 0x1ad   :  { %v3407_v18 = vcombine.low %v3388_v49, %v3404_v26  ;;  %v3408_v23 = vcombine.high %v3388_v49, %v3404_v26 }
 0x1af   :  { %1645 = vrot.lane.b32.xlu0 %v8409_v43, %s8262_s25  ;;  %v9131_v17 = vpack.c.bf16 %v3407_v18, %v3339_v10  ;;  %v9133_v14 = vpack.c.bf16 %v3408_v23, %v3340_v56  ;;  %v11604_v10 = vld [vmem:[#allocation9_spill] sm:$0xff] }
 0x1b0   :  { %1677 = vrot.lane.b32.xlu1 %v8409_v43, %s8271_s11  ;;  %v11600_v43 = vld [vmem:[#allocation14_spill] sm:$0xff] }
 0x1b3   :  { %1679 = vrot.lane.b32.xlu0 %v257_v27, %s8271_s11 }
 0x1b4   :  { %1641 = vrot.lane.b32.xlu1 %v8390_v30, %s8262_s25  ;;  %v2966_v35 = vpop.permute.xlu1 %2965 }
 0x1b7   :  { %1643 = vrot.lane.b32.xlu0 %v11598_v63, %s8262_s25 }
 0x1b8   :  { %1673 = vrot.lane.b32.xlu1 %v8390_v30, %s8271_s11  ;;  %v2968_v6 = vpop.permute.xlu0 %2967  ;;  %v2978_v55 = vpop.permute.xlu1 %2977 }
 0x1b9   :  { %v3001_v39 = vcombine.low %v11599_v0, %v2978_v55  ;;  %v3002_v3 = vcombine.high %v11599_v0, %v2978_v55 }
 0x1bb   :  { %1675 = vrot.lane.b32.xlu0 %v11598_v63, %s8271_s11  ;;  %v3009_v30 = vrot.slane %v3001_v39, %v8556_v41  ;;  %v3016_v44 = vrot.slane %v3002_v3, %v8556_v41  ;;  %v11605_v63 = vld [vmem:[#allocation10_spill] sm:$0xff] }
 0x1bc   :  { %1637 = vrot.lane.b32.xlu1 %v11600_v43, %s8262_s25  ;;  %v2980_v16 = vpop.permute.xlu0 %2979  ;;  %v2990_v15 = vpop.permute.xlu1 %2989 }
 0x1bd   :  { %v3017_v2 = vcombine.low %v2966_v35, %v2990_v15  ;;  %v3018_v52 = vcombine.high %v2966_v35, %v2990_v15  ;;  %v3069_v36 = vcombine.low %v11601_v60, %v2980_v16  ;;  %v3070_v12 = vcombine.high %v11601_v60, %v2980_v16 }
 0x1be   :  { %v9213_v60 = vsel %vm5761_vm2, %v9081_v11, 0 }
 0x1bf   :  { %v3025_v45 = vrot.slane %v3017_v2, %v8556_v41  ;;  %v3032_v54 = vrot.slane %v3018_v52, %v8556_v41  ;;  %1639 = vrot.lane.b32.xlu0 %v237_v38, %s8262_s25  ;;  %v3077_v47 = vrot.slane %v3069_v36, %v8556_v41  ;;  %v3084_v21 = vrot.slane %v3070_v12, %v8556_v41 }
 0x1c0   :  { %1669 = vrot.lane.b32.xlu1 %v11600_v43, %s8271_s11  ;;  %v2992_v24 = vpop.permute.xlu0 %2991  ;;  %v9160_v9 = vpop.permute.xlu1 %397  ;;  %v11607_v43 = vld [vmem:[#allocation12_spill] sm:$0xff] }
 0x1c1   :  { %v3033_v33 = vcombine.low %v3009_v30, %v3025_v45  ;;  %v3034_v20 = vcombine.high %v3009_v30, %v3025_v45  ;;  %v3049_v42 = vcombine.low %v3016_v44, %v3032_v54  ;;  %v3050_v59 = vcombine.high %v3016_v44, %v3032_v54  ;;  %v11608_v44 = vld [vmem:[#allocation19_spill] sm:$0xff] }
 0x1c2   :  { %v3085_v13 = vcombine.low %v2968_v6, %v2992_v24  ;;  %v3086_v31 = vcombine.high %v2968_v6, %v2992_v24  ;;  %v9209_v54 = vsel %vm5761_vm2, %v9079_v32, 0 }
 0x1c3   :  { %v3041_v5 = vrot.slane %v3033_v33, %v8563_v48  ;;  %v3048_v28 = vrot.slane %v3034_v20, %v8563_v48  ;;  %v3057_v62 = vrot.slane %v3049_v42, %v8563_v48  ;;  %v3064_v1 = vrot.slane %v3050_v59, %v8563_v48  ;;  %1671 = vrot.lane.b32.xlu0 %v237_v38, %s8271_s11 }
 0x1c4   :  { %v3093_v50 = vrot.slane %v3085_v13, %v8556_v41  ;;  %v3100_v57 = vrot.slane %v3086_v31, %v8556_v41  ;;  %1693 = vrot.lane.b32.xlu1 %v11602_v53, %s8262_s25  ;;  %v9173_v8 = vpop.permute.xlu0 %399  ;;  %v9175_v7 = vpop.permute.xlu1 %445  ;;  %v11609_v31 = vld [vmem:[#allocation20_spill] sm:$0xff] }
 0x1c5   :  { %11603 = vst [vmem:[#allocation5_spill] sm:$0xff] %v9175_v7  ;;  %v5449_v27 = vcombine.low %v3041_v5, %v3048_v28  ;;  %v7729_v29 = vcombine.high %v3041_v5, %v3048_v28  ;;  %v5465_v49 = vcombine.low %v3057_v62, %v3064_v1  ;;  %v7730_v26 = vcombine.high %v3057_v62, %v3064_v1  ;;  %v11610_v62 = vld [vmem:[#allocation6_spill] sm:$0xff] }
 0x1c6   :  { %v3101_v19 = vcombine.low %v3077_v47, %v3093_v50  ;;  %v3102_v46 = vcombine.high %v3077_v47, %v3093_v50  ;;  %v3117_v51 = vcombine.low %v3084_v21, %v3100_v57  ;;  %v3118_v40 = vcombine.high %v3084_v21, %v3100_v57 }
 0x1c7   :  { %1695 = vrot.lane.b32.xlu0 %v11604_v10, %s8262_s25  ;;  %v9190_v16 = vrot.slane %v5449_v27, %v8556_v41  ;;  %v9193_v15 = vrot.slane %v7729_v29, %v8556_v41  ;;  %v9196_v38 = vrot.slane %v5465_v49, %v8556_v41  ;;  %v9199_v2 = vrot.slane %v7730_v26, %v8556_v41  ;;  %v11612_v29 = vld [vmem:[#allocation7_spill] sm:$0xff]  ;;  %v11613_v10 = vld [vmem:[#allocation13_spill] sm:$0xff] }
 0x1c8   :  { %v3109_v56 = vrot.slane %v3101_v19, %v8563_v48  ;;  %v3116_v18 = vrot.slane %v3102_v46, %v8563_v48  ;;  %v3125_v23 = vrot.slane %v3117_v51, %v8563_v48  ;;  %v3132_v35 = vrot.slane %v3118_v40, %v8563_v48  ;;  %1633 = vrot.lane.b32.xlu1 %v11605_v63, %s8262_s25  ;;  %v9185_v6 = vpop.permute.xlu0 %447  ;;  %v494_v55 = vpop.permute.xlu1 %493 }
 0x1c9   :  { %11606 = vst [vmem:[#allocation17_spill] sm:$0xff] %v9185_v6  ;;  %v1465_v45 = vcombine.low %v11608_v44, %v9175_v7  ;;  %v1466_v32 = vcombine.high %v11608_v44, %v9175_v7  ;;  %v1481_v20 = vcombine.low %v9160_v9, %v494_v55  ;;  %v1482_v11 = vcombine.high %v9160_v9, %v494_v55 }
 0x1ca   :  { %v5517_v4 = vcombine.low %v3109_v56, %v3116_v18  ;;  %v7731_v0 = vcombine.high %v3109_v56, %v3116_v18  ;;  %v5533_v39 = vcombine.low %v3125_v23, %v3132_v35  ;;  %v7732_v3 = vcombine.high %v3125_v23, %v3132_v35 }
 0x1cb   :  { %1635 = vrot.lane.b32.xlu0 %v11607_v43, %s8262_s25  ;;  %v5481_v59 = vcombine.low %v9190_v16, %v9193_v15  ;;  %v5497_v13 = vcombine.low %v9196_v38, %v9199_v2  ;;  %v1533_v5 = vcombine.low %v11609_v31, %v9185_v6  ;;  %v1534_v47 = vcombine.high %v11609_v31, %v9185_v6 }
 0x1cc   :  { %1665 = vrot.lane.b32.xlu1 %v11605_v63, %s8271_s11  ;;  %v496_v52 = vpop.permute.xlu0 %495  ;;  %v9203_v30 = vpop.permute.xlu1 %393  ;;  %v9216_v36 = vrot.slane %v5517_v4, %v8556_v41  ;;  %v9219_v12 = vrot.slane %v7731_v0, %v8556_v41  ;;  %v9222_v24 = vrot.slane %v5533_v39, %v8556_v41  ;;  %v9225_v33 = vrot.slane %v7732_v3, %v8556_v41 }
 0x1cd   :  { %v1549_v42 = vcombine.low %v9173_v8, %v496_v52  ;;  %v1550_v28 = vcombine.high %v9173_v8, %v496_v52  ;;  %v1489_v21 = vrot.slane %v1481_v20, %v8556_v41  ;;  %v1496_v50 = vrot.slane %v1482_v11, %v8556_v41 }
 0x1ce   :  { %v9253_v57 = vsel %vm5761_vm2, %v9102_v22, 0  ;;  %v5482_v53 = vcombine.high %v9190_v16, %v9193_v15  ;;  %v5549_v8 = vcombine.low %v9216_v36, %v9219_v12  ;;  %v5565_v19 = vcombine.low %v9222_v24, %v9225_v33 }
 0x1cf   :  { %1667 = vrot.lane.b32.xlu0 %v11607_v43, %s8271_s11  ;;  %v9263_v46 = vsel %vm5761_vm2, %v9104_v58, 0  ;;  %v5498_v51 = vcombine.high %v9196_v38, %v9199_v2  ;;  %v1473_v40 = vrot.slane %v1465_v45, %v8556_v41  ;;  %v1480_v22 = vrot.slane %v1466_v32, %v8556_v41  ;;  %v11615_v32 = vld [vmem:[#allocation22_spill] sm:$0xff] }
 0x1d0   :  { %1689 = vrot.lane.b32.xlu1 %v11610_v62, %s8262_s25  ;;  %v9243_v9 = vpop.permute.xlu0 %395  ;;  %v9245_v1 = vpop.permute.xlu1 %441  ;;  %v1557_v27 = vrot.slane %v1549_v42, %v8556_v41  ;;  %v1541_v49 = vrot.slane %v1533_v5, %v8556_v41  ;;  %v1564_v26 = vrot.slane %v1550_v28, %v8556_v41  ;;  %v5489_v56 = vrot.slane %v5481_v59, %v8563_v48  ;;  %v11616_v42 = vld [vmem:[#allocation11_spill] sm:$0xff] }
 0x1d1   :  { %11611 = vst [vmem:[#allocation14_spill] sm:$0xff] %v9245_v1  ;;  %v5505_v18 = vrot.slane %v5497_v13, %v8563_v48  ;;  %v1548_v23 = vrot.slane %v1534_v47, %v8556_v41  ;;  %v1497_v35 = vcombine.low %v1473_v40, %v1489_v21  ;;  %v1498_v63 = vcombine.high %v1473_v40, %v1489_v21  ;;  %v11617_v62 = vld [vmem:[#allocation15_spill] sm:$0xff] }
 0x1d2   :  { %v1513_v55 = vcombine.low %v1480_v22, %v1496_v50  ;;  %v5557_v3 = vrot.slane %v5549_v8, %v8563_v48  ;;  %v5573_v43 = vrot.slane %v5565_v19, %v8563_v48  ;;  %v1514_v52 = vcombine.high %v1480_v22, %v1496_v50 }
 0x1d3   :  { %1691 = vrot.lane.b32.xlu0 %v11612_v29, %s8262_s25  ;;  %v1565_v45 = vcombine.low %v1541_v49, %v1557_v27  ;;  %v1329_v20 = vcombine.low %v11615_v32, %v9245_v1  ;;  %v1330_v11 = vcombine.high %v11615_v32, %v9245_v1  ;;  %v1566_v59 = vcombine.high %v1541_v49, %v1557_v27 }
 0x1d4   :  { %1687 = vrot.lane.b32.xlu1 %v11613_v10, %s8262_s25  ;;  %v9276_v58 = vpop.permute.xlu0 %443  ;;  %v1581_v13 = vcombine.low %v1548_v23, %v1564_v26  ;;  %v5513_v5 = vcombine.low %v5489_v56, %v5505_v18  ;;  %v5514_v28 = vcombine.high %v5489_v56, %v5505_v18  ;;  %v9296_v21 = vrot.slane %v1497_v35, %v8563_v48  ;;  %v11618_v18 = vld [vmem:[#allocation24_spill] sm:$0xff] }
 0x1d5   :  { %11614 = vst [vmem:[#allocation18_spill] sm:$0xff] %v9276_v58  ;;  %v490_v4 = vpop.permute.xlu1 %489  ;;  %v9299_v50 = vrot.slane %v1498_v63, %v8563_v48  ;;  %v9302_v8 = vrot.slane %v1513_v55, %v8563_v48  ;;  %v1582_v19 = vcombine.high %v1548_v23, %v1564_v26  ;;  %v5581_v29 = vcombine.low %v5557_v3, %v5573_v43  ;;  %v11619_v26 = vld [vmem:[#allocation16_spill] sm:$0xff] }
 0x1d6   :  { %v1345_v22 = vcombine.low %v9203_v30, %v490_v4  ;;  %v1346_v27 = vcombine.high %v9203_v30, %v490_v4  ;;  %v5582_v49 = vcombine.high %v5557_v3, %v5573_v43  ;;  %v9309_v10 = vrot.slane %v1514_v52, %v8563_v48  ;;  %v11620_v3 = vld [vmem:[#allocation34_spill] sm:$0xff] }
 0x1d7   :  { %1685 = vrot.lane.b32.xlu0 %v11616_v42, %s8262_s25  ;;  %v9312_v56 = vrot.slane %v1565_v45, %v8563_v48  ;;  %v1397_v35 = vcombine.low %v11618_v18, %v9276_v58  ;;  %v5721_v55 = vpack.c.bf16 %v5581_v29, %v5513_v5  ;;  %v9326_v52 = vrot.slane %v1566_v59, %v8563_v48 }
 0x1d8   :  { %1681 = vrot.lane.b32.xlu1 %v11617_v62, %s8262_s25  ;;  %v492_v47 = vpop.permute.xlu0 %491  ;;  %v1353_v23 = vrot.slane %v1345_v22, %v8556_v41  ;;  %v5722_v30 = vpack.c.bf16 %v5582_v49, %v5514_v28  ;;  %v9329_v45 = vrot.slane %v1581_v13, %v8563_v48  ;;  %v9332_v42 = vrot.slane %v1582_v19, %v8563_v48 }
 0x1d9   :  { %v9304_v40 = vpop.permute.xlu1 %389  ;;  %v1413_v63 = vcombine.low %v9243_v9, %v492_v47  ;;  %v1414_v4 = vcombine.high %v9243_v9, %v492_v47  ;;  %v1360_v62 = vrot.slane %v1346_v27, %v8556_v41  ;;  %v1337_v28 = vrot.slane %v1329_v20, %v8556_v41  ;;  %7900 = vmatmul.mubr.msk.bf16.vlgmr.msra.gmra.mxu1 %vm5761_vm2, %v5721_v55 }
 0x1da   :  { %v1398_v47 = vcombine.high %v11618_v18, %v9276_v58  ;;  %v1344_v22 = vrot.slane %v1330_v11, %v8556_v41  ;;  %7912 = vmatmul.mubr.msk.bf16.vlgmr.msra.gmra.mxu0 %vm5761_vm2, %v5722_v30  ;;  %7916 = vmatpush3.bf16.xpose.msra.mxu1 %v9209_v54  ;;  %v9353_v20 = vsel %vm5761_vm2, %v9115_v25, 0  ;;  %v1405_v29 = vrot.slane %v1397_v35, %v8556_v41 }
 0x1db   :  { %1683 = vrot.lane.b32.xlu0 %v11619_v26, %s8262_s25  ;;  %v1421_v59 = vrot.slane %v1413_v63, %v8556_v41  ;;  %v1361_v49 = vcombine.low %v1337_v28, %v1353_v23  ;;  %7928 = vmatpush3.bf16.xpose.msra.mxu0 %v9213_v60  ;;  %v1428_v63 = vrot.slane %v1414_v4, %v8556_v41 }
 0x1dc   :  { %1713 = vrot.lane.b32.xlu1 %v11620_v3, %s8262_s25  ;;  %v9323_v43 = vpop.permute.xlu0 %391  ;;  %v1362_v54 = vcombine.high %v1337_v28, %v1353_v23  ;;  %v1377_v55 = vcombine.low %v1344_v22, %v1360_v62  ;;  %v1378_v30 = vcombine.high %v1344_v22, %v1360_v62  ;;  %7917 = vmatprep.subr.bf16.mxu1 %v11590_v61  ;;  %v11623_v23 = vld [vmem:[#allocation27_spill] sm:$0xff] }
 0x1dd   :  { %v9335_v5 = vpop.permute.xlu1 %437  ;;  %v1412_v60 = vrot.slane %v1398_v47, %v8556_v41  ;;  %v1429_v4 = vcombine.low %v1405_v29, %v1421_v59  ;;  %7929 = vmatprep.subr.bf16.mxu0 %v11590_v61  ;;  %v11624_v28 = vld [vmem:[#allocation35_spill] sm:$0xff]  ;;  %v9381_v22 = vrot.slane %v5482_v53, %v8563_v48  ;;  %v9387_v47 = vrot.slane %v5498_v51, %v8563_v48 }
 0x1de   :  { %11621 = vst [vmem:[#allocation8_spill] sm:$0xff] %v9335_v5  ;;  %v1193_v62 = vcombine.low %v11623_v23, %v9335_v5  ;;  %v9390_v11 = vrot.slane %v1361_v49, %v8563_v48  ;;  %v1430_v35 = vcombine.high %v1405_v29, %v1421_v59  ;;  %7923 = vmatprep.mubr.msk.bf16.mxu1 %vm8270_vm1, %v11590_v61 }
 0x1df   :  { %1715 = vrot.lane.b32.xlu0 %v11624_v28, %s8262_s25  ;;  %v1445_v3 = vcombine.low %v1412_v60, %v1428_v63  ;;  %v9396_v16 = vrot.slane %v1362_v54, %v8563_v48  ;;  %v9399_v15 = vrot.slane %v1377_v55, %v8563_v48  ;;  %v9402_v38 = vrot.slane %v1378_v30, %v8563_v48 }
 0x1e0   :  { %v9360_v26 = vpop.permute.xlu0 %439  ;;  %7935 = vmatprep.mubr.msk.bf16.mxu0 %vm8270_vm1, %v11590_v61  ;;  %v9410_v51 = vrot.slane %v1429_v4, %v8563_v48  ;;  %v1446_v59 = vcombine.high %v1412_v60, %v1428_v63  ;;  %v1194_v29 = vcombine.high %v11623_v23, %v9335_v5  ;;  %v1201_v54 = vrot.slane %v1193_v62, %v8556_v41 }
 0x1e1   :  { %11622 = vst [vmem:[#allocation9_spill] sm:$0xff] %v9360_v26  ;;  %v486_v25 = vpop.permute.xlu1 %485  ;;  %v5937_v30 = vsel %vm5761_vm2, %v9117_v34, 0  ;;  %v9424_v63 = vrot.slane %v1430_v35, %v8563_v48  ;;  %v9438_v34 = vrot.slane %v1445_v3, %v8563_v48 }
 0x1e2   :  { %v1209_v27 = vcombine.low %v9304_v40, %v486_v25  ;;  %v1210_v2 = vcombine.high %v9304_v40, %v486_v25  ;;  %7918 = vmatpush3.bf16.xpose.msra.mxu1 %v9253_v57 }
 0x1e3   :  { %1709 = vrot.lane.b32.xlu0 %v11608_v44, %s8262_s25  ;;  %7930 = vmatpush3.bf16.xpose.msra.mxu0 %v9263_v46 }
 0x1e4   :  { %v488_v28 = vpop.permute.xlu0 %487  ;;  %v1217_v49 = vrot.slane %v1209_v27, %v8556_v41  ;;  %v11625_v27 = vld [vmem:[#allocation29_spill] sm:$0xff]  ;;  %v1224_v57 = vrot.slane %v1210_v2, %v8556_v41  ;;  %7919 = vmatprep.subr.bf16.mxu1 %v11590_v61  ;;  %7931 = vmatprep.subr.bf16.mxu0 %v11590_v61 }
 0x1e5   :  { %v9405_v53 = vpop.permute.xlu1 %385  ;;  %v1277_v40 = vcombine.low %v9323_v43, %v488_v28  ;;  %v1278_v55 = vcombine.high %v9323_v43, %v488_v28  ;;  %v1261_v25 = vcombine.low %v11625_v27, %v9360_v26  ;;  %v9435_v43 = vsel %vm5761_vm2, %v9131_v17, 0 }
 0x1e6   :  { %v1262_v35 = vcombine.high %v11625_v27, %v9360_v26  ;;  %v1225_v46 = vcombine.low %v1201_v54, %v1217_v49  ;;  %v1226_v60 = vcombine.high %v1201_v54, %v1217_v49  ;;  %v9448_v28 = vrot.slane %v1446_v59, %v8563_v48 }
 0x1e7   :  { %v1208_v17 = vrot.slane %v1194_v29, %v8556_v41  ;;  %v1285_v3 = vrot.slane %v1277_v40, %v8556_v41  ;;  %v1292_v19 = vrot.slane %v1278_v55, %v8556_v41  ;;  %v1269_v29 = vrot.slane %v1261_v25, %v8556_v41 }
 0x1e8   :  { %v9431_v44 = vpop.permute.xlu0 %387  ;;  %v1276_v2 = vrot.slane %v1262_v35, %v8556_v41  ;;  %v9468_v49 = vrot.slane %v1225_v46, %v8563_v48  ;;  %v9471_v54 = vrot.slane %v1226_v60, %v8563_v48  ;;  %v11628_v35 = vld [vmem:[#allocation25_spill] sm:$0xff]  ;;  %v5515_v60 = vcombine.low %v9381_v22, %v9387_v47 }
 0x1e9   :  { %v9443_v4 = vpop.permute.xlu1 %433  ;;  %v1241_v40 = vcombine.low %v1208_v17, %v1224_v57  ;;  %v1242_v55 = vcombine.high %v1208_v17, %v1224_v57  ;;  %v1293_v25 = vcombine.low %v1269_v29, %v1285_v3  ;;  %v1294_v39 = vcombine.high %v1269_v29, %v1285_v3 }
 0x1ea   :  { %11626 = vst [vmem:[#allocation10_spill] sm:$0xff] %v9443_v4  ;;  %v1309_v0 = vcombine.low %v1276_v2, %v1292_v19  ;;  %v1310_v5 = vcombine.high %v1276_v2, %v1292_v19  ;;  %7920 = vmatpush3.bf16.xpose.msra.mxu1 %v9353_v20  ;;  %v1057_v46 = vcombine.low %v11628_v35, %v9443_v4  ;;  %v5934_v19 = vsel %vm5761_vm2, %v9133_v14, 0 }
 0x1eb   :  { %v9483_v57 = vrot.slane %v1241_v40, %v8563_v48  ;;  %7932 = vmatpush3.bf16.xpose.msra.mxu0 %v5937_v30  ;;  %v1058_v17 = vcombine.high %v11628_v35, %v9443_v4  ;;  %7921 = vmatprep.subr.bf16.mxu1 %v11590_v61  ;;  %v9492_v2 = vrot.slane %v1242_v55, %v8563_v48 }
 0x1ec   :  { %v9464_v13 = vpop.permute.xlu0 %435  ;;  %7933 = vmatprep.subr.bf16.mxu0 %v11590_v61  ;;  %v9504_v14 = vrot.slane %v1293_v25, %v8563_v48  ;;  %v9507_v55 = vrot.slane %v1294_v39, %v8563_v48  ;;  %v9511_v29 = vrot.slane %v1309_v0, %v8563_v48  ;;  %v1065_v62 = vrot.slane %v1057_v46, %v8556_v41 }
 0x1ed   :  { %11627 = vst [vmem:[#allocation12_spill] sm:$0xff] %v9464_v13  ;;  %v482_v9 = vpop.permute.xlu1 %481  ;;  %v11630_v0 = vcombine.high %v9216_v36, %v9219_v12  ;;  %v1072_v12 = vrot.slane %v1058_v17, %v8556_v41 }
 0x1ee   :  { %v1073_v3 = vcombine.low %v9405_v53, %v482_v9  ;;  %v1074_v30 = vcombine.high %v9405_v53, %v482_v9  ;;  %v9514_v9 = vrot.slane %v1310_v5, %v8563_v48  ;;  %v11629_v53 = vld [vmem:[#allocation26_spill] sm:$0xff]  ;;  %v11631_v5 = vcombine.high %v9222_v24, %v9225_v33 }
 0x1ef   :  { %v1125_v35 = vcombine.low %v11629_v53, %v9464_v13  ;;  %v1126_v25 = vcombine.high %v11629_v53, %v9464_v13 }
 0x1f0   :  { %v484_v20 = vpop.permute.xlu0 %483  ;;  %v1081_v4 = vrot.slane %v1073_v3, %v8556_v41  ;;  %v5564_v3 = vrot.slane %v11630_v0, %v8563_v48  ;;  %v5580_v27 = vrot.slane %v11631_v5, %v8563_v48 }
 0x1f1   :  { %v1141_v40 = vcombine.low %v9431_v44, %v484_v20  ;;  %v9499_v59 = vpop.permute.xlu1 %2969  ;;  %v1142_v26 = vcombine.high %v9431_v44, %v484_v20  ;;  %v1088_v20 = vrot.slane %v1074_v30, %v8556_v41  ;;  %v1133_v30 = vrot.slane %v1125_v35, %v8556_v41 }
 0x1f2   :  { %v1089_v24 = vcombine.low %v1065_v62, %v1081_v4  ;;  %v1090_v33 = vcombine.high %v1065_v62, %v1081_v4  ;;  %7922 = vmatpush3.bf16.xpose.msra.mxu1 %v9435_v43  ;;  %v9557_v17 = vrot.slane %v1126_v25, %v8556_v41  ;;  %v5583_v4 = vcombine.low %v5564_v3, %v5580_v27 }
 0x1f3   :  { %v9538_v13 = vrot.slane %v1141_v40, %v8556_v41  ;;  %v9552_v40 = vrot.slane %v1142_v26, %v8556_v41  ;;  %7934 = vmatpush3.bf16.xpose.msra.mxu0 %v5934_v19  ;;  %v5516_v62 = vcombine.high %v9381_v22, %v9387_v47  ;;  %v1105_v5 = vcombine.low %v1072_v12, %v1088_v20 }
 0x1f4   :  { %v9522_v39 = vpop.permute.xlu0 %2971  ;;  %v1106_v35 = vcombine.high %v1072_v12, %v1088_v20  ;;  %7939 = vmatprep.subr.bf16.mxu1 %v11590_v61  ;;  %v11632_v26 = vcombine.low %v9296_v21, %v9299_v50  ;;  %v9572_v19 = vrot.slane %v1089_v24, %v8563_v48  ;;  %v9575_v22 = vrot.slane %v1090_v33, %v8563_v48 }
 0x1f5   :  { %v9540_v53 = vpop.permute.xlu1 %2981  ;;  %v1157_v43 = vcombine.low %v1133_v30, %v9538_v13  ;;  %v1158_v47 = vcombine.high %v1133_v30, %v9538_v13  ;;  %v5584_v20 = vcombine.high %v5564_v3, %v5580_v27  ;;  %7951 = vmatprep.subr.bf16.mxu0 %v11590_v61  ;;  %v1173_v12 = vcombine.low %v9557_v17, %v9552_v40 }
 0x1f6   :  { %v9569_v36 = vrot.slane %v11632_v26, %v8556_v41  ;;  %v1174_v46 = vcombine.high %v9557_v17, %v9552_v40  ;;  %v11633_v26 = vcombine.high %v9296_v21, %v9299_v50  ;;  %v11634_v33 = vcombine.low %v9302_v8, %v9309_v10 }
 0x1f7   :  { %v5723_v27 = vpack.c.bf16 %v5583_v4, %v5515_v60  ;;  %v11635_v3 = vcombine.high %v9302_v8, %v9309_v10  ;;  %v11636_v40 = vcombine.low %v9312_v56, %v9326_v52  ;;  %v11637_v50 = vcombine.high %v9312_v56, %v9326_v52  ;;  %v11640_v56 = vld [vmem:[#allocation28_spill] sm:$0xff] }
 0x1f8   :  { %v9561_v0 = vpop.permute.xlu0 %2983  ;;  %v9587_v24 = vrot.slane %v11633_v26, %v8556_v41  ;;  %v9593_v13 = vrot.slane %v11634_v33, %v8556_v41  ;;  %v9614_v60 = vrot.slane %v1105_v5, %v8563_v48  ;;  %v5724_v4 = vpack.c.bf16 %v5584_v20, %v5516_v62 }
 0x1f9   :  { %v2994_v25 = vpop.permute.xlu1 %2993  ;;  %v9599_v30 = vrot.slane %v11635_v3, %v8556_v41  ;;  %v9605_v21 = vrot.slane %v11636_v40, %v8556_v41  ;;  %v9611_v17 = vrot.slane %v11637_v50, %v8556_v41  ;;  %v11638_v10 = vcombine.low %v9329_v45, %v9332_v42  ;;  %7924 = vmatmul.mubr.msk.bf16.vlgmr.msra.gmra.mxu1 %vm5761_vm2, %v5723_v27 }
 0x1fa   :  { %v4257_v8 = vcombine.low %v9569_v36, %v9587_v24  ;;  %v3137_v52 = vcombine.low %v11640_v56, %v9540_v53  ;;  %v11641_v62 = vcombine.high %v9329_v45, %v9332_v42  ;;  %7936 = vmatmul.mubr.msk.bf16.vlgmr.msra.gmra.mxu0 %vm5761_vm2, %v5724_v4  ;;  %v3205_v27 = vcombine.low %v8614_v37, %v9561_v0 }
 0x1fb   :  { %v9622_v33 = vrot.slane %v11638_v10, %v8556_v41  ;;  %v4273_v5 = vcombine.low %v9593_v13, %v9599_v30  ;;  %v4325_v40 = vcombine.low %v9605_v21, %v9611_v17  ;;  %v3153_v10 = vcombine.low %v9499_v59, %v2994_v25  ;;  %7947 = vmatprep.mubr.msk.bf16.mxu1 %vm8270_vm1, %v11590_v61 }
 0x1fc   :  { %v2996_v26 = vpop.permute.xlu0 %2995  ;;  %v9635_v20 = vrot.slane %v11641_v62, %v8556_v41  ;;  %v4265_v50 = vrot.slane %v4257_v8, %v8563_v48  ;;  %v3154_v44 = vcombine.high %v9499_v59, %v2994_v25  ;;  %v9646_v23 = vrot.slane %v1106_v35, %v8563_v48  ;;  %7959 = vmatprep.mubr.msk.bf16.mxu0 %vm8270_vm1, %v11590_v61 }
 0x1fd   :  { %v9624_v3 = vpop.permute.xlu1 %1631  ;;  %v4281_v45 = vrot.slane %v4273_v5, %v8563_v48  ;;  %v4333_v42 = vrot.slane %v4325_v40, %v8563_v48  ;;  %v9655_v4 = vrot.slane %v1157_v43, %v8563_v48  ;;  %v3138_v8 = vcombine.high %v11640_v56, %v9540_v53 }
 0x1fe   :  { %11639 = vst [vmem:[#allocation19_spill] sm:$0xff] %v9624_v3  ;;  %v4341_v62 = vcombine.low %v9622_v33, %v9635_v20  ;;  %v3161_v59 = vrot.slane %v3153_v10, %v8556_v41  ;;  %v3221_v35 = vcombine.low %v9522_v39, %v2996_v26  ;;  %v9668_v40 = vrot.slane %v1158_v47, %v8563_v48 }
 0x1ff   :  { %v3145_v43 = vrot.slane %v3137_v52, %v8556_v41  ;;  %v4289_v56 = vcombine.low %v4265_v50, %v4281_v45  ;;  %v4290_v10 = vcombine.high %v4265_v50, %v4281_v45  ;;  %v3213_v58 = vrot.slane %v3205_v27, %v8556_v41 }
 0x200   :  { %v4349_v1 = vrot.slane %v4341_v62, %v8563_v48  ;;  %v3168_v32 = vrot.slane %v3154_v44, %v8556_v41  ;;  %v3222_v3 = vcombine.high %v9522_v39, %v2996_v26  ;;  %v3229_v5 = vrot.slane %v3221_v35, %v8556_v41 }
 0x201   :  { %v9661_v25 = vpop.permute.xlu0 %1629  ;;  %v3152_v47 = vrot.slane %v3138_v8, %v8556_v41  ;;  %v3206_v52 = vcombine.high %v8614_v37, %v9561_v0  ;;  %v3169_v62 = vcombine.low %v3145_v43, %v3161_v59  ;;  %v3170_v7 = vcombine.high %v3145_v43, %v3161_v59 }
 0x202   :  { %11642 = vst [vmem:[#allocation20_spill] sm:$0xff] %v9661_v25  ;;  %v9672_v53 = vpop.permute.xlu1 %1661  ;;  %v4357_v18 = vcombine.low %v4333_v42, %v4349_v1  ;;  %v4358_v25 = vcombine.high %v4333_v42, %v4349_v1  ;;  %v3237_v27 = vcombine.low %v3213_v58, %v3229_v5  ;;  %v3238_v6 = vcombine.high %v3213_v58, %v3229_v5 }
 0x203   :  { %11643 = vst [vmem:[#allocation6_spill] sm:$0xff] %v9672_v53  ;;  %v9688_v39 = vrot.slane %v1173_v12, %v8563_v48  ;;  %v3185_v26 = vcombine.low %v3152_v47, %v3168_v32  ;;  %v3186_v42 = vcombine.high %v3152_v47, %v3168_v32  ;;  %v9691_v37 = vrot.slane %v1174_v46, %v8563_v48 }
 0x204   :  { %v5748_v50 = vpack.c.bf16 %v4357_v18, %v4289_v56  ;;  %v5752_v45 = vpack.c.bf16 %v4358_v25, %v4290_v10  ;;  %v3236_v8 = vrot.slane %v3222_v3, %v8556_v41  ;;  %v9699_v59 = vrot.slane %v3169_v62, %v8563_v48 }
 0x205   :  { %v9681_v53 = vpop.permute.xlu0 %1663  ;;  %v9702_v12 = vrot.slane %v3170_v7, %v8563_v48  ;;  %v3220_v35 = vrot.slane %v3206_v52, %v8556_v41  ;;  %v9710_v3 = vrot.slane %v3237_v27, %v8563_v48  ;;  %v9713_v25 = vrot.slane %v3238_v6, %v8563_v48 }
 0x206   :  { %11644 = vst [vmem:[#allocation7_spill] sm:$0xff] %v9681_v53  ;;  %v9683_v44 = vpop.permute.xlu1 %1625  ;;  %v5999_v0 = vsel %vm5761_vm2, %v5748_v50, 0  ;;  %v6055_v18 = vsel %vm5761_vm2, %v5752_v45, 0  ;;  %v9721_v43 = vrot.slane %v3185_v26, %v8563_v48  ;;  %v9724_v56 = vrot.slane %v3186_v42, %v8563_v48 }
 0x207   :  { %11645 = vst [vmem:[#allocation13_spill] sm:$0xff] %v9683_v44  ;;  %7940 = vmatpush3.bf16.xpose.msra.mxu1 %v5999_v0  ;;  %7952 = vmatpush3.bf16.xpose.msra.mxu0 %v6055_v18  ;;  %v11648_v6 = vcombine.low %v9390_v11, %v9396_v16  ;;  %v3253_v50 = vcombine.low %v3220_v35, %v3236_v8 }
 0x208   :  { %7941 = vmatprep.subr.bf16.mxu1 %v11590_v61  ;;  %7953 = vmatprep.subr.bf16.mxu0 %v11590_v61  ;;  %v11649_v26 = vcombine.high %v9390_v11, %v9396_v16  ;;  %v11650_v0 = vcombine.low %v9399_v15, %v9402_v38  ;;  %v3254_v62 = vcombine.high %v3220_v35, %v3236_v8 }
 0x209   :  { %v9704_v32 = vpop.permute.xlu0 %1627  ;;  %v9731_v10 = vrot.slane %v11648_v6, %v8556_v41  ;;  %v5653_v45 = vcombine.low %v9710_v3, %v9713_v25  ;;  %v11652_v27 = vcombine.high %v9399_v15, %v9402_v38  ;;  %v11653_v11 = vcombine.low %v9410_v51, %v9424_v63 }
 0x20a   :  { %11646 = vst [vmem:[#allocation11_spill] sm:$0xff] %v9704_v32  ;;  %v9716_v5 = vpop.permute.xlu1 %1657  ;;  %v9747_v42 = vrot.slane %v11649_v26, %v8556_v41  ;;  %v9753_v18 = vrot.slane %v11650_v0, %v8556_v41  ;;  %v11654_v15 = vcombine.high %v9410_v51, %v9424_v63  ;;  %v11655_v35 = vcombine.low %v9438_v34, %v9448_v28 }
 0x20b   :  { %11647 = vst [vmem:[#allocation15_spill] sm:$0xff] %v9716_v5  ;;  %v9763_v52 = vrot.slane %v11652_v27, %v8556_v41  ;;  %v9769_v16 = vrot.slane %v11653_v11, %v8556_v41  ;;  %v9786_v27 = vrot.slane %v3253_v50, %v8563_v48  ;;  %v11656_v51 = vcombine.high %v9438_v34, %v9448_v28 }
 0x20c   :  { %v4121_v0 = vcombine.low %v9731_v10, %v9747_v42  ;;  %v9783_v38 = vrot.slane %v11654_v15, %v8556_v41  ;;  %v9796_v47 = vrot.slane %v11655_v35, %v8556_v41  ;;  %v11657_v15 = vcombine.low %v9468_v49, %v9471_v54 }
 0x20d   :  { %v9755_v6 = vpop.permute.xlu0 %1659  ;;  %v4137_v8 = vcombine.low %v9753_v18, %v9763_v52  ;;  %v9803_v63 = vrot.slane %v11656_v51, %v8556_v41  ;;  %v3268_v35 = vrot.slane %v3254_v62, %v8563_v48  ;;  %v11659_v28 = vcombine.high %v9468_v49, %v9471_v54 }
 0x20e   :  { %11651 = vst [vmem:[#allocation16_spill] sm:$0xff] %v9755_v6  ;;  %v9771_v26 = vpop.permute.xlu1 %1623  ;;  %v4129_v7 = vrot.slane %v4121_v0, %v8563_v48  ;;  %v4189_v50 = vcombine.low %v9769_v16, %v9783_v38  ;;  %v9811_v11 = vrot.slane %v11657_v15, %v8556_v41  ;;  %v9817_v0 = vrot.slane %v5653_v45, %v8556_v41 }
 0x20f   :  { %v4145_v34 = vrot.slane %v4137_v8, %v8563_v48  ;;  %v9824_v51 = vrot.slane %v11659_v28, %v8556_v41  ;;  %v4205_v1 = vcombine.low %v9796_v47, %v9803_v63  ;;  %v11661_v62 = vcombine.low %v9483_v57, %v9492_v2 }
 0x210   :  { %11658 = vst [vmem:[#allocation34_spill] sm:$0xff] %v9811_v11  ;;  %v4197_v15 = vrot.slane %v4189_v50, %v8563_v48  ;;  %v11663_v8 = vcombine.high %v9483_v57, %v9492_v2  ;;  %v11665_v53 = vcombine.low %v9504_v14, %v9507_v55  ;;  %v11667_v57 = vcombine.high %v9504_v14, %v9507_v55 }
 0x211   :  { %v9813_v46 = vpop.permute.xlu0 %1621  ;;  %11660 = vst [vmem:[#allocation35_spill] sm:$0xff] %v9824_v51  ;;  %v9835_v45 = vrot.slane %v11661_v62, %v8556_v41  ;;  %v4153_v54 = vcombine.low %v4129_v7, %v4145_v34  ;;  %v4154_v28 = vcombine.high %v4129_v7, %v4145_v34  ;;  %v3985_v50 = vcombine.low %v9811_v11, %v9824_v51 }
 0x212   :  { %v9826_v58 = vpop.permute.xlu1 %1653  ;;  %v9841_v49 = vrot.slane %v11663_v8, %v8556_v41  ;;  %v9849_v5 = vrot.slane %v11665_v53, %v8556_v41  ;;  %v4213_v62 = vrot.slane %v4205_v1, %v8563_v48  ;;  %v9858_v2 = vrot.slane %v11667_v57, %v8556_v41 }
 0x213   :  { %11662 = vst [vmem:[#allocation28_spill] sm:$0xff] %v9835_v45  ;;  %v11668_v7 = vcombine.low %v9511_v29, %v9514_v9  ;;  %v3993_v53 = vrot.slane %v3985_v50, %v8563_v48  ;;  %v11670_v1 = vcombine.high %v9511_v29, %v9514_v9  ;;  %v11672_v14 = vcombine.low %v9572_v19, %v9575_v22 }
 0x214   :  { %11664 = vst [vmem:[#allocation36_spill] sm:$0xff] %v9841_v49  ;;  %11666 = vst [vmem:[#allocation37_spill] sm:$0xff] %v9849_v5  ;;  %v4001_v44 = vcombine.low %v9835_v45, %v9841_v49  ;;  %v11673_v57 = vcombine.high %v9572_v19, %v9575_v22  ;;  %v4221_v50 = vcombine.low %v4197_v15, %v4213_v62 }
 0x215   :  { %v9864_v34 = vrot.slane %v11668_v7, %v8556_v41  ;;  %v9866_v8 = vpop.permute.xlu0 %1655  ;;  %v9873_v6 = vrot.slane %v11670_v1, %v8556_v41  ;;  %v9879_v55 = vrot.slane %v11672_v14, %v8556_v41  ;;  %v4222_v45 = vcombine.high %v4197_v15, %v4213_v62 }
 0x216   :  { %v9885_v7 = vrot.slane %v11673_v57, %v8556_v41  ;;  %v1618_v32 = vpop.permute.xlu1 %1617  ;;  %v4009_v49 = vrot.slane %v4001_v44, %v8563_v48  ;;  %v4053_v29 = vcombine.low %v9849_v5, %v9858_v2  ;;  %v5669_v9 = vcombine.low %v9786_v27, %v3268_v35 }
 0x217   :  { %11669 = vst [vmem:[#allocation38_spill] sm:$0xff] %v9864_v34  ;;  %11671 = vst [vmem:[#allocation39_spill] sm:$0xff] %v9873_v6  ;;  %1745 = vrot.lane.b32.xlu1 %v1618_v32, %s8262_s25  ;;  %v4069_v1 = vcombine.low %v9864_v34, %v9873_v6  ;;  %v11674_v19 = vcombine.low %v9614_v60, %v9646_v23  ;;  %v11675_v44 = vcombine.high %v9614_v60, %v9646_v23 }
 0x218   :  { %v7736_v62 = vcombine.high %v9786_v27, %v3268_v35  ;;  %v5747_v32 = vpack.c.bf16 %v4221_v50, %v4153_v54  ;;  %v5751_v14 = vpack.c.bf16 %v4222_v45, %v4154_v28  ;;  %v4061_v57 = vrot.slane %v4053_v29, %v8563_v48 }
 0x219   :  { %v9898_v22 = vrot.slane %v11674_v19, %v8556_v41  ;;  %v9904_v15 = vrot.slane %v11675_v44, %v8556_v41  ;;  %v1620_v11 = vpop.permute.xlu0 %1619  ;;  %v4017_v51 = vcombine.low %v3993_v53, %v4009_v49  ;;  %v4077_v34 = vrot.slane %v4069_v1, %v8563_v48 }
 0x21a   :  { %v4018_v6 = vcombine.high %v3993_v53, %v4009_v49  ;;  %v3849_v19 = vcombine.low %v9879_v55, %v9885_v7  ;;  %v1650_v5 = vpop.permute.xlu1 %1649  ;;  %1747 = vrot.lane.b32.xlu0 %v1620_v11, %s8262_s25  ;;  %v5996_v23 = vsel %vm5761_vm2, %v5747_v32, 0  ;;  %v6052_v60 = vsel %vm5761_vm2, %v5751_v14, 0 }
 0x21b   :  { %v11676_v27 = vcombine.low %v9655_v4, %v9668_v40  ;;  %v11677_v45 = vcombine.high %v9655_v4, %v9668_v40  ;;  %1777 = vrot.lane.b32.xlu1 %v1650_v5, %s8262_s25  ;;  %7942 = vmatpush3.bf16.xpose.msra.mxu1 %v5996_v23  ;;  %v4085_v11 = vcombine.low %v4061_v57, %v4077_v34 }
 0x21c   :  { %7954 = vmatpush3.bf16.xpose.msra.mxu0 %v6052_v60  ;;  %v4086_v54 = vcombine.high %v4061_v57, %v4077_v34  ;;  %v3865_v28 = vcombine.low %v9898_v22, %v9904_v15  ;;  %7943 = vmatprep.subr.bf16.mxu1 %v11590_v61  ;;  %v11678_v53 = vcombine.low %v9688_v39, %v9691_v37 }
 0x21d   :  { %v9918_v35 = vrot.slane %v11676_v27, %v8556_v41  ;;  %v9924_v49 = vrot.slane %v11677_v45, %v8556_v41  ;;  %7955 = vmatprep.subr.bf16.mxu0 %v11590_v61  ;;  %v11679_v40 = vcombine.high %v9688_v39, %v9691_v37  ;;  %v1652_v50 = vpop.permute.xlu0 %1651  ;;  %v11680_v29 = vcombine.high %v9710_v3, %v9713_v25 }
 0x21e   :  { %v9935_v4 = vrot.slane %v11678_v53, %v8556_v41  ;;  %v9952_v44 = vrot.slane %v5669_v9, %v8556_v41  ;;  %v9955_v32 = vrot.slane %v7736_v62, %v8556_v41  ;;  %v5746_v14 = vpack.c.bf16 %v4085_v11, %v4017_v51  ;;  %1779 = vrot.lane.b32.xlu0 %v1652_v50, %s8262_s25 }
 0x21f   :  { %v9941_v5 = vrot.slane %v11679_v40, %v8556_v41  ;;  %v3917_v34 = vcombine.low %v9918_v35, %v9924_v49  ;;  %v9949_v1 = vrot.slane %v11680_v29, %v8556_v41  ;;  %v5750_v39 = vpack.c.bf16 %v4086_v54, %v4018_v6  ;;  %1711 = vrot.lane.b32.xlu1 %v11609_v31, %s8262_s25  ;;  %v11685_v54 = vld [vmem:[#allocation33_spill] sm:$0xff]  ;;  %v11686_v40 = vld [vmem:[#allocation32_spill] sm:$0xff] }
 0x220   :  { %v11681_v3 = vcombine.low %v9699_v59, %v9702_v12  ;;  %v3857_v9 = vrot.slane %v3849_v19, %v8563_v48  ;;  %v3873_v51 = vrot.slane %v3865_v28, %v8563_v48  ;;  %v11682_v6 = vcombine.high %v9699_v59, %v9702_v12 }
 0x221   :  { %v3925_v37 = vrot.slane %v3917_v34, %v8563_v48  ;;  %v3933_v57 = vcombine.low %v9935_v4, %v9941_v5  ;;  %v11683_v31 = vcombine.low %v9721_v43, %v9724_v56  ;;  %v11684_v60 = vcombine.high %v9721_v43, %v9724_v56 }
 0x222   :  { %v9967_v25 = vrot.slane %v11681_v3, %v8556_v41  ;;  %v9975_v62 = vrot.slane %v11682_v6, %v8556_v41  ;;  %v5685_v45 = vcombine.low %v9817_v0, %v9949_v1  ;;  %v5701_v59 = vcombine.low %v9952_v44, %v9955_v32  ;;  %1719 = vrot.lane.b32.xlu0 %v11685_v54, %s8262_s25 }
 0x223   :  { %v9981_v23 = vrot.slane %v11683_v31, %v8556_v41  ;;  %v9987_v27 = vrot.slane %v11684_v60, %v8556_v41  ;;  %v3941_v19 = vrot.slane %v3933_v57, %v8563_v48  ;;  %v5993_v12 = vsel %vm5761_vm2, %v5746_v14, 0  ;;  %1717 = vrot.lane.b32.xlu1 %v11686_v40, %s8262_s25 }
 0x224   :  { %v4326_v11 = vcombine.high %v9605_v21, %v9611_v17  ;;  %v6049_v43 = vsel %vm5761_vm2, %v5750_v39, 0  ;;  %v4342_v53 = vcombine.high %v9622_v33, %v9635_v20  ;;  %7944 = vmatpush3.bf16.xpose.msra.mxu1 %v5993_v12  ;;  %v3881_v34 = vcombine.low %v3857_v9, %v3873_v51 }
 0x225   :  { %v3949_v56 = vcombine.low %v3925_v37, %v3941_v19  ;;  %v3950_v28 = vcombine.high %v3925_v37, %v3941_v19  ;;  %7956 = vmatpush3.bf16.xpose.msra.mxu0 %v6049_v43  ;;  %v4258_v50 = vcombine.high %v9569_v36, %v9587_v24  ;;  %v4274_v21 = vcombine.high %v9593_v13, %v9599_v30  ;;  %v11687_v36 = vld [vmem:[#allocation17_spill] sm:$0xff] }
 0x226   :  { %v5617_v17 = vcombine.low %v9967_v25, %v9975_v62  ;;  %7945 = vmatprep.subr.bf16.mxu1 %v11590_v61  ;;  %7957 = vmatprep.subr.bf16.mxu0 %v11590_v61  ;;  %v3882_v33 = vcombine.high %v3857_v9, %v3873_v51  ;;  %v5633_v20 = vcombine.low %v9981_v23, %v9987_v27  ;;  %v11688_v13 = vld [vmem:[#allocation5_spill] sm:$0xff] }
 0x227   :  { %v5745_v29 = vpack.c.bf16 %v3949_v56, %v3881_v34  ;;  %v4340_v14 = vrot.slane %v4326_v11, %v8563_v48  ;;  %v4356_v39 = vrot.slane %v4342_v53, %v8563_v48  ;;  %1743 = vrot.lane.b32.xlu0 %v11687_v36, %s8262_s25  ;;  %1741 = vrot.lane.b32.xlu1 %v11688_v13, %s8262_s25  ;;  %v11690_v34 = vld [vmem:[#allocation23_spill] sm:$0xff]  ;;  %v11696_v36 = vld [vmem:[#allocation28_spill] sm:$0xff] }
 0x228   :  { %v5749_v24 = vpack.c.bf16 %v3950_v28, %v3882_v33  ;;  %v5693_v30 = vrot.slane %v5685_v45, %v8563_v48  ;;  %v5709_v37 = vrot.slane %v5701_v59, %v8563_v48  ;;  %v4272_v57 = vrot.slane %v4258_v50, %v8563_v48  ;;  %v11692_v33 = vld [vmem:[#allocation38_spill] sm:$0xff] }
 0x229   :  { %v4288_v3 = vrot.slane %v4274_v21, %v8563_v48  ;;  %v5990_v9 = vsel %vm5761_vm2, %v5745_v29, 0  ;;  %v5625_v51 = vrot.slane %v5617_v17, %v8563_v48  ;;  %v5641_v6 = vrot.slane %v5633_v20, %v8563_v48  ;;  %v11691_v17 = vld [vmem:[#allocation39_spill] sm:$0xff] }
 0x22a   :  { %v4359_v31 = vcombine.low %v4340_v14, %v4356_v39  ;;  %v6046_v60 = vsel %vm5761_vm2, %v5749_v24, 0  ;;  %v4360_v19 = vcombine.high %v4340_v14, %v4356_v39  ;;  %v4190_v45 = vcombine.high %v9769_v16, %v9783_v38  ;;  %v11693_v29 = vld [vmem:[#allocation35_spill] sm:$0xff]  ;;  %v11694_v14 = vld [vmem:[#allocation34_spill] sm:$0xff] }
 0x22b   :  { %1751 = vrot.lane.b32.xlu0 %v9771_v26, %s8262_s25  ;;  %v4206_v59 = vcombine.high %v9796_v47, %v9803_v63  ;;  %1749 = vrot.lane.b32.xlu1 %v9813_v46, %s8262_s25  ;;  %v5717_v12 = vcombine.low %v5693_v30, %v5709_v37  ;;  %v5718_v11 = vcombine.high %v5693_v30, %v5709_v37  ;;  %v1646_v37 = vpop.permute.xlu0 %1645 }
 0x22c   :  { %7946 = vmatpush3.bf16.xpose.msra.mxu1 %v5990_v9  ;;  %v4291_v54 = vcombine.low %v4272_v57, %v4288_v3  ;;  %v4292_v26 = vcombine.high %v4272_v57, %v4288_v3  ;;  %v4122_v43 = vcombine.high %v9731_v10, %v9747_v42  ;;  %v4138_v16 = vcombine.high %v9753_v18, %v9763_v52  ;;  %v11689_v18 = vld [vmem:[#allocation37_spill] sm:$0xff] }
 0x22d   :  { %7958 = vmatpush3.bf16.xpose.msra.mxu0 %v6046_v60  ;;  %7963 = vmatprep.subr.bf16.mxu1 %v11590_v61  ;;  %v5649_v47 = vcombine.low %v5625_v51, %v5641_v6  ;;  %v5650_v46 = vcombine.high %v5625_v51, %v5641_v6  ;;  %v4204_v56 = vrot.slane %v4190_v45, %v8563_v48  ;;  %v11697_v6 = vld [vmem:[#allocation11_spill] sm:$0xff] }
 0x22e   :  { %7975 = vmatprep.subr.bf16.mxu0 %v11590_v61  ;;  %v5756_v38 = vpack.c.bf16 %v4359_v31, %v4291_v54  ;;  %v5760_v63 = vpack.c.bf16 %v4360_v19, %v4292_v26  ;;  %v4220_v28 = vrot.slane %v4206_v59, %v8563_v48  ;;  %v4136_v10 = vrot.slane %v4122_v43, %v8563_v48  ;;  %v11698_v59 = vld [vmem:[#allocation21_spill] sm:$0xff]  ;;  %v11699_v43 = vld [vmem:[#allocation16_spill] sm:$0xff] }
 0x22f   :  { %1783 = vrot.lane.b32.xlu0 %v9866_v8, %s8262_s25  ;;  %1781 = vrot.lane.b32.xlu1 %v9826_v58, %s8262_s25  ;;  %v5725_v53 = vpack.c.bf16 %v5717_v12, %v5649_v47  ;;  %v5726_v40 = vpack.c.bf16 %v5718_v11, %v5650_v46  ;;  %v4152_v52 = vrot.slane %v4138_v16, %v8563_v48  ;;  %v1648_v47 = vpop.permute.xlu1 %1647 }
 0x230   :  { %v6111_v42 = vsel %vm5761_vm2, %v5756_v38, 0  ;;  %v4054_v8 = vcombine.high %v11689_v18, %v9858_v2  ;;  %v6167_v58 = vsel %vm5761_vm2, %v5760_v63, 0  ;;  %v4223_v50 = vcombine.low %v4204_v56, %v4220_v28  ;;  %v11695_v2 = vld [vmem:[#allocation36_spill] sm:$0xff]  ;;  %v11703_v18 = vld [vmem:[#allocation19_spill] sm:$0xff] }
 0x231   :  { %v4224_v21 = vcombine.high %v4204_v56, %v4220_v28  ;;  %v4070_v20 = vcombine.high %v11692_v33, %v11691_v17  ;;  %v3986_v39 = vcombine.high %v11694_v14, %v11693_v29  ;;  %v4002_v24 = vcombine.high %v11696_v36, %v11695_v2  ;;  %v11701_v28 = vld [vmem:[#allocation31_spill] sm:$0xff]  ;;  %v11704_v17 = vld [vmem:[#allocation30_spill] sm:$0xff] }
 0x232   :  { %v4155_v13 = vcombine.low %v4136_v10, %v4152_v52  ;;  %v4156_v30 = vcombine.high %v4136_v10, %v4152_v52  ;;  %v4068_v57 = vrot.slane %v4054_v8, %v8563_v48  ;;  %v3918_v19 = vcombine.high %v9918_v35, %v9924_v49 }
 0x233   :  { %1723 = vrot.lane.b32.xlu0 %v11690_v34, %s8262_s25  ;;  %7948 = vmatmul.mubr.msk.bf16.vlgmr.msra.gmra.mxu1 %vm5761_vm2, %v5725_v53  ;;  %v4084_v51 = vrot.slane %v4070_v20, %v8563_v48  ;;  %v4000_v31 = vrot.slane %v3986_v39, %v8563_v48  ;;  %v4016_v60 = vrot.slane %v4002_v24, %v8563_v48  ;;  %v1680_v53 = vpop.permute.xlu0 %1679  ;;  %v11706_v39 = vld [vmem:[#allocation20_spill] sm:$0xff] }
 0x234   :  { %7960 = vmatmul.mubr.msk.bf16.vlgmr.msra.gmra.mxu0 %vm5761_vm2, %v5726_v40  ;;  %7964 = vmatpush3.bf16.xpose.msra.mxu1 %v6111_v42  ;;  %v5755_v3 = vpack.c.bf16 %v4223_v50, %v4155_v13  ;;  %v5759_v9 = vpack.c.bf16 %v4224_v21, %v4156_v30  ;;  %v3934_v45 = vcombine.high %v9935_v4, %v9941_v5  ;;  %v11700_v5 = vld [vmem:[#allocation13_spill] sm:$0xff]  ;;  %v11707_v13 = vld [vmem:[#allocation6_spill] sm:$0xff] }
 0x235   :  { %7976 = vmatpush3.bf16.xpose.msra.mxu0 %v6167_v58  ;;  %7965 = vmatprep.subr.bf16.mxu1 %v11590_v61  ;;  %v4087_v54 = vcombine.low %v4068_v57, %v4084_v51  ;;  %v4088_v26 = vcombine.high %v4068_v57, %v4084_v51  ;;  %v4019_v16 = vcombine.low %v4000_v31, %v4016_v60 }
 0x236   :  { %7977 = vmatprep.subr.bf16.mxu0 %v11590_v61  ;;  %1773 = vrot.lane.b32.xlu1 %v1646_v37, %s8262_s25  ;;  %v6108_v12 = vsel %vm5761_vm2, %v5755_v3, 0  ;;  %v6164_v11 = vsel %vm5761_vm2, %v5759_v9, 0  ;;  %v4020_v35 = vcombine.high %v4000_v31, %v4016_v60  ;;  %v3850_v49 = vcombine.high %v9879_v55, %v9885_v7  ;;  %v11702_v7 = vld [vmem:[#allocation15_spill] sm:$0xff]  ;;  %v11709_v60 = vld [vmem:[#allocation22_spill] sm:$0xff] }
 0x237   :  { %7971 = vmatprep.mubr.msk.bf16.mxu1 %vm8270_vm1, %v11590_v61  ;;  %7983 = vmatprep.mubr.msk.bf16.mxu0 %vm8270_vm1, %v11590_v61  ;;  %v3866_v4 = vcombine.high %v9898_v22, %v9904_v15  ;;  %v5754_v38 = vpack.c.bf16 %v4087_v54, %v4019_v16  ;;  %v3932_v63 = vrot.slane %v3918_v19, %v8563_v48  ;;  %v1678_v22 = vpop.permute.xlu1 %1677  ;;  %v1644_v21 = vpop.permute.xlu0 %1643  ;;  %v11714_v16 = vld [vmem:[#allocation29_spill] sm:$0xff] }
 0x238   :  { %1755 = vrot.lane.b32.xlu0 %v11697_v6, %s8262_s25  ;;  %v5758_v46 = vpack.c.bf16 %v4088_v26, %v4020_v35  ;;  %v3948_v56 = vrot.slane %v3934_v45, %v8563_v48  ;;  %v3864_v40 = vrot.slane %v3850_v49, %v8563_v48  ;;  %v5686_v8 = vcombine.high %v9817_v0, %v9949_v1  ;;  %v11708_v6 = vld [vmem:[#allocation24_spill] sm:$0xff]  ;;  %v11710_v45 = vld [vmem:[#allocation18_spill] sm:$0xff]  ;;  %v11716_v35 = vld [vmem:[#allocation9_spill] sm:$0xff] }
 0x239   :  { %v3880_v55 = vrot.slane %v3866_v4, %v8563_v48  ;;  %v6105_v15 = vsel %vm5761_vm2, %v5754_v38, 0  ;;  %v5702_v34 = vcombine.high %v9952_v44, %v9955_v32  ;;  %v5618_v33 = vcombine.high %v9967_v25, %v9975_v62  ;;  %v11705_v44 = vld [vmem:[#allocation7_spill] sm:$0xff]  ;;  %v11718_v4 = vld [vmem:[#allocation8_spill] sm:$0xff] }
 0x23a   :  { %1721 = vrot.lane.b32.xlu1 %v11698_v59, %s8262_s25  ;;  %v6161_v10 = vsel %vm5761_vm2, %v5758_v46, 0  ;;  %v3951_v52 = vcombine.low %v3932_v63, %v3948_v56  ;;  %v3952_v42 = vcombine.high %v3932_v63, %v3948_v56  ;;  %v5634_v0 = vcombine.high %v9981_v23, %v9987_v27  ;;  %v11711_v59 = vld [vmem:[#allocation14_spill] sm:$0xff] }
 0x23b   :  { %v3883_v58 = vcombine.low %v3864_v40, %v3880_v55  ;;  %v3884_v50 = vcombine.high %v3864_v40, %v3880_v55  ;;  %v1642_v32 = vpop.permute.xlu1 %1641  ;;  %v5700_v29 = vrot.slane %v5686_v8, %v8563_v48  ;;  %v5716_v14 = vrot.slane %v5702_v34, %v8563_v48  ;;  %v1676_v27 = vpop.permute.xlu0 %1675  ;;  %v11720_v63 = vld [vmem:[#allocation26_spill] sm:$0xff] }
 0x23c   :  { %1787 = vrot.lane.b32.xlu0 %v11699_v43, %s8262_s25  ;;  %7966 = vmatpush3.bf16.xpose.msra.mxu1 %v6108_v12  ;;  %v5632_v62 = vrot.slane %v5618_v33, %v8563_v48  ;;  %v5648_v23 = vrot.slane %v5634_v0, %v8563_v48  ;;  %v11713_v43 = vld [vmem:[#allocation27_spill] sm:$0xff]  ;;  %v11723_v55 = vld [vmem:[#allocation10_spill] sm:$0xff] }
 0x23d   :  { %7978 = vmatpush3.bf16.xpose.msra.mxu0 %v6164_v11  ;;  %7967 = vmatprep.subr.bf16.mxu1 %v11590_v61  ;;  %v5753_v1 = vpack.c.bf16 %v3951_v52, %v3883_v58  ;;  %v5757_v20 = vpack.c.bf16 %v3952_v42, %v3884_v50  ;;  %v5719_v36 = vcombine.low %v5700_v29, %v5716_v14  ;;  %v10199_v58 = vld [vmem:[%s11454_s4] sm:$0xff]   ;;  %v10204_v33 = vld [vmem:[%s11454_s4 + $0x8] sm:$0xff]  }
 0x23e   :  { %7979 = vmatprep.subr.bf16.mxu0 %v11590_v61  ;;  %1753 = vrot.lane.b32.xlu1 %v11700_v5, %s8262_s25  ;;  %v5720_v24 = vcombine.high %v5700_v29, %v5716_v14  ;;  %v5651_v37 = vcombine.low %v5632_v62, %v5648_v23  ;;  %v5652_v57 = vcombine.high %v5632_v62, %v5648_v23  ;;  %v11524_v23 = vunpack.c.l.bf16 %v10204_v33 }
 0x23f   :  { %v6102_v2 = vsel %vm5761_vm2, %v5753_v1, 0  ;;  %v6158_v25 = vsel %vm5761_vm2, %v5757_v20, 0  ;;  %v1674_v30 = vpop.permute.xlu1 %1673  ;;  %v1640_v51 = vpop.permute.xlu0 %1639  ;;  %v11525_v20 = vunpack.c.l.bf16 %v10199_v58 }
 0x240   :  { %1727 = vrot.lane.b32.xlu0 %v11701_v28, %s8262_s25  ;;  %v5727_v3 = vpack.c.bf16 %v5719_v36, %v5651_v37  ;;  %v5728_v9 = vpack.c.bf16 %v5720_v24, %v5652_v57  ;;  %v11721_v28 = vld [vmem:[#allocation25_spill] sm:$0xff] }
 0x242   :  { %1785 = vrot.lane.b32.xlu1 %v11702_v7, %s8262_s25 }
 0x243   :  { %v1638_v31 = vpop.permute.xlu1 %1637  ;;  %v1672_v19 = vpop.permute.xlu0 %1671 }
 0x244   :  { %1759 = vrot.lane.b32.xlu0 %v11703_v18, %s8262_s25  ;;  %7968 = vmatpush3.bf16.xpose.msra.mxu1 %v6105_v15 }
 0x245   :  { %7980 = vmatpush3.bf16.xpose.msra.mxu0 %v6161_v10  ;;  %7969 = vmatprep.subr.bf16.mxu1 %v11590_v61 }
 0x246   :  { %7981 = vmatprep.subr.bf16.mxu0 %v11590_v61  ;;  %1725 = vrot.lane.b32.xlu1 %v11704_v17, %s8262_s25 }
 0x247   :  { %v1670_v12 = vpop.permute.xlu1 %1669  ;;  %v10151_v11 = vpop.permute.xlu0 %1695 }
 0x248   :  { %1791 = vrot.lane.b32.xlu0 %v11705_v44, %s8262_s25 }
 0x24a   :  { %1757 = vrot.lane.b32.xlu1 %v11706_v39, %s8262_s25 }
 0x24b   :  { %v10155_v54 = vpop.permute.xlu1 %1693  ;;  %v10158_v26 = vpop.permute.xlu0 %1635 }
 0x24c   :  { %1775 = vrot.lane.b32.xlu0 %v1648_v47, %s8262_s25  ;;  %7970 = vmatpush3.bf16.xpose.msra.mxu1 %v6102_v2  ;;  %11712 = vst [vmem:[#allocation33_spill] sm:$0xff] %v10158_v26 }
 0x24d   :  { %7982 = vmatpush3.bf16.xpose.msra.mxu0 %v6158_v25  ;;  %7987 = vmatprep.subr.bf16.mxu1 %v11590_v61 }
 0x24e   :  { %8011 = vmatprep.subr.bf16.mxu0 %v11590_v61  ;;  %1789 = vrot.lane.b32.xlu1 %v11707_v13, %s8262_s25 }
 0x24f   :  { %v10164_v47 = vpop.permute.xlu1 %1633  ;;  %v10168_v49 = vpop.permute.xlu0 %1667 }
 0x250   :  { %1807 = vrot.lane.b32.xlu0 %v1680_v53, %s8262_s25  ;;  %11715 = vst [vmem:[#allocation32_spill] sm:$0xff] %v10164_v47  ;;  %11717 = vst [vmem:[#allocation17_spill] sm:$0xff] %v10168_v49  ;;  %v11722_v53 = vld [vmem:[#allocation12_spill] sm:$0xff] }
 0x252   :  { %1805 = vrot.lane.b32.xlu1 %v1678_v22, %s8262_s25 }
 0x253   :  { %7972 = vmatmul.mubr.msk.bf16.vlgmr.msra.gmra.mxu1 %vm5761_vm2, %v5727_v3  ;;  %v10173_v5 = vpop.permute.xlu1 %1665  ;;  %v10176_v38 = vpop.permute.xlu0 %1691 }
 0x254   :  { %7984 = vmatmul.mubr.msk.bf16.vlgmr.msra.gmra.mxu0 %vm5761_vm2, %v5728_v9  ;;  %1707 = vrot.lane.b32.xlu0 %v11708_v6, %s8262_s25  ;;  %11719 = vst [vmem:[#allocation5_spill] sm:$0xff] %v10173_v5 }
 0x255   :  { %7995 = vmatprep.mubr.msk.bf16.mxu1 %vm8270_vm1, %v11590_v61  ;;  %8019 = vmatprep.mubr.msk.bf16.mxu0 %vm8270_vm1, %v11590_v61 }
 0x256   :  { %1705 = vrot.lane.b32.xlu1 %v11709_v60, %s8262_s25 }
 0x257   :  { %v10180_v46 = vpop.permute.xlu1 %1689  ;;  %v10184_v56 = vpop.permute.xlu0 %1685 }
 0x258   :  { %1739 = vrot.lane.b32.xlu0 %v11710_v45, %s8262_s25 }
 0x25a   :  { %1737 = vrot.lane.b32.xlu1 %v11711_v59, %s8262_s25 }
 0x25b   :  { %v10190_v40 = vpop.permute.xlu1 %1687  ;;  %v1684_v7 = vpop.permute.xlu0 %1683 }
 0x25c   :  { %1771 = vrot.lane.b32.xlu0 %v1644_v21, %s8262_s25 }
 0x25e   :  { %1769 = vrot.lane.b32.xlu1 %v1642_v32, %s8262_s25 }
 0x25f   :  { %v1682_v22 = vpop.permute.xlu1 %1681  ;;  %v1716_v15 = vpop.permute.xlu0 %1715 }
 0x260   :  { %1803 = vrot.lane.b32.xlu0 %v1676_v27, %s8262_s25  ;;  %v11523_v27 = vunpack.c.h.bf16 %v10199_v58 }
 0x262   :  { %1801 = vrot.lane.b32.xlu1 %v1674_v30, %s8262_s25 }
 0x263   :  { %v1714_v10 = vpop.permute.xlu1 %1713  ;;  %v10194_v52 = vpop.permute.xlu0 %1709 }
 0x264   :  { %1701 = vrot.lane.b32.xlu0 %v11713_v43, %s8262_s25 }
 0x266   :  { %1703 = vrot.lane.b32.xlu1 %v11714_v16, %s8262_s25 }
 0x268   :  { %1735 = vrot.lane.b32.xlu0 %v11716_v35, %s8262_s25 }
 0x26a   :  { %1733 = vrot.lane.b32.xlu1 %v11718_v4, %s8262_s25 }
 0x26c   :  { %1767 = vrot.lane.b32.xlu0 %v1640_v51, %s8262_s25 }
 0x26e   :  { %1765 = vrot.lane.b32.xlu1 %v1638_v31, %s8262_s25 }
 0x270   :  { %1799 = vrot.lane.b32.xlu0 %v1672_v19, %s8262_s25 }
 0x272   :  { %1797 = vrot.lane.b32.xlu1 %v1670_v12, %s8262_s25 }
 0x274   :  { %1699 = vrot.lane.b32.xlu0 %v11720_v63, %s8262_s25 }
 0x276   :  { %1697 = vrot.lane.b32.xlu1 %v11721_v28, %s8262_s25 }
 0x278   :  { %1731 = vrot.lane.b32.xlu0 %v11722_v53, %s8262_s25 }
 0x27a   :  { %1729 = vrot.lane.b32.xlu1 %v11723_v55, %s8262_s25 }
 0x289   :  { %v1746_v42 = vpop.permute.xlu1 %1745 }
 0x28a   :  { %v1873_v18 = vcombine.low %v1682_v22, %v1746_v42  ;;  %v1874_v8 = vcombine.high %v1682_v22, %v1746_v42 }
 0x28c   :  { %v1748_v34 = vpop.permute.xlu0 %1747  ;;  %v1881_v44 = vrot.slane %v1873_v18, %v8556_v41  ;;  %v1888_v32 = vrot.slane %v1874_v8, %v8556_v41 }
 0x28d   :  { %v1778_v50 = vpop.permute.xlu1 %1777  ;;  %v1941_v0 = vcombine.low %v1684_v7, %v1748_v34  ;;  %v1942_v1 = vcombine.high %v1684_v7, %v1748_v34 }
 0x28e   :  { %v1889_v21 = vcombine.low %v1714_v10, %v1778_v50  ;;  %v1890_v17 = vcombine.high %v1714_v10, %v1778_v50 }
 0x28f   :  { %v1949_v37 = vrot.slane %v1941_v0, %v8556_v41  ;;  %v1956_v57 = vrot.slane %v1942_v1, %v8556_v41  ;;  %v10242_v1 = vld [vmem:[%s11454_s4 + $0x10] sm:$0xff]  }
 0x290   :  { %v1897_v29 = vrot.slane %v1889_v21, %v8556_v41  ;;  %v1904_v14 = vrot.slane %v1890_v17, %v8556_v41  ;;  %v1780_v39 = vpop.permute.xlu0 %1779  ;;  %11724 = vst [vmem:[#allocation37_spill] sm:$0xff] %v10242_v1 }
 0x291   :  { %v1957_v2 = vcombine.low %v1716_v15, %v1780_v39  ;;  %v1958_v25 = vcombine.high %v1716_v15, %v1780_v39  ;;  %v10211_v62 = vpop.permute.xlu1 %1711 }
 0x292   :  { %v1905_v36 = vcombine.low %v1881_v44, %v1897_v29  ;;  %v1906_v24 = vcombine.high %v1881_v44, %v1897_v29  ;;  %v1921_v13 = vcombine.low %v1888_v32, %v1904_v14  ;;  %v1922_v30 = vcombine.high %v1888_v32, %v1904_v14  ;;  %v10247_v44 = vld [vmem:[%s11454_s4 + $0x18] sm:$0xff]  }
 0x293   :  { %v1965_v3 = vrot.slane %v1957_v2, %v8556_v41  ;;  %v1972_v9 = vrot.slane %v1958_v25, %v8556_v41  ;;  %11725 = vst [vmem:[#allocation23_spill] sm:$0xff] %v10247_v44 }
 0x294   :  { %v1913_v51 = vrot.slane %v1905_v36, %v8563_v48  ;;  %v1920_v6 = vrot.slane %v1906_v24, %v8563_v48  ;;  %v1929_v31 = vrot.slane %v1921_v13, %v8563_v48  ;;  %v1936_v60 = vrot.slane %v1922_v30, %v8563_v48  ;;  %v10223_v19 = vpop.permute.xlu0 %1719 }
 0x295   :  { %v1973_v45 = vcombine.low %v1949_v37, %v1965_v3  ;;  %v1974_v59 = vcombine.high %v1949_v37, %v1965_v3  ;;  %v1989_v12 = vcombine.low %v1956_v57, %v1972_v9  ;;  %v1990_v43 = vcombine.high %v1956_v57, %v1972_v9  ;;  %v10225_v16 = vpop.permute.xlu1 %1717 }
 0x296   :  { %v4361_v35 = vcombine.low %v1913_v51, %v1920_v6  ;;  %v7697_v4 = vcombine.high %v1913_v51, %v1920_v6  ;;  %v4377_v63 = vcombine.low %v1929_v31, %v1936_v60  ;;  %v7698_v28 = vcombine.high %v1929_v31, %v1936_v60 }
 0x297   :  { %v1981_v53 = vrot.slane %v1973_v45, %v8563_v48  ;;  %v1988_v55 = vrot.slane %v1974_v59, %v8563_v48  ;;  %v1997_v7 = vrot.slane %v1989_v12, %v8563_v48  ;;  %v2004_v22 = vrot.slane %v1990_v43, %v8563_v48 }
 0x298   :  { %v4368_v15 = vrot.slane %v4361_v35, %v8556_v41  ;;  %v4376_v10 = vrot.slane %v7697_v4, %v8556_v41  ;;  %v4384_v42 = vrot.slane %v4377_v63, %v8556_v41  ;;  %v4392_v18 = vrot.slane %v7698_v28, %v8556_v41 }
 0x299   :  { %v10235_v8 = vpop.permute.xlu0 %1743  ;;  %v4429_v34 = vcombine.low %v1981_v53, %v1988_v55  ;;  %v7699_v50 = vcombine.high %v1981_v53, %v1988_v55  ;;  %v4445_v21 = vcombine.low %v1997_v7, %v2004_v22  ;;  %v7700_v17 = vcombine.high %v1997_v7, %v2004_v22  ;;  %v10237_v0 = vpop.permute.xlu1 %1741 }
 0x29a   :  { %v4393_v32 = vcombine.low %v4368_v15, %v4376_v10  ;;  %v4409_v29 = vcombine.low %v4384_v42, %v4392_v18  ;;  %v4394_v14 = vcombine.high %v4368_v15, %v4376_v10  ;;  %v4410_v39 = vcombine.high %v4384_v42, %v4392_v18  ;;  %v5811_v60 = vpop.f32.mrf.mxu1  ;;  %v5867_v35 = vpop.f32.mrf.mxu0 }
 0x29b   :  { %v10250_v2 = vrot.slane %v4429_v34, %v8556_v41  ;;  %v10253_v25 = vrot.slane %v7699_v50, %v8556_v41  ;;  %v10256_v36 = vrot.slane %v4445_v21, %v8556_v41  ;;  %v10259_v24 = vrot.slane %v7700_v17, %v8556_v41 }
 0x29c   :  { %v11522_v13 = vunpack.c.h.bf16 %v10204_v33  ;;  %v10272_v59 = vrot.slane %v4393_v32, %v8563_v48  ;;  %v10275_v12 = vrot.slane %v4409_v29, %v8563_v48  ;;  %v10278_v43 = vrot.slane %v4394_v14, %v8563_v48  ;;  %v7901_v55 = vpop.f32.mrf.mxu1  ;;  %v7913_v42 = vpop.f32.mrf.mxu0 }
 0x29d   :  { %v1752_v30 = vpop.permute.xlu0 %1751  ;;  %v1750_v51 = vpop.permute.xlu1 %1749  ;;  %v4461_v6 = vcombine.low %v10250_v2, %v10253_v25  ;;  %v4477_v31 = vcombine.low %v10256_v36, %v10259_v24  ;;  %v10287_v28 = vrot.slane %v4410_v39, %v8563_v48  ;;  %v10291_v53 = vadd.f32 %v11524_v23, %v5867_v35 }
 0x29e   :  { %v2077_v3 = vcombine.low %v10190_v40, %v1752_v30  ;;  %v2078_v9 = vcombine.high %v10190_v40, %v1752_v30  ;;  %v2009_v45 = vcombine.low %v10184_v56, %v1750_v51  ;;  %11726 = vst [vmem:[#allocation39_spill] sm:$0xff] %v10272_v59  ;;  %11727 = vst [vmem:[#allocation38_spill] sm:$0xff] %v10275_v12  ;;  %v5814_v17 = vpop.f32.mrf.mxu1 }
 0x29f   :  { %v10282_v40 = vadd.f32 %v11525_v20, %v5811_v60  ;;  %v2010_v63 = vcombine.high %v10184_v56, %v1750_v51  ;;  %11729 = vst [vmem:[#allocation34_spill] sm:$0xff] %v10287_v28  ;;  %11730 = vst [vmem:[#allocation36_spill] sm:$0xff] %v10291_v53  ;;  %v10295_v15 = vrot.slane %v4461_v6, %v8563_v48  ;;  %v6249_v32 = vsel %vm6242_vm3, %v10291_v53, -inf }
 0x2a0   :  { %v2085_v4 = vrot.slane %v2077_v3, %v8556_v41  ;;  %v2092_v7 = vrot.slane %v2078_v9, %v8556_v41  ;;  %v10298_v10 = vrot.slane %v4477_v31, %v8563_v48  ;;  %v4462_v21 = vcombine.high %v10250_v2, %v10253_v25  ;;  %6250 = vmax.xlane.f32.xlu0 %v6249_v32  ;;  %v7902_v51 = vpop.f32.mrf.mxu1 }
 0x2a1   :  { %11728 = vst [vmem:[#allocation35_spill] sm:$0xff] %v10282_v40  ;;  %v1784_v22 = vpop.permute.xlu0 %1783  ;;  %11731 = vst [vmem:[#allocation28_spill] sm:$0xff] %v10295_v15  ;;  %v6243_v56 = vsel %vm6242_vm3, %v10282_v40, -inf  ;;  %v1782_v50 = vpop.permute.xlu1 %1781  ;;  %v2017_v29 = vrot.slane %v2009_v45, %v8556_v41  ;;  %v10313_v30 = vadd.f32 %v11523_v27, %v5814_v17  ;;  %v2024_v3 = vrot.slane %v2010_v63, %v8556_v41 }
 0x2a2   :  { %11732 = vst [vmem:[#allocation11_spill] sm:$0xff] %v10298_v10  ;;  %v2093_v18 = vcombine.low %v10223_v19, %v1784_v22  ;;  %v2094_v34 = vcombine.high %v10223_v19, %v1784_v22  ;;  %6244 = vmax.xlane.f32.xlu1 %v6243_v56  ;;  %v2025_v14 = vcombine.low %v10225_v16, %v1782_v50  ;;  %v5870_v19 = vpop.f32.mrf.mxu0 }
 0x2a3   :  { %v2026_v39 = vcombine.high %v10225_v16, %v1782_v50  ;;  %11733 = vst [vmem:[#allocation21_spill] sm:$0xff] %v10313_v30  ;;  %v10320_v9 = vadd.f32 %v11522_v13, %v5870_v19  ;;  %v4493_v60 = vcombine.low %v10295_v15, %v10298_v10  ;;  %v6246_v35 = vsel %vm6242_vm3, %v10313_v30, -inf }
 0x2a4   :  { %v2101_v2 = vrot.slane %v2093_v18, %v8556_v41  ;;  %v2108_v25 = vrot.slane %v2094_v34, %v8556_v41  ;;  %v2033_v6 = vrot.slane %v2025_v14, %v8556_v41  ;;  %v7914_v45 = vpop.f32.mrf.mxu0  ;;  %6247 = vmax.xlane.f32.xlu0 %v6246_v35  ;;  %v10352_v23 = vrot.slane %v4462_v21, %v8563_v48 }
 0x2a5   :  { %11734 = vst [vmem:[#allocation16_spill] sm:$0xff] %v10320_v9  ;;  %v2040_v16 = vrot.slane %v2026_v39, %v8556_v41  ;;  %v1724_v31 = vpop.permute.xlu0 %1723  ;;  %v6252_v42 = vsel %vm6242_vm3, %v10320_v9, -inf  ;;  %v4425_v45 = vcombine.low %v10272_v59, %v10275_v12 }
 0x2a6   :  { %v2109_v63 = vcombine.low %v2085_v4, %v2101_v2  ;;  %v2110_v55 = vcombine.high %v2085_v4, %v2101_v2  ;;  %v2125_v22 = vcombine.low %v2092_v7, %v2108_v25  ;;  %v2126_v56 = vcombine.high %v2092_v7, %v2108_v25  ;;  %6253 = vmax.xlane.f32.xlu1 %v6252_v42 }
 0x2a7   :  { %v2041_v18 = vcombine.low %v2017_v29, %v2033_v6  ;;  %v2042_v34 = vcombine.high %v2017_v29, %v2033_v6  ;;  %v2057_v2 = vcombine.low %v2024_v3, %v2040_v16  ;;  %v2058_v25 = vcombine.high %v2024_v3, %v2040_v16 }
 0x2a8   :  { %v2117_v50 = vrot.slane %v2109_v63, %v8563_v48  ;;  %v2124_v17 = vrot.slane %v2110_v55, %v8563_v48  ;;  %v2133_v32 = vrot.slane %v2125_v22, %v8563_v48  ;;  %v2140_v39 = vrot.slane %v2126_v56, %v8563_v48  ;;  %v1774_v7 = vpop.permute.xlu1 %1773 }
 0x2a9   :  { %v2049_v4 = vrot.slane %v2041_v18, %v8563_v48  ;;  %v2056_v19 = vrot.slane %v2042_v34, %v8563_v48  ;;  %v2825_v29 = vcombine.low %v10194_v52, %v1774_v7  ;;  %v2065_v63 = vrot.slane %v2057_v2, %v8563_v48 }
 0x2aa   :  { %v1756_v51 = vpop.permute.xlu0 %1755  ;;  %v4565_v35 = vcombine.low %v2117_v50, %v2124_v17  ;;  %v7703_v42 = vcombine.high %v2117_v50, %v2124_v17  ;;  %v4581_v56 = vcombine.low %v2133_v32, %v2140_v39  ;;  %v2072_v18 = vrot.slane %v2058_v25, %v8563_v48 }
 0x2ab   :  { %v4497_v55 = vcombine.low %v2049_v4, %v2056_v19  ;;  %v7701_v3 = vcombine.high %v2049_v4, %v2056_v19  ;;  %v2826_v34 = vcombine.high %v10194_v52, %v1774_v7  ;;  %v10349_v27 = vpack.c.bf16 %v4493_v60, %v4425_v45 }
 0x2ac   :  { %v1722_v13 = vpop.permute.xlu1 %1721  ;;  %v7704_v2 = vcombine.high %v2133_v32, %v2140_v39  ;;  %v4513_v50 = vcombine.low %v2065_v63, %v2072_v18  ;;  %v7702_v17 = vcombine.high %v2065_v63, %v2072_v18  ;;  %v10358_v4 = vrot.slane %v4565_v35, %v8556_v41 }
 0x2ad   :  { %v10346_v16 = vrot.slane %v4497_v55, %v8556_v41  ;;  %v10355_v20 = vrot.slane %v7701_v3, %v8556_v41  ;;  %v2213_v19 = vcombine.low %v10176_v38, %v1756_v51  ;;  %v2214_v52 = vcombine.high %v10176_v38, %v1756_v51 }
 0x2ae   :  { %v1788_v22 = vpop.permute.xlu0 %1787  ;;  %v10363_v60 = vrot.slane %v7703_v42, %v8556_v41  ;;  %v10366_v21 = vrot.slane %v4581_v56, %v8556_v41  ;;  %v10369_v32 = vrot.slane %v4513_v50, %v8556_v41  ;;  %v10372_v25 = vrot.slane %v7702_v17, %v8556_v41 }
 0x2af   :  { %v2229_v7 = vcombine.low %v1724_v31, %v1788_v22  ;;  %v2230_v39 = vcombine.high %v1724_v31, %v1788_v22  ;;  %v2221_v45 = vrot.slane %v2213_v19, %v8556_v41  ;;  %v4529_v38 = vcombine.low %v10346_v16, %v10355_v20 }
 0x2b0   :  { %v1754_v63 = vpop.permute.xlu1 %1753  ;;  %v10379_v51 = vrot.slane %v7704_v2, %v8556_v41  ;;  %v10382_v55 = vrot.slane %v2825_v29, %v8556_v41  ;;  %v2228_v42 = vrot.slane %v2214_v52, %v8556_v41  ;;  %v10387_v56 = vrot.slane %v2826_v34, %v8556_v41 }
 0x2b1   :  { %v2237_v35 = vrot.slane %v2229_v7, %v8556_v41  ;;  %v2244_v31 = vrot.slane %v2230_v39, %v8556_v41  ;;  %v2145_v50 = vcombine.low %v10180_v46, %v1754_v63  ;;  %v2146_v2 = vcombine.high %v10180_v46, %v1754_v63 }
 0x2b2   :  { %v1728_v22 = vpop.permute.xlu0 %1727  ;;  %v4597_v29 = vcombine.low %v10358_v4, %v10363_v60  ;;  %v10396_v6 = vrot.slane %v4529_v38, %v8563_v48  ;;  %v4545_v34 = vcombine.low %v10369_v32, %v10372_v25 }
 0x2b3   :  { %v2245_v18 = vcombine.low %v2221_v45, %v2237_v35  ;;  %v2246_v3 = vcombine.high %v2221_v45, %v2237_v35  ;;  %v2261_v17 = vcombine.low %v2228_v42, %v2244_v31  ;;  %v2262_v19 = vcombine.high %v2228_v42, %v2244_v31 }
 0x2b4   :  { %v1786_v39 = vpop.permute.xlu1 %1785 }
 0x2b5   :  { %v2253_v7 = vrot.slane %v2245_v18, %v8563_v48  ;;  %v2260_v52 = vrot.slane %v2246_v3, %v8563_v48  ;;  %v2269_v45 = vrot.slane %v2261_v17, %v8563_v48  ;;  %v2276_v35 = vrot.slane %v2262_v19, %v8563_v48 }
 0x2b6   :  { %v2161_v42 = vcombine.low %v1722_v13, %v1786_v39  ;;  %v2162_v46 = vcombine.high %v1722_v13, %v1786_v39  ;;  %v1760_v63 = vpop.permute.xlu0 %1759  ;;  %v2153_v18 = vrot.slane %v2145_v50, %v8556_v41  ;;  %v2160_v13 = vrot.slane %v2146_v2, %v8556_v41 }
 0x2b7   :  { %v4701_v31 = vcombine.low %v2253_v7, %v2260_v52  ;;  %v7707_v14 = vcombine.high %v2253_v7, %v2260_v52  ;;  %v2349_v3 = vcombine.low %v10151_v11, %v1760_v63  ;;  %v4717_v57 = vcombine.low %v2269_v45, %v2276_v35 }
 0x2b8   :  { %v7708_v37 = vcombine.high %v2269_v45, %v2276_v35  ;;  %v2169_v38 = vrot.slane %v2161_v42, %v8556_v41  ;;  %v2176_v59 = vrot.slane %v2162_v46, %v8556_v41  ;;  %v2350_v19 = vcombine.high %v10151_v11, %v1760_v63  ;;  %v10414_v7 = vpop.permute.xlu1 %1725 }
 0x2b9   :  { %v10407_v12 = vrot.slane %v4701_v31, %v8556_v41  ;;  %v10410_v17 = vrot.slane %v7707_v14, %v8556_v41  ;;  %v10417_v50 = vrot.slane %v4717_v57, %v8556_v41  ;;  %v2357_v11 = vrot.slane %v2349_v3, %v8556_v41 }
 0x2ba   :  { %v10420_v52 = vrot.slane %v7708_v37, %v8556_v41  ;;  %v2177_v39 = vcombine.low %v2153_v18, %v2169_v38  ;;  %v2178_v45 = vcombine.high %v2153_v18, %v2169_v38  ;;  %v1792_v35 = vpop.permute.xlu0 %1791  ;;  %v2193_v42 = vcombine.low %v2160_v13, %v2176_v59  ;;  %v5979_v49 = vpop.f32.mrf.mxu0 }
 0x2bb   :  { %v2194_v46 = vcombine.high %v2160_v13, %v2176_v59  ;;  %v2365_v31 = vcombine.low %v1728_v22, %v1792_v35  ;;  %v2366_v14 = vcombine.high %v1728_v22, %v1792_v35  ;;  %v10426_v63 = vrot.slane %v4597_v29, %v8563_v48 }
 0x2bc   :  { %v2185_v15 = vrot.slane %v2177_v39, %v8563_v48  ;;  %v2192_v2 = vrot.slane %v2178_v45, %v8563_v48  ;;  %v10429_v57 = vrot.slane %v2193_v42, %v8563_v48  ;;  %v1758_v22 = vpop.permute.xlu1 %1757  ;;  %v2364_v13 = vrot.slane %v2350_v19, %v8556_v41  ;;  %v5923_v45 = vpop.f32.mrf.mxu1 }
 0x2bd   :  { %v10432_v37 = vrot.slane %v2194_v46, %v8563_v48  ;;  %v2373_v18 = vrot.slane %v2365_v31, %v8556_v41  ;;  %v2380_v59 = vrot.slane %v2366_v14, %v8556_v41  ;;  %v10440_v3 = vrot.slane %v4545_v34, %v8563_v48  ;;  %v7937_v31 = vpop.f32.mrf.mxu0 }
 0x2be   :  { %v4633_v38 = vcombine.low %v2185_v15, %v2192_v2  ;;  %v10437_v39 = vpop.permute.xlu0 %1775  ;;  %v7705_v14 = vcombine.high %v2185_v15, %v2192_v2  ;;  %v11735_v19 = vunpack.c.l.bf16 %v10242_v1  ;;  %v2281_v5 = vcombine.low %v10155_v54, %v1758_v22  ;;  %v7925_v46 = vpop.f32.mrf.mxu1 }
 0x2bf   :  { %v2381_v35 = vcombine.low %v2357_v11, %v2373_v18  ;;  %v2382_v42 = vcombine.high %v2357_v11, %v2373_v18  ;;  %v2397_v34 = vcombine.low %v2364_v13, %v2380_v59  ;;  %v4649_v29 = vcombine.low %v10429_v57, %v10432_v37 }
 0x2c0   :  { %v10450_v10 = vadd.f32 %v11735_v19, %v5923_v45  ;;  %v11737_v11 = vunpack.c.l.bf16 %v10247_v44  ;;  %v2282_v15 = vcombine.high %v10155_v54, %v1758_v22  ;;  %v1790_v2 = vpop.permute.xlu1 %1789  ;;  %v10462_v45 = vrot.slane %v4633_v38, %v8556_v41  ;;  %v5926_v46 = vpop.f32.mrf.mxu1 }
 0x2c1   :  { %v2389_v53 = vrot.slane %v2381_v35, %v8563_v48  ;;  %v2396_v9 = vrot.slane %v2382_v42, %v8563_v48  ;;  %v2398_v40 = vcombine.high %v2364_v13, %v2380_v59  ;;  %v2893_v22 = vcombine.low %v10211_v62, %v10437_v39 }
 0x2c2   :  { %11736 = vst [vmem:[#allocation13_spill] sm:$0xff] %v10450_v10  ;;  %v10457_v18 = vadd.f32 %v11737_v11, %v5979_v49  ;;  %v1808_v30 = vpop.permute.xlu0 %1807  ;;  %v10468_v49 = vrot.slane %v2397_v34, %v8563_v48  ;;  %v6255_v54 = vsel %vm6242_vm3, %v10450_v10, -inf  ;;  %v11739_v59 = vunpack.c.h.bf16 %v10242_v1  ;;  %v5982_v34 = vpop.f32.mrf.mxu0 }
 0x2c3   :  { %v10477_v38 = vrot.slane %v2398_v40, %v8563_v48  ;;  %v4837_v31 = vcombine.low %v2389_v53, %v2396_v9  ;;  %v7711_v42 = vcombine.high %v2389_v53, %v2396_v9  ;;  %v10484_v11 = vrot.slane %v7705_v14, %v8556_v41  ;;  %6256 = vmax.xlane.f32.xlu1 %v6255_v54 }
 0x2c4   :  { %11738 = vst [vmem:[#allocation31_spill] sm:$0xff] %v10457_v18  ;;  %v6261_v35 = vsel %vm6242_vm3, %v10457_v18, -inf  ;;  %v10481_v13 = vadd.f32 %v11739_v59, %v5926_v46  ;;  %v11741_v19 = vunpack.c.h.bf16 %v10247_v44  ;;  %v7926_v18 = vpop.f32.mrf.mxu1  ;;  %v2894_v40 = vcombine.high %v10211_v62, %v10437_v39  ;;  %v1806_v9 = vpop.permute.xlu1 %1805 }
 0x2c5   :  { %6262 = vmax.xlane.f32.xlu0 %v6261_v35  ;;  %v2297_v53 = vcombine.low %v10414_v7, %v1790_v2  ;;  %v10494_v46 = vrot.slane %v4649_v29, %v8556_v41  ;;  %v2289_v35 = vrot.slane %v2281_v5, %v8556_v41  ;;  %v2296_v14 = vrot.slane %v2282_v15, %v8556_v41  ;;  %v7938_v59 = vpop.f32.mrf.mxu0 }
 0x2c6   :  { %11740 = vst [vmem:[#allocation15_spill] sm:$0xff] %v10481_v13  ;;  %v10488_v10 = vadd.f32 %v11741_v19, %v5982_v34  ;;  %v2901_v26 = vrot.slane %v2893_v22, %v8556_v41  ;;  %v10500_v19 = vrot.slane %v4837_v31, %v8556_v41  ;;  %v2298_v18 = vcombine.high %v10414_v7, %v1790_v2  ;;  %v10506_v54 = vpop.permute.xlu0 %1707 }
 0x2c7   :  { %v2305_v62 = vrot.slane %v2297_v53, %v8556_v41  ;;  %v6258_v39 = vsel %vm6242_vm3, %v10481_v13, -inf  ;;  %v10509_v29 = vrot.slane %v7711_v42, %v8556_v41  ;;  %v4853_v5 = vcombine.low %v10468_v49, %v10477_v38 }
 0x2c8   :  { %11742 = vst [vmem:[#allocation19_spill] sm:$0xff] %v10488_v10  ;;  %v6264_v15 = vsel %vm6242_vm3, %v10488_v10, -inf  ;;  %v2909_v22 = vcombine.low %v10235_v8, %v1808_v30  ;;  %v2312_v7 = vrot.slane %v2298_v18, %v8556_v41  ;;  %v2910_v34 = vcombine.high %v10235_v8, %v1808_v30  ;;  %v10518_v53 = vpop.permute.xlu1 %1705 }
 0x2c9   :  { %6259 = vmax.xlane.f32.xlu0 %v6258_v39  ;;  %v2313_v2 = vcombine.low %v2289_v35, %v2305_v62  ;;  %v2314_v31 = vcombine.high %v2289_v35, %v2305_v62  ;;  %6265 = vmax.xlane.f32.xlu1 %v6264_v15  ;;  %v7712_v42 = vcombine.high %v10468_v49, %v10477_v38 }
 0x2ca   :  { %v2917_v59 = vrot.slane %v2909_v22, %v8556_v41  ;;  %v2841_v39 = vcombine.low %v10237_v0, %v1806_v9  ;;  %v2842_v10 = vcombine.high %v10237_v0, %v1806_v9  ;;  %v2329_v47 = vcombine.low %v2296_v14, %v2312_v7  ;;  %v10527_v62 = vpop.permute.xlu0 %1739 }
 0x2cb   :  { %v2321_v13 = vrot.slane %v2313_v2, %v8563_v48  ;;  %v2328_v18 = vrot.slane %v2314_v31, %v8563_v48  ;;  %v2330_v35 = vcombine.high %v2296_v14, %v2312_v7  ;;  %v2908_v8 = vrot.slane %v2894_v40, %v8556_v41 }
 0x2cc   :  { %v2924_v30 = vrot.slane %v2910_v34, %v8556_v41  ;;  %v2925_v15 = vcombine.low %v2901_v26, %v2917_v59  ;;  %v2926_v49 = vcombine.high %v2901_v26, %v2917_v59  ;;  %v2337_v38 = vrot.slane %v2329_v47, %v8563_v48  ;;  %v10534_v9 = vpop.permute.xlu1 %1737 }
 0x2cd   :  { %v2344_v22 = vrot.slane %v2330_v35, %v8563_v48  ;;  %v4769_v44 = vcombine.low %v2321_v13, %v2328_v18  ;;  %v2849_v0 = vrot.slane %v2841_v39, %v8556_v41  ;;  %v11743_v40 = vcombine.high %v10429_v57, %v10432_v37 }
 0x2ce   :  { %v2933_v2 = vrot.slane %v2925_v15, %v8563_v48  ;;  %v2940_v14 = vrot.slane %v2926_v49, %v8563_v48  ;;  %v2941_v7 = vcombine.low %v2908_v8, %v2924_v30  ;;  %v2942_v31 = vcombine.high %v2908_v8, %v2924_v30  ;;  %v1772_v39 = vpop.permute.xlu0 %1771 }
 0x2cf   :  { %v10542_v26 = vrot.slane %v11743_v40, %v8556_v41  ;;  %v10545_v47 = vrot.slane %v4853_v5, %v8556_v41  ;;  %v7709_v34 = vcombine.high %v2321_v13, %v2328_v18  ;;  %v4785_v59 = vcombine.low %v2337_v38, %v2344_v22 }
 0x2d0   :  { %v2949_v35 = vrot.slane %v2941_v7, %v8563_v48  ;;  %v2956_v15 = vrot.slane %v2942_v31, %v8563_v48  ;;  %v5381_v1 = vcombine.low %v2933_v2, %v2940_v14  ;;  %v7727_v49 = vcombine.high %v2933_v2, %v2940_v14  ;;  %v1770_v37 = vpop.permute.xlu1 %1769 }
 0x2d1   :  { %v10550_v8 = vrot.slane %v7712_v42, %v8556_v41  ;;  %v2856_v30 = vrot.slane %v2842_v10, %v8556_v41  ;;  %v2857_v57 = vcombine.low %v10382_v55, %v2849_v0  ;;  %v10557_v13 = vrot.slane %v4769_v44, %v8556_v41 }
 0x2d2   :  { %v7710_v18 = vcombine.high %v2337_v38, %v2344_v22  ;;  %v5397_v7 = vcombine.low %v2949_v35, %v2956_v15  ;;  %v7728_v40 = vcombine.high %v2949_v35, %v2956_v15  ;;  %v2858_v31 = vcombine.high %v10382_v55, %v2849_v0  ;;  %v1804_v14 = vpop.permute.xlu0 %1803 }
 0x2d3   :  { %v2865_v2 = vrot.slane %v2857_v57, %v8563_v48  ;;  %v2873_v42 = vcombine.low %v10387_v56, %v2856_v30  ;;  %v2874_v10 = vcombine.high %v10387_v56, %v2856_v30  ;;  %v10564_v28 = vrot.slane %v7709_v34, %v8556_v41 }
 0x2d4   :  { %v10567_v5 = vrot.slane %v4785_v59, %v8556_v41  ;;  %v2757_v44 = vcombine.low %v10506_v54, %v1772_v39  ;;  %v2758_v38 = vcombine.high %v10506_v54, %v1772_v39  ;;  %v2872_v22 = vrot.slane %v2858_v31, %v8563_v48  ;;  %v1802_v31 = vpop.permute.xlu1 %1801 }
 0x2d5   :  { %v10573_v55 = vrot.slane %v2873_v42, %v8563_v48  ;;  %v10576_v0 = vrot.slane %v2874_v10, %v8563_v48  ;;  %v2689_v56 = vcombine.low %v10518_v53, %v1770_v37  ;;  %v10580_v34 = vrot.slane %v7710_v18, %v8556_v41 }
 0x2d6   :  { %v10583_v59 = vrot.slane %v5381_v1, %v8556_v41  ;;  %v2690_v35 = vcombine.high %v10518_v53, %v1770_v37  ;;  %v2773_v54 = vcombine.low %v10527_v62, %v1804_v14  ;;  %v5313_v39 = vcombine.low %v2865_v2, %v2872_v22 }
 0x2d7   :  { %v7725_v15 = vcombine.high %v2865_v2, %v2872_v22  ;;  %v5329_v30 = vcombine.low %v10573_v55, %v10576_v0  ;;  %v7726_v57 = vcombine.high %v10573_v55, %v10576_v0  ;;  %v10592_v42 = vrot.slane %v7727_v49, %v8556_v41 }
 0x2d8   :  { %11744 = vst [vmem:[#allocation30_spill] sm:$0xff] %v10583_v59  ;;  %v2765_v18 = vrot.slane %v2757_v44, %v8556_v41  ;;  %v2774_v1 = vcombine.high %v10527_v62, %v1804_v14  ;;  %v2781_v53 = vrot.slane %v2773_v54, %v8556_v41  ;;  %v10598_v37 = vrot.slane %v5397_v7, %v8556_v41 }
 0x2d9   :  { %11745 = vst [vmem:[#allocation7_spill] sm:$0xff] %v10592_v42  ;;  %v10601_v2 = vrot.slane %v7728_v40, %v8556_v41  ;;  %v2772_v10 = vrot.slane %v2758_v38, %v8556_v41  ;;  %v2697_v22 = vrot.slane %v2689_v56, %v8556_v41  ;;  %v2705_v44 = vcombine.low %v10534_v9, %v1802_v31 }
 0x2da   :  { %11746 = vst [vmem:[#allocation20_spill] sm:$0xff] %v10598_v37  ;;  %v2788_v55 = vrot.slane %v2774_v1, %v8556_v41  ;;  %v2789_v49 = vcombine.low %v2765_v18, %v2781_v53  ;;  %v2790_v0 = vcombine.high %v2765_v18, %v2781_v53  ;;  %v2704_v62 = vrot.slane %v2690_v35, %v8556_v41 }
 0x2db   :  { %11747 = vst [vmem:[#allocation6_spill] sm:$0xff] %v10601_v2  ;;  %v2706_v14 = vcombine.high %v10534_v9, %v1802_v31  ;;  %v4801_v7 = vcombine.low %v10557_v13, %v10564_v28  ;;  %v4817_v40 = vcombine.low %v10567_v5, %v10580_v34  ;;  %v2713_v18 = vrot.slane %v2705_v44, %v8556_v41  ;;  %v10623_v31 = vpop.permute.xlu0 %1701 }
 0x2dc   :  { %v2797_v38 = vrot.slane %v2789_v49, %v8563_v48  ;;  %v2804_v56 = vrot.slane %v2790_v0, %v8563_v48  ;;  %v2805_v54 = vcombine.low %v2772_v10, %v2788_v55  ;;  %v2806_v1 = vcombine.high %v2772_v10, %v2788_v55 }
 0x2dd   :  { %v2720_v53 = vrot.slane %v2706_v14, %v8556_v41  ;;  %v10618_v35 = vrot.slane %v4801_v7, %v8563_v48  ;;  %v10621_v9 = vrot.slane %v4817_v40, %v8563_v48  ;;  %v2721_v55 = vcombine.low %v2697_v22, %v2713_v18 }
 0x2de   :  { %v10626_v37 = vrot.slane %v2805_v54, %v8563_v48  ;;  %v10629_v49 = vrot.slane %v2806_v1, %v8563_v48  ;;  %v5245_v0 = vcombine.low %v2797_v38, %v2804_v56  ;;  %v7723_v10 = vcombine.high %v2797_v38, %v2804_v56 }
 0x2df   :  { %v2722_v44 = vcombine.high %v2697_v22, %v2713_v18  ;;  %v2737_v2 = vcombine.low %v2704_v62, %v2720_v53  ;;  %v2738_v14 = vcombine.high %v2704_v62, %v2720_v53  ;;  %v10632_v7 = vrot.slane %v5313_v39, %v8556_v41  ;;  %v10676_v54 = vpop.permute.xlu0 %1735 }
 0x2e0   :  { %v10635_v40 = vrot.slane %v7725_v15, %v8556_v41  ;;  %v5261_v59 = vcombine.low %v10626_v37, %v10629_v49  ;;  %v10642_v1 = vrot.slane %v2721_v55, %v8563_v48  ;;  %v10653_v15 = vpop.permute.xlu1 %1703  ;;  %v10656_v62 = vrot.slane %v5329_v30, %v8556_v41 }
 0x2e1   :  { %11748 = vst [vmem:[#allocation24_spill] sm:$0xff] %v10632_v7  ;;  %v10645_v38 = vrot.slane %v2722_v44, %v8563_v48  ;;  %v10648_v22 = vrot.slane %v2737_v2, %v8563_v48  ;;  %v10651_v39 = vrot.slane %v2738_v14, %v8563_v48  ;;  %v4833_v56 = vcombine.low %v10618_v35, %v10621_v9 }
 0x2e2   :  { %11749 = vst [vmem:[#allocation22_spill] sm:$0xff] %v10656_v62  ;;  %v11750_v18 = vcombine.low %v10500_v19, %v10509_v29  ;;  %v4885_v2 = vcombine.low %v10545_v47, %v10550_v8  ;;  %v4802_v42 = vcombine.high %v10557_v13, %v10564_v28  ;;  %v4818_v55 = vcombine.high %v10567_v5, %v10580_v34 }
 0x2e3   :  { %v4870_v44 = vcombine.high %v10500_v19, %v10509_v29  ;;  %v10688_v62 = vrot.slane %v7726_v57, %v8556_v41  ;;  %v10691_v30 = vrot.slane %v5245_v0, %v8556_v41  ;;  %v10694_v14 = vrot.slane %v7723_v10, %v8556_v41 }
 0x2e4   :  { %v10664_v53 = vrot.slane %v11750_v18, %v8563_v48  ;;  %v10679_v18 = vrot.slane %v4885_v2, %v8563_v48  ;;  %v10697_v2 = vrot.slane %v5261_v59, %v8556_v41  ;;  %v10702_v5 = vrot.slane %v4802_v42, %v8563_v48  ;;  %v10722_v0 = vpop.permute.xlu1 %1733 }
 0x2e5   :  { %11751 = vst [vmem:[#allocation18_spill] sm:$0xff] %v10688_v62  ;;  %11752 = vst [vmem:[#allocation14_spill] sm:$0xff] %v10691_v30  ;;  %v10705_v19 = vrot.slane %v4818_v55, %v8563_v48  ;;  %v10708_v29 = vrot.slane %v4870_v44, %v8563_v48  ;;  %v4886_v13 = vcombine.high %v10545_v47, %v10550_v8  ;;  %v1768_v30 = vpop.permute.xlu0 %1767 }
 0x2e6   :  { %11753 = vst [vmem:[#allocation27_spill] sm:$0xff] %v10694_v14  ;;  %11754 = vst [vmem:[#allocation29_spill] sm:$0xff] %v10697_v2  ;;  %v4901_v28 = vcombine.low %v10664_v53, %v10679_v18  ;;  %v4665_v34 = vcombine.low %v10462_v45, %v10484_v11  ;;  %v4681_v59 = vcombine.low %v10494_v46, %v10542_v26 }
 0x2e7   :  { %v11755_v57 = vcombine.low %v10407_v12, %v10410_v17  ;;  %v4835_v55 = vcombine.low %v10702_v5, %v10705_v19  ;;  %v11756_v47 = vcombine.low %v10417_v50, %v10420_v52  ;;  %v4666_v44 = vcombine.high %v10462_v45, %v10484_v11 }
 0x2e8   :  { %v6430_v10 = vpack.c.bf16 %v4901_v28, %v4833_v56  ;;  %v10735_v2 = vrot.slane %v4886_v13, %v8563_v48  ;;  %v10741_v56 = vrot.slane %v4681_v59, %v8563_v48  ;;  %v4682_v28 = vcombine.high %v10494_v46, %v10542_v26  ;;  %v1766_v62 = vpop.permute.xlu1 %1765 }
 0x2e9   :  { %v10720_v42 = vrot.slane %v11755_v57, %v8563_v48  ;;  %v10730_v8 = vrot.slane %v11756_v47, %v8563_v48  ;;  %v10738_v57 = vrot.slane %v4665_v34, %v8563_v48  ;;  %v10748_v14 = vrot.slane %v4666_v44, %v8563_v48 }
 0x2ea   :  { %7988 = vmatpush3.bf16.msra.mxu1 %v6430_v10  ;;  %v4734_v45 = vcombine.high %v10407_v12, %v10410_v17  ;;  %v4750_v11 = vcombine.high %v10417_v50, %v10420_v52  ;;  %v4903_v13 = vcombine.low %v10708_v29, %v10735_v2  ;;  %v10760_v26 = vrot.slane %v4682_v28, %v8563_v48 }
 0x2eb   :  { %v4765_v47 = vcombine.low %v10720_v42, %v10730_v8  ;;  %7989 = vmatprep.subr.bf16.mxu1 %v11590_v61  ;;  %v4697_v46 = vcombine.low %v10738_v57, %v10741_v56  ;;  %v4561_v34 = vcombine.low %v10396_v6, %v10440_v3  ;;  %v11757_v17 = vcombine.low %v10366_v21, %v10379_v51 }
 0x2ec   :  { %v10765_v59 = vrot.slane %v4734_v45, %v8563_v48  ;;  %v10768_v12 = vrot.slane %v4750_v11, %v8563_v48  ;;  %v4530_v52 = vcombine.high %v10346_v16, %v10355_v20  ;;  %v6438_v10 = vpack.c.bf16 %v4903_v13, %v4835_v55  ;;  %v1800_v55 = vpop.permute.xlu0 %1799 }
 0x2ed   :  { %v10774_v50 = vrot.slane %v11757_v17, %v8563_v48  ;;  %v6429_v44 = vpack.c.bf16 %v4765_v47, %v4697_v46  ;;  %v4699_v28 = vcombine.low %v10748_v14, %v10760_v26  ;;  %v4546_v45 = vcombine.high %v10369_v32, %v10372_v25 }
 0x2ee   :  { %v4767_v11 = vcombine.low %v10765_v59, %v10768_v12  ;;  %v10787_v17 = vrot.slane %v4530_v52, %v8563_v48  ;;  %v4598_v20 = vcombine.high %v10358_v4, %v10363_v60  ;;  %8012 = vmatpush3.bf16.msra.mxu0 %v6438_v10  ;;  %v4614_v32 = vcombine.high %v10366_v21, %v10379_v51 }
 0x2ef   :  { %v4629_v7 = vcombine.low %v10426_v63, %v10774_v50  ;;  %7990 = vmatpush3.bf16.msra.mxu1 %v6429_v44  ;;  %v10792_v16 = vrot.slane %v4546_v45, %v8563_v48  ;;  %v2621_v25 = vcombine.low %v10653_v15, %v1768_v30  ;;  %8013 = vmatprep.subr.bf16.mxu0 %v11590_v61 }
 0x2f0   :  { %v6437_v47 = vpack.c.bf16 %v4767_v11, %v4699_v28  ;;  %7991 = vmatprep.subr.bf16.mxu1 %v11590_v61  ;;  %v10800_v46 = vrot.slane %v4598_v20, %v8563_v48  ;;  %v10805_v60 = vrot.slane %v4614_v32, %v8563_v48  ;;  %v2622_v21 = vcombine.high %v10653_v15, %v1768_v30  ;;  %v1798_v30 = vpop.permute.xlu1 %1797 }
 0x2f1   :  { %v6428_v13 = vpack.c.bf16 %v4629_v7, %v4561_v34  ;;  %v4563_v4 = vcombine.low %v10787_v17, %v10792_v16  ;;  %v2629_v51 = vrot.slane %v2621_v25, %v8556_v41  ;;  %v2553_v52 = vcombine.low %v10623_v31, %v1766_v62 }
 0x2f2   :  { %v2554_v10 = vcombine.high %v10623_v31, %v1766_v62  ;;  %v4478_v7 = vcombine.high %v10256_v36, %v10259_v24  ;;  %v2637_v34 = vcombine.low %v10676_v54, %v1800_v55  ;;  %8014 = vmatpush3.bf16.msra.mxu0 %v6437_v47  ;;  %v4631_v44 = vcombine.low %v10800_v46, %v10805_v60 }
 0x2f3   :  { %7992 = vmatpush3.bf16.msra.mxu1 %v6428_v13  ;;  %v2636_v28 = vrot.slane %v2622_v21, %v8556_v41  ;;  %v2638_v15 = vcombine.high %v10676_v54, %v1800_v55  ;;  %v6035_v45 = vpop.f32.mrf.mxu1  ;;  %8015 = vmatprep.subr.bf16.mxu0 %v11590_v61  ;;  %v2561_v36 = vrot.slane %v2553_v52, %v8556_v41  ;;  %v11758_v62 = vunpack.c.l.bf16 %v10199_v58 }
 0x2f4   :  { %v6091_v11 = vpop.f32.mrf.mxu0  ;;  %7993 = vmatprep.subr.bf16.mxu1 %v11590_v61  ;;  %v2568_v24 = vrot.slane %v2554_v10, %v8556_v41  ;;  %v10823_v31 = vrot.slane %v4478_v7, %v8563_v48  ;;  %v11760_v54 = vunpack.c.l.bf16 %v10204_v33  ;;  %v6436_v25 = vpack.c.bf16 %v4631_v44, %v4563_v4 }
 0x2f5   :  { %v10827_v20 = vadd.f32 %v11758_v62, %v6035_v45  ;;  %v2645_v55 = vrot.slane %v2637_v34, %v8556_v41  ;;  %v7949_v47 = vpop.f32.mrf.mxu1  ;;  %v2652_v52 = vrot.slane %v2638_v15, %v8556_v41  ;;  %v2569_v10 = vcombine.low %v10722_v0, %v1798_v30  ;;  %v11762_v15 = vld [vmem:[#allocation34_spill] sm:$0xff] }
 0x2f6   :  { %v10831_v32 = vadd.f32 %v11760_v54, %v6091_v11  ;;  %v7961_v13 = vpop.f32.mrf.mxu0  ;;  %v4495_v21 = vcombine.low %v10352_v23, %v10823_v31  ;;  %v2570_v7 = vcombine.high %v10722_v0, %v1798_v30  ;;  %8016 = vmatpush3.bf16.msra.mxu0 %v6436_v25  ;;  %v11763_v54 = vcombine.low %v10278_v43, %v11762_v15 }
 0x2f7   :  { %11759 = vst [vmem:[#allocation9_spill] sm:$0xff] %v10827_v20  ;;  %v6267_v11 = vsel %vm6242_vm3, %v10827_v20, -inf  ;;  %7994 = vmatpush3.bf16.msra.mxu1 %v10349_v27  ;;  %v2653_v4 = vcombine.low %v2629_v51, %v2645_v55  ;;  %v2654_v34 = vcombine.high %v2629_v51, %v2645_v55  ;;  %v6038_v44 = vpop.f32.mrf.mxu1  ;;  %v2669_v0 = vcombine.low %v2636_v28, %v2652_v52 }
 0x2f8   :  { %11761 = vst [vmem:[#allocation8_spill] sm:$0xff] %v10831_v32  ;;  %v6273_v45 = vsel %vm6242_vm3, %v10831_v32, -inf  ;;  %v6094_v62 = vpop.f32.mrf.mxu0  ;;  %6268 = vmax.xlane.f32.xlu1 %v6267_v11  ;;  %v6435_v47 = vpack.c.bf16 %v4495_v21, %v11763_v54  ;;  %v2670_v30 = vcombine.high %v2636_v28, %v2652_v52  ;;  %v11764_v13 = vunpack.c.h.bf16 %v10199_v58  ;;  %8017 = vmatprep.subr.bf16.mxu0 %v11590_v61 }
 0x2f9   :  { %6274 = vmax.xlane.f32.xlu0 %v6273_v45  ;;  %v11765_v25 = vunpack.c.h.bf16 %v10204_v33  ;;  %v2661_v27 = vrot.slane %v2653_v4, %v8563_v48  ;;  %v2668_v51 = vrot.slane %v2654_v34, %v8563_v48  ;;  %v7950_v55 = vpop.f32.mrf.mxu1  ;;  %v2677_v21 = vrot.slane %v2669_v0, %v8563_v48  ;;  %7999 = vmatprep.subr.bf16.mxu1 %v11590_v61 }
 0x2fa   :  { %v10849_v32 = vadd.f32 %v11764_v13, %v6038_v44  ;;  %v7962_v45 = vpop.f32.mrf.mxu0  ;;  %v2684_v28 = vrot.slane %v2670_v30, %v8563_v48  ;;  %v2577_v58 = vrot.slane %v2569_v10, %v8556_v41  ;;  %v2584_v52 = vrot.slane %v2570_v7, %v8556_v41  ;;  %8018 = vmatpush3.bf16.msra.mxu0 %v6435_v47 }
 0x2fb   :  { %v10853_v20 = vadd.f32 %v11765_v25, %v6094_v62  ;;  %v5109_v4 = vcombine.low %v2661_v27, %v2668_v51  ;;  %v7719_v34 = vcombine.high %v2661_v27, %v2668_v51  ;;  %v11766_v10 = vcombine.high %v10626_v37, %v10629_v49  ;;  %8035 = vmatprep.subr.bf16.mxu0 %v11590_v61 }
 0x2fc   :  { %v6270_v33 = vsel %vm6242_vm3, %v10849_v32, -inf  ;;  %v5125_v44 = vcombine.low %v2677_v21, %v2684_v28  ;;  %v7720_v62 = vcombine.high %v2677_v21, %v2684_v28  ;;  %v2585_v54 = vcombine.low %v2561_v36, %v2577_v58 }
 0x2fd   :  { %v6276_v11 = vsel %vm6242_vm3, %v10853_v20, -inf  ;;  %6271 = vmax.xlane.f32.xlu0 %v6270_v33  ;;  %v10871_v7 = vrot.slane %v11766_v10, %v8556_v41  ;;  %v11767_v0 = vcombine.low %v10642_v1, %v10645_v38  ;;  %v2586_v47 = vcombine.high %v2561_v36, %v2577_v58 }
 0x2fe   :  { %6277 = vmax.xlane.f32.xlu1 %v6276_v11  ;;  %v2601_v13 = vcombine.low %v2568_v24, %v2584_v52  ;;  %v11768_v25 = vcombine.high %v10642_v1, %v10645_v38  ;;  %v11769_v37 = vcombine.low %v10648_v22, %v10651_v39  ;;  %v2593_v51 = vrot.slane %v2585_v54, %v8563_v48 }
 0x2ff   :  { %v10877_v30 = vrot.slane %v11767_v0, %v8556_v41  ;;  %v2602_v55 = vcombine.high %v2568_v24, %v2584_v52  ;;  %v2600_v36 = vrot.slane %v2586_v47, %v8563_v48  ;;  %v4834_v21 = vcombine.high %v10618_v35, %v10621_v9 }
 0x300   :  { %v10884_v27 = vrot.slane %v11768_v25, %v8556_v41  ;;  %v10890_v49 = vrot.slane %v11769_v37, %v8556_v41  ;;  %v2609_v45 = vrot.slane %v2601_v13, %v8563_v48  ;;  %v4902_v1 = vcombine.high %v10664_v53, %v10679_v18 }
 0x301   :  { %v2616_v38 = vrot.slane %v2602_v55, %v8563_v48  ;;  %v4698_v28 = vcombine.high %v10738_v57, %v10741_v56  ;;  %v4766_v58 = vcombine.high %v10720_v42, %v10730_v8  ;;  %v4562_v24 = vcombine.high %v10396_v6, %v10440_v3 }
 0x302   :  { %v5041_v52 = vcombine.low %v2593_v51, %v2600_v36  ;;  %v7717_v33 = vcombine.high %v2593_v51, %v2600_v36  ;;  %v10906_v11 = vpack.c.bf16 %v4902_v1, %v4834_v21  ;;  %v4630_v35 = vcombine.high %v10426_v63, %v10774_v50 }
 0x303   :  { %v11770_v9 = vcombine.high %v10648_v22, %v10651_v39  ;;  %v5057_v18 = vcombine.low %v2609_v45, %v2616_v38  ;;  %v7718_v57 = vcombine.high %v2609_v45, %v2616_v38  ;;  %v10916_v56 = vpack.c.bf16 %v4766_v58, %v4698_v28  ;;  %v11778_v38 = vld [vmem:[#allocation27_spill] sm:$0xff]  ;;  %v11779_v28 = vld [vmem:[#allocation14_spill] sm:$0xff] }
 0x304   :  { %v10919_v42 = vrot.slane %v5109_v4, %v8556_v41  ;;  %v10922_v6 = vrot.slane %v7719_v34, %v8556_v41  ;;  %v10925_v3 = vrot.slane %v5125_v44, %v8556_v41  ;;  %v10927_v63 = vpack.c.bf16 %v4630_v35, %v4562_v24  ;;  %v11780_v24 = vld [vmem:[#allocation29_spill] sm:$0xff] }
 0x305   :  { %v10914_v53 = vrot.slane %v11770_v9, %v8556_v41  ;;  %v10930_v8 = vrot.slane %v7720_v62, %v8556_v41  ;;  %v10933_v22 = vrot.slane %v5041_v52, %v8556_v41  ;;  %v4836_v39 = vcombine.high %v10702_v5, %v10705_v19 }
 0x306   :  { %v4904_v50 = vcombine.high %v10708_v29, %v10735_v2  ;;  %v10940_v4 = vrot.slane %v7717_v33, %v8556_v41  ;;  %v4700_v34 = vcombine.high %v10748_v14, %v10760_v26  ;;  %v4768_v44 = vcombine.high %v10765_v59, %v10768_v12  ;;  %v11771_v14 = vld [vmem:[#allocation24_spill] sm:$0xff]  ;;  %v11772_v26 = vld [vmem:[#allocation18_spill] sm:$0xff] }
 0x307   :  { %v4564_v62 = vcombine.high %v10787_v17, %v10792_v16  ;;  %v10949_v54 = vrot.slane %v5057_v18, %v8556_v41  ;;  %v4632_v2 = vcombine.high %v10800_v46, %v10805_v60  ;;  %v4496_v5 = vcombine.high %v10352_v23, %v10823_v31  ;;  %v11773_v59 = vld [vmem:[#allocation22_spill] sm:$0xff]  ;;  %v11774_v17 = vld [vmem:[#allocation7_spill] sm:$0xff]  ;;  %v11777_v60 = vld [vmem:[#allocation20_spill] sm:$0xff] }
 0x308   :  { %v10951_v10 = vpack.c.bf16 %v4904_v50, %v4836_v39  ;;  %v10957_v19 = vpack.c.bf16 %v4768_v44, %v4700_v34  ;;  %v5345_v29 = vcombine.low %v11771_v14, %v10635_v40  ;;  %v5361_v12 = vcombine.low %v11773_v59, %v11772_v26  ;;  %v11775_v16 = vld [vmem:[#allocation30_spill] sm:$0xff] }
 0x309   :  { %v5413_v0 = vcombine.low %v11775_v16, %v11774_v17  ;;  %v10966_v47 = vrot.slane %v7718_v57, %v8556_v41  ;;  %v10968_v13 = vpack.c.bf16 %v4632_v2, %v4564_v62  ;;  %v11776_v46 = vld [vmem:[#allocation6_spill] sm:$0xff]  ;;  %v5209_v37 = vcombine.low %v10877_v30, %v10884_v27 }
 0x30a   :  { %v5429_v25 = vcombine.low %v11777_v60, %v11776_v46  ;;  %v5353_v51 = vrot.slane %v5345_v29, %v8563_v48  ;;  %v5369_v55 = vrot.slane %v5361_v12, %v8563_v48  ;;  %v5225_v45 = vcombine.low %v10890_v49, %v10914_v53 }
 0x30b   :  { %v5421_v36 = vrot.slane %v5413_v0, %v8563_v48  ;;  %v5217_v1 = vrot.slane %v5209_v37, %v8563_v48  ;;  %v5277_v58 = vcombine.low %v11779_v28, %v11778_v38  ;;  %v5293_v52 = vcombine.low %v11780_v24, %v10871_v7 }
 0x30c   :  { %v5437_v21 = vrot.slane %v5429_v25, %v8563_v48  ;;  %v5377_v33 = vcombine.low %v5353_v51, %v5369_v55  ;;  %v5233_v35 = vrot.slane %v5225_v45, %v8563_v48  ;;  %v5378_v9 = vcombine.high %v5353_v51, %v5369_v55 }
 0x30d   :  { %v5073_v18 = vcombine.low %v10933_v22, %v10940_v4  ;;  %v5285_v39 = vrot.slane %v5277_v58, %v8563_v48  ;;  %v5301_v50 = vrot.slane %v5293_v52, %v8563_v48  ;;  %v5089_v2 = vcombine.low %v10949_v54, %v10966_v47 }
 0x30e   :  { %v5445_v57 = vcombine.low %v5421_v36, %v5437_v21  ;;  %v5446_v34 = vcombine.high %v5421_v36, %v5437_v21  ;;  %v5241_v44 = vcombine.low %v5217_v1, %v5233_v35  ;;  %v5141_v29 = vcombine.low %v10919_v42, %v10922_v6 }
 0x30f   :  { %v5081_v62 = vrot.slane %v5073_v18, %v8563_v48  ;;  %v5309_v0 = vcombine.low %v5285_v39, %v5301_v50  ;;  %v5157_v37 = vcombine.low %v10925_v3, %v10930_v8  ;;  %v5097_v51 = vrot.slane %v5089_v2, %v8563_v48 }
 0x310   :  { %v10995_v12 = vpack.c.bf16 %v5445_v57, %v5377_v33  ;;  %v10997_v25 = vpack.c.bf16 %v5446_v34, %v5378_v9  ;;  %v5149_v55 = vrot.slane %v5141_v29, %v8563_v48  ;;  %v5242_v36 = vcombine.high %v5217_v1, %v5233_v35 }
 0x311   :  { %v5310_v45 = vcombine.high %v5285_v39, %v5301_v50  ;;  %v11003_v21 = vpack.c.bf16 %v5309_v0, %v5241_v44  ;;  %v5165_v58 = vrot.slane %v5157_v37, %v8563_v48  ;;  %v5346_v52 = vcombine.high %v11771_v14, %v10635_v40  ;;  %v11781_v0 = vld [vmem:[#allocation37_spill] sm:$0xff] }
 0x312   :  { %v5362_v33 = vcombine.high %v11773_v59, %v11772_v26  ;;  %v5105_v9 = vcombine.low %v5081_v62, %v5097_v51  ;;  %v5106_v57 = vcombine.high %v5081_v62, %v5097_v51  ;;  %v5414_v34 = vcombine.high %v11775_v16, %v11774_v17 }
 0x313   :  { %v11010_v18 = vpack.c.bf16 %v5310_v45, %v5242_v36  ;;  %v5173_v2 = vcombine.low %v5149_v55, %v5165_v58  ;;  %v5174_v1 = vcombine.high %v5149_v55, %v5165_v58  ;;  %v5360_v35 = vrot.slane %v5346_v52, %v8563_v48  ;;  %v6147_v59 = vpop.f32.mrf.mxu1  ;;  %v11783_v55 = vld [vmem:[#allocation23_spill] sm:$0xff] }
 0x314   :  { %v5376_v39 = vrot.slane %v5362_v33, %v8563_v48  ;;  %v5428_v50 = vrot.slane %v5414_v34, %v8563_v48  ;;  %v5430_v40 = vcombine.high %v11777_v60, %v11776_v46  ;;  %v5210_v14 = vcombine.high %v10877_v30, %v10884_v27  ;;  %v6203_v44 = vpop.f32.mrf.mxu0 }
 0x315   :  { %v5226_v26 = vcombine.high %v10890_v49, %v10914_v53  ;;  %v11023_v17 = vpack.c.bf16 %v5173_v2, %v5105_v9  ;;  %v11025_v16 = vpack.c.bf16 %v5174_v1, %v5106_v57  ;;  %v11782_v37 = vunpack.c.l.bf16 %v11781_v0  ;;  %v7973_v49 = vpop.f32.mrf.mxu1 }
 0x316   :  { %v5379_v62 = vcombine.low %v5360_v35, %v5376_v39  ;;  %v5380_v29 = vcombine.high %v5360_v35, %v5376_v39  ;;  %v11784_v46 = vunpack.c.l.bf16 %v11783_v55  ;;  %v5444_v30 = vrot.slane %v5430_v40, %v8563_v48  ;;  %v7985_v53 = vpop.f32.mrf.mxu0 }
 0x317   :  { %v11029_v51 = vadd.f32 %v11782_v37, %v6147_v59  ;;  %v5224_v27 = vrot.slane %v5210_v14, %v8563_v48  ;;  %v5240_v36 = vrot.slane %v5226_v26, %v8563_v48  ;;  %v5278_v45 = vcombine.high %v11779_v28, %v11778_v38  ;;  %v6150_v34 = vpop.f32.mrf.mxu1 }
 0x318   :  { %v11033_v60 = vadd.f32 %v11784_v46, %v6203_v44  ;;  %v5294_v58 = vcombine.high %v11780_v24, %v10871_v7  ;;  %v5074_v52 = vcombine.high %v10933_v22, %v10940_v4  ;;  %v5447_v9 = vcombine.low %v5428_v50, %v5444_v30  ;;  %v6206_v2 = vpop.f32.mrf.mxu0 }
 0x319   :  { %v6279_v33 = vsel %vm6242_vm3, %v11029_v51, -inf  ;;  %v5448_v57 = vcombine.high %v5428_v50, %v5444_v30  ;;  %v5243_v1 = vcombine.low %v5224_v27, %v5240_v36  ;;  %v5292_v35 = vrot.slane %v5278_v45, %v8563_v48  ;;  %v7974_v50 = vpop.f32.mrf.mxu1  ;;  %v11084_v45 = vpop.permute.xlu0 %1699 }
 0x31a   :  { %6280 = vmax.xlane.f32.xlu0 %v6279_v33  ;;  %v5308_v39 = vrot.slane %v5294_v58, %v8563_v48  ;;  %v5244_v38 = vcombine.high %v5224_v27, %v5240_v36  ;;  %v11785_v28 = vunpack.c.h.bf16 %v11781_v0  ;;  %v6285_v22 = vsel %vm6242_vm3, %v11033_v60, -inf  ;;  %v7986_v40 = vpop.f32.mrf.mxu0  ;;  %v11086_v58 = vpop.permute.xlu1 %1697 }
 0x31b   :  { %v11054_v4 = vpack.c.bf16 %v5447_v9, %v5379_v62  ;;  %v11056_v24 = vpack.c.bf16 %v5448_v57, %v5380_v29  ;;  %v5088_v59 = vrot.slane %v5074_v52, %v8563_v48  ;;  %v5090_v44 = vcombine.high %v10949_v54, %v10966_v47  ;;  %v11787_v57 = vld [vmem:[#allocation32_spill] sm:$0xff] }
 0x31c   :  { %v11050_v7 = vadd.f32 %v11785_v28, %v6150_v34  ;;  %v5311_v14 = vcombine.low %v5292_v35, %v5308_v39  ;;  %v5312_v26 = vcombine.high %v5292_v35, %v5308_v39  ;;  %v11786_v0 = vunpack.c.h.bf16 %v11783_v55  ;;  %v11788_v34 = vld [vmem:[#allocation33_spill] sm:$0xff]  ;;  %v11790_v28 = vld [vmem:[#allocation35_spill] sm:$0xff]  ;;  %v11791_v40 = vld [vmem:[#allocation16_spill] sm:$0xff] }
 0x31d   :  { %v5142_v62 = vcombine.high %v10919_v42, %v10922_v6  ;;  %v5158_v29 = vcombine.high %v10925_v3, %v10930_v8  ;;  %v5104_v54 = vrot.slane %v5090_v44, %v8563_v48  ;;  %v11088_v52 = vpop.permute.xlu0 %1731  ;;  %v11789_v35 = vld [vmem:[#allocation21_spill] sm:$0xff] }
 0x31e   :  { %v11063_v37 = vadd.f32 %v11786_v0, %v6206_v2  ;;  %v6282_v46 = vsel %vm6242_vm3, %v11050_v7, -inf  ;;  %6286 = vmax.xlane.f32.xlu0 %v6285_v22  ;;  %v11071_v30 = vpack.c.bf16 %v5311_v14, %v5243_v1  ;;  %v11073_v27 = vpack.c.bf16 %v5312_v26, %v5244_v38  ;;  %v11090_v9 = vpop.permute.xlu1 %1729 }
 0x31f   :  { %6283 = vmax.xlane.f32.xlu1 %v6282_v46  ;;  %v5156_v47 = vrot.slane %v5142_v62, %v8563_v48  ;;  %v5172_v55 = vrot.slane %v5158_v29, %v8563_v48  ;;  %v5107_v49 = vcombine.low %v5088_v59, %v5104_v54  ;;  %v5108_v53 = vcombine.high %v5088_v59, %v5104_v54  ;;  %v11792_v59 = vld [vmem:[#allocation36_spill] sm:$0xff] }
 0x320   :  { %v6288_v42 = vsel %vm6242_vm3, %v11063_v37, -inf }
 0x321   :  { %v5175_v6 = vcombine.low %v5156_v47, %v5172_v55  ;;  %v5176_v36 = vcombine.high %v5156_v47, %v5172_v55  ;;  %v11793_v47 = vld [vmem:[#allocation31_spill] sm:$0xff] }
 0x323   :  { %6289 = vmax.xlane.f32.xlu1 %v6288_v42  ;;  %v11080_v3 = vpack.c.bf16 %v5175_v6, %v5107_v49  ;;  %v11082_v8 = vpack.c.bf16 %v5176_v36, %v5108_v53  ;;  %v11794_v42 = vld [vmem:[#allocation13_spill] sm:$0xff] }
 0x329   :  { %v6251_v33 = vpop.xlane.xlu0 %6250 }
 0x32a   :  { %v6293_v44 = vsub.f32 %v11792_v59, %v6251_v33 }
 0x32b   :  { %v6245_v2 = vpop.xlane.xlu1 %6244 }
 0x32c   :  { %v6291_v22 = vsub.f32 %v11790_v28, %v6245_v2  ;;  %v6311_v46 = vmul.f32 1.442695, %v6293_v44 }
 0x32d   :  { %v6248_v1 = vpop.xlane.xlu0 %6247 }
 0x32e   :  { %v6292_v39 = vsub.f32 %v11789_v35, %v6248_v1  ;;  %v6307_v26 = vmul.f32 1.442695, %v6291_v22  ;;  %v11795_v1 = vld [vmem:[#allocation15_spill] sm:$0xff] }
 0x32f   :  { %v6254_v38 = vpop.xlane.xlu1 %6253 }
 0x330   :  { %v6309_v50 = vmul.f32 1.442695, %v6292_v39  ;;  %v6294_v14 = vsub.f32 %v11791_v40, %v6254_v38  ;;  %v11796_v38 = vld [vmem:[#allocation19_spill] sm:$0xff] }
 0x332   :  { %8176 = vpow2.f32 %v6309_v50  ;;  %v6313_v0 = vmul.f32 1.442695, %v6294_v14 }
 0x333   :  { %8178 = vpow2.f32 %v6307_v26 }
 0x334   :  { %1761 = vrot.lane.b32.xlu1 %v11787_v57, %s8262_s25  ;;  %1763 = vrot.lane.b32.xlu0 %v11788_v34, %s8262_s25  ;;  %8180 = vpow2.f32 %v6313_v0 }
 0x335   :  { %8182 = vpow2.f32 %v6311_v46 }
 0x33f   :  { %v11100_v62 = vpop.eup %8176 }
 0x340   :  { %v6342_v54 = vsel %vm6242_vm3, %v11100_v62, 0.0  ;;  %v11105_v53 = vpop.eup %8178 }
 0x341   :  { %v11108_v36 = vpop.eup %8180  ;;  %v6339_v2 = vsel %vm6242_vm3, %v11105_v53, 0.0 }
 0x342   :  { %v6348_v22 = vsel %vm6242_vm3, %v11108_v36, 0.0  ;;  %v11116_v40 = vpop.eup %8182 }
 0x343   :  { %v6345_v26 = vsel %vm6242_vm3, %v11116_v40, 0.0 }
 0x34c   :  { %v6257_v49 = vpop.xlane.xlu1 %6256 }
 0x34d   :  { %v6295_v6 = vsub.f32 %v11794_v42, %v6257_v49 }
 0x34e   :  { %v6263_v29 = vpop.xlane.xlu0 %6262 }
 0x34f   :  { %v6297_v55 = vsub.f32 %v11793_v47, %v6263_v29  ;;  %v6315_v57 = vmul.f32 1.442695, %v6295_v6  ;;  %v11797_v6 = vld [vmem:[#allocation8_spill] sm:$0xff] }
 0x351   :  { %v6319_v33 = vmul.f32 1.442695, %v6297_v55  ;;  %8184 = vpow2.f32 %v6315_v57  ;;  %v11798_v57 = vld [vmem:[#allocation9_spill] sm:$0xff] }
 0x352   :  { %v6260_v34 = vpop.xlane.xlu0 %6259  ;;  %v6266_v39 = vpop.xlane.xlu1 %6265 }
 0x353   :  { %6343 = vadd.xlane.f32.xlu0 %v6342_v54  ;;  %v6296_v35 = vsub.f32 %v11795_v1, %v6260_v34  ;;  %v6298_v28 = vsub.f32 %v11796_v38, %v6266_v39  ;;  %8186 = vpow2.f32 %v6319_v33 }
 0x355   :  { %v6317_v50 = vmul.f32 1.442695, %v6296_v35  ;;  %v6321_v14 = vmul.f32 1.442695, %v6298_v28 }
 0x357   :  { %6349 = vadd.xlane.f32.xlu0 %v6348_v22  ;;  %8188 = vpow2.f32 %v6317_v50 }
 0x358   :  { %6340 = vadd.xlane.f32.xlu1 %v6339_v2  ;;  %8190 = vpow2.f32 %v6321_v14 }
 0x35c   :  { %6346 = vadd.xlane.f32.xlu1 %v6345_v26 }
 0x35e   :  { %v11120_v59 = vpop.eup %8184 }
 0x35f   :  { %v6351_v44 = vsel %vm6242_vm3, %v11120_v59, 0.0 }
 0x360   :  { %v11124_v0 = vpop.eup %8186  ;;  %6352 = vadd.xlane.f32.xlu0 %v6351_v44 }
 0x361   :  { %v6357_v47 = vsel %vm6242_vm3, %v11124_v0, 0.0 }
 0x364   :  { %v11126_v46 = vpop.eup %8188  ;;  %6358 = vadd.xlane.f32.xlu0 %v6357_v47 }
 0x365   :  { %v6354_v29 = vsel %vm6242_vm3, %v11126_v46, 0.0  ;;  %v11130_v54 = vpop.eup %8190 }
 0x366   :  { %6355 = vadd.xlane.f32.xlu1 %v6354_v29  ;;  %v6360_v55 = vsel %vm6242_vm3, %v11130_v54, 0.0 }
 0x36a   :  { %6361 = vadd.xlane.f32.xlu1 %v6360_v55 }
 0x381   :  { %v6269_v42 = vpop.xlane.xlu1 %6268 }
 0x382   :  { %v6275_v49 = vpop.xlane.xlu0 %6274  ;;  %v6299_v34 = vsub.f32 %v11798_v57, %v6269_v42  ;;  %v11800_v42 = vld [vmem:[#allocation17_spill] sm:$0xff] }
 0x383   :  { %v6301_v33 = vsub.f32 %v11797_v6, %v6275_v49  ;;  %v11799_v49 = vld [vmem:[#allocation5_spill] sm:$0xff] }
 0x384   :  { %v6323_v1 = vmul.f32 1.442695, %v6299_v34 }
 0x385   :  { %v6327_v2 = vmul.f32 1.442695, %v6301_v33 }
 0x386   :  { %v6272_v35 = vpop.xlane.xlu0 %6271 }
 0x387   :  { %v6278_v39 = vpop.xlane.xlu1 %6277  ;;  %8192 = vpow2.f32 %v6327_v2  ;;  %v6300_v38 = vsub.f32 %v10849_v32, %v6272_v35 }
 0x388   :  { %v6302_v28 = vsub.f32 %v10853_v20, %v6278_v39  ;;  %8194 = vpow2.f32 %v6323_v1 }
 0x389   :  { %v6325_v22 = vmul.f32 1.442695, %v6300_v38 }
 0x38a   :  { %v6329_v50 = vmul.f32 1.442695, %v6302_v28 }
 0x38b   :  { %8196 = vpow2.f32 %v6325_v22 }
 0x38c   :  { %8198 = vpow2.f32 %v6329_v50 }
 0x394   :  { %v11140_v14 = vpop.eup %8192 }
 0x395   :  { %v11142_v26 = vpop.eup %8194  ;;  %v6369_v44 = vsel %vm6242_vm3, %v11140_v14, 0.0 }
 0x396   :  { %6370 = vadd.xlane.f32.xlu0 %v6369_v44  ;;  %v6363_v29 = vsel %vm6242_vm3, %v11142_v26, 0.0 }
 0x397   :  { %6364 = vadd.xlane.f32.xlu1 %v6363_v29 }
 0x398   :  { %v11148_v32 = vpop.eup %8196 }
 0x399   :  { %v11150_v20 = vpop.eup %8198  ;;  %v6366_v47 = vsel %vm6242_vm3, %v11148_v32, 0.0 }
 0x39a   :  { %6367 = vadd.xlane.f32.xlu0 %v6366_v47  ;;  %v6372_v55 = vsel %vm6242_vm3, %v11150_v20, 0.0 }
 0x39b   :  { %6373 = vadd.xlane.f32.xlu1 %v6372_v55 }
 0x3a3   :  { %v6281_v6 = vpop.xlane.xlu0 %6280 }
 0x3a4   :  { %v6303_v34 = vsub.f32 %v11029_v51, %v6281_v6 }
 0x3a6   :  { %v6331_v38 = vmul.f32 1.442695, %v6303_v34 }
 0x3a7   :  { %v6287_v2 = vpop.xlane.xlu0 %6286 }
 0x3a8   :  { %v6284_v33 = vpop.xlane.xlu1 %6283  ;;  %v6305_v35 = vsub.f32 %v11033_v60, %v6287_v2 }
 0x3a9   :  { %v6304_v57 = vsub.f32 %v11050_v7, %v6284_v33 }
 0x3aa   :  { %v6335_v22 = vmul.f32 1.442695, %v6305_v35 }
 0x3ab   :  { %v6333_v39 = vmul.f32 1.442695, %v6304_v57 }
 0x3ac   :  { %1793 = vrot.lane.b32.xlu1 %v11799_v49, %s8262_s25  ;;  %v6290_v1 = vpop.xlane.xlu1 %6289  ;;  %v11180_v49 = vpop.permute.xlu0 %1763 }
 0x3ad   :  { %v6306_v28 = vsub.f32 %v11063_v37, %v6290_v1  ;;  %8200 = vpow2.f32 %v6333_v39 }
 0x3ae   :  { %8202 = vpow2.f32 %v6331_v38 }
 0x3af   :  { %v6337_v50 = vmul.f32 1.442695, %v6306_v28  ;;  %8204 = vpow2.f32 %v6335_v22 }
 0x3b0   :  { %1795 = vrot.lane.b32.xlu0 %v11800_v42, %s8262_s25  ;;  %v11182_v42 = vpop.permute.xlu1 %1761 }
 0x3b1   :  { %8206 = vpow2.f32 %v6337_v50 }
 0x3ba   :  { %v11164_v44 = vpop.eup %8200 }
 0x3bb   :  { %v11166_v29 = vpop.eup %8202  ;;  %v6378_v51 = vsel %vm6242_vm3, %v11164_v44, 0.0 }
 0x3bc   :  { %v11170_v7 = vpop.eup %8204  ;;  %v6375_v60 = vsel %vm6242_vm3, %v11166_v29, 0.0 }
 0x3bd   :  { %v6381_v47 = vsel %vm6242_vm3, %v11170_v7, 0.0 }
 0x3be   :  { %v11174_v37 = vpop.eup %8206 }
 0x3bf   :  { %v6384_v55 = vsel %vm6242_vm3, %v11174_v37, 0.0 }
 0x3cf   :  { %6379 = vadd.xlane.f32.xlu0 %v6378_v51  ;;  %v11801_v51 = vld [vmem:[#allocation11_spill] sm:$0xff] }
 0x3d0   :  { %6376 = vadd.xlane.f32.xlu1 %v6375_v60  ;;  %v11802_v60 = vld [vmem:[#allocation28_spill] sm:$0xff] }
 0x3d3   :  { %6382 = vadd.xlane.f32.xlu0 %v6381_v47  ;;  %v4494_v47 = vcombine.high %v11802_v60, %v11801_v51 }
 0x3d4   :  { %6385 = vadd.xlane.f32.xlu1 %v6384_v55 }
 0x3dc   :  { %v6344_v6 = vpop.xlane.xlu0 %6343 }
 0x3dd   :  { %8208 = vrcp.f32 %v6344_v6 }
 0x3e0   :  { %v6350_v57 = vpop.xlane.xlu0 %6349 }
 0x3e1   :  { %v6341_v33 = vpop.xlane.xlu1 %6340 }
 0x3e2   :  { %8210 = vrcp.f32 %v6341_v33  ;;  %v11804_v33 = vld [vmem:[#allocation39_spill] sm:$0xff] }
 0x3e3   :  { %8212 = vrcp.f32 %v6350_v57 }
 0x3e5   :  { %v6347_v2 = vpop.xlane.xlu1 %6346 }
 0x3e6   :  { %8214 = vrcp.f32 %v6347_v2 }
 0x3e9   :  { %v6353_v35 = vpop.xlane.xlu0 %6352 }
 0x3ea   :  { %v8209_v34 = vpop.eup %8208  ;;  %8216 = vrcp.f32 %v6353_v35 }
 0x3eb   :  { %v6404_v1 = vmul.f32 %v8209_v34, %v11100_v62 }
 0x3ef   :  { %v8211_v39 = vpop.eup %8210  ;;  %v6356_v28 = vpop.xlane.xlu1 %6355 }
 0x3f0   :  { %v6403_v38 = vmul.f32 %v8211_v39, %v11105_v53  ;;  %8218 = vrcp.f32 %v6356_v28  ;;  %v8213_v50 = vpop.eup %8212  ;;  %v6359_v53 = vpop.xlane.xlu0 %6358 }
 0x3f2   :  { %v6419_v22 = vpack.c.bf16 %v6404_v1, %v6403_v38 }
 0x3f3   :  { %v6362_v62 = vpop.xlane.xlu1 %6361  ;;  %v8215_v55 = vpop.eup %8214 }
 0x3f4   :  { %7996 = vmatmul.mubr.msk.bf16.vlgmr.msra.gmra.mxu1 %vm6242_vm3, %v6419_v22  ;;  %8220 = vrcp.f32 %v6362_v62  ;;  %v6405_v1 = vmul.f32 %v8215_v55, %v11116_v40  ;;  %v4428_v40 = vcombine.high %v10278_v43, %v11762_v15  ;;  %v2485_v15 = vcombine.low %v11084_v45, %v11180_v49 }
 0x3f5   :  { %8000 = vmatpush3.bf16.msra.mxu1 %v10906_v11  ;;  %8007 = vmatprep.mubr.msk.bf16.mxu1 %vm8270_vm1, %v11590_v61  ;;  %v11803_v11 = vld [vmem:[#allocation38_spill] sm:$0xff]  ;;  %8222 = vrcp.f32 %v6359_v53 }
 0x3f6   :  { %8001 = vmatprep.subr.bf16.mxu1 %v11590_v61  ;;  %v4426_v57 = vcombine.high %v11804_v33, %v11803_v11 }
 0x3f7   :  { %v8217_v6 = vpop.eup %8216 }
 0x3f8   :  { %v6431_v2 = vpack.c.bf16 %v4494_v47, %v4426_v57  ;;  %v6407_v35 = vmul.f32 %v8217_v6, %v11120_v59 }
 0x3f9   :  { %8002 = vmatpush3.bf16.msra.mxu1 %v10916_v56  ;;  %v6406_v56 = vmul.f32 %v8213_v50, %v11108_v36 }
 0x3fa   :  { %8003 = vmatprep.subr.bf16.mxu1 %v11590_v61 }
 0x3fb   :  { %v6420_v38 = vpack.c.bf16 %v6406_v56, %v6405_v1 }
 0x3fd   :  { %8004 = vmatpush3.bf16.msra.mxu1 %v10927_v63  ;;  %v8219_v34 = vpop.eup %8218 }
 0x3fe   :  { %8005 = vmatprep.subr.bf16.mxu1 %v11590_v61  ;;  %v6408_v39 = vmul.f32 %v8219_v34, %v11126_v46 }
 0x400   :  { %v6421_v63 = vpack.c.bf16 %v6408_v39, %v6407_v35 }
 0x401   :  { %8006 = vmatpush3.bf16.msra.mxu1 %v6431_v2  ;;  %v8221_v36 = vpop.eup %8220 }
 0x402   :  { %8023 = vmatprep.subr.bf16.mxu1 %v11590_v61  ;;  %8020 = vmatmul.mubr.msk.bf16.vlgmr.msra.gmra.mxu0 %vm6242_vm3, %v6421_v63 }
 0x403   :  { %8036 = vmatpush3.bf16.msra.mxu0 %v10995_v12  ;;  %8043 = vmatprep.mubr.msk.bf16.mxu0 %vm8270_vm1, %v11590_v61  ;;  %v6410_v12 = vmul.f32 %v8221_v36, %v11130_v54 }
 0x404   :  { %8008 = vmatmul.mubr.msk.bf16.vlgmr.msra.gmra.mxu1 %vm6242_vm3, %v6420_v38  ;;  %8037 = vmatprep.subr.bf16.mxu0 %v11590_v61 }
 0x405   :  { %8024 = vmatpush3.bf16.msra.mxu1 %v10951_v10  ;;  %8031 = vmatprep.mubr.msk.bf16.mxu1 %vm8270_vm1, %v11590_v61  ;;  %v8223_v10 = vpop.eup %8222 }
 0x406   :  { %8025 = vmatprep.subr.bf16.mxu1 %v11590_v61 }
 0x407   :  { %8038 = vmatpush3.bf16.msra.mxu0 %v11003_v21  ;;  %v6439_v21 = vpack.c.bf16 %v4496_v5, %v4428_v40 }
 0x408   :  { %8039 = vmatprep.subr.bf16.mxu0 %v11590_v61 }
 0x409   :  { %8026 = vmatpush3.bf16.msra.mxu1 %v10957_v19  ;;  %v6409_v19 = vmul.f32 %v8223_v10, %v11124_v0 }
 0x40a   :  { %8027 = vmatprep.subr.bf16.mxu1 %v11590_v61 }
 0x40b   :  { %8040 = vmatpush3.bf16.msra.mxu0 %v11023_v17  ;;  %v6422_v59 = vpack.c.bf16 %v6410_v12, %v6409_v19 }
 0x40c   :  { %8041 = vmatprep.subr.bf16.mxu0 %v11590_v61 }
 0x40d   :  { %8028 = vmatpush3.bf16.msra.mxu1 %v10968_v13  ;;  %v2486_v13 = vcombine.high %v11084_v45, %v11180_v49 }
 0x40e   :  { %8029 = vmatprep.subr.bf16.mxu1 %v11590_v61 }
 0x40f   :  { %v2500_v28 = vrot.slane %v2486_v13, %v8556_v41 }
 0x411   :  { %8030 = vmatpush3.bf16.msra.mxu1 %v6439_v21 }
 0x412   :  { %8047 = vmatprep.subr.bf16.mxu1 %v11590_v61 }
 0x414   :  { %8032 = vmatmul.mubr.msk.bf16.vlgmr.msra.gmra.mxu1 %vm6242_vm3, %v6422_v59 }
 0x415   :  { %8048 = vmatpush3.bf16.msra.mxu1 %v10997_v25  ;;  %8055 = vmatprep.mubr.msk.bf16.mxu1 %vm8270_vm1, %v11590_v61  ;;  %v2417_v25 = vcombine.low %v11086_v58, %v11182_v42 }
 0x416   :  { %8049 = vmatprep.subr.bf16.mxu1 %v11590_v61 }
 0x417   :  { %v2425_v22 = vrot.slane %v2417_v25, %v8556_v41 }
 0x419   :  { %8050 = vmatpush3.bf16.msra.mxu1 %v11010_v18  ;;  %v2418_v18 = vcombine.high %v11086_v58, %v11182_v42 }
 0x41a   :  { %8051 = vmatprep.subr.bf16.mxu1 %v11590_v61 }
 0x41b   :  { %v2432_v62 = vrot.slane %v2418_v18, %v8556_v41 }
 0x41d   :  { %8052 = vmatpush3.bf16.msra.mxu1 %v11025_v16  ;;  %v2493_v16 = vrot.slane %v2485_v15, %v8556_v41 }
 0x41e   :  { %8053 = vmatprep.subr.bf16.mxu1 %v11590_v61 }
 0x41f   :  { %v6371_v23 = vpop.xlane.xlu0 %6370 }
 0x420   :  { %v6365_v43 = vpop.xlane.xlu1 %6364  ;;  %8224 = vrcp.f32 %v6371_v23 }
 0x423   :  { %v6368_v31 = vpop.xlane.xlu0 %6367 }
 0x424   :  { %v6374_v5 = vpop.xlane.xlu1 %6373  ;;  %8226 = vrcp.f32 %v6368_v31 }
 0x425   :  { %8228 = vrcp.f32 %v6374_v5 }
 0x426   :  { %8230 = vrcp.f32 %v6365_v43 }
 0x427   :  { %v1796_v17 = vpop.permute.xlu0 %1795 }
 0x428   :  { %v2501_v0 = vcombine.low %v11088_v52, %v1796_v17  ;;  %v2502_v46 = vcombine.high %v11088_v52, %v1796_v17  ;;  %v1794_v54 = vpop.permute.xlu1 %1793 }
 0x429   :  { %v2433_v45 = vcombine.low %v11090_v9, %v1794_v54  ;;  %v2434_v49 = vcombine.high %v11090_v9, %v1794_v54 }
 0x42a   :  { %v2509_v58 = vrot.slane %v2501_v0, %v8556_v41  ;;  %v2516_v42 = vrot.slane %v2502_v46, %v8556_v41 }
 0x42b   :  { %v2441_v52 = vrot.slane %v2433_v45, %v8556_v41  ;;  %v2448_v50 = vrot.slane %v2434_v49, %v8556_v41 }
 0x42c   :  { %v2517_v53 = vcombine.low %v2493_v16, %v2509_v58  ;;  %v2518_v51 = vcombine.high %v2493_v16, %v2509_v58  ;;  %v2533_v60 = vcombine.low %v2500_v28, %v2516_v42  ;;  %v2534_v47 = vcombine.high %v2500_v28, %v2516_v42 }
 0x42d   :  { %v2449_v55 = vcombine.low %v2425_v22, %v2441_v52  ;;  %v2450_v9 = vcombine.high %v2425_v22, %v2441_v52  ;;  %v2465_v6 = vcombine.low %v2432_v62, %v2448_v50  ;;  %v2466_v11 = vcombine.high %v2432_v62, %v2448_v50  ;;  %v8225_v16 = vpop.eup %8224 }
 0x42e   :  { %v2525_v33 = vrot.slane %v2517_v53, %v8563_v48  ;;  %v2532_v57 = vrot.slane %v2518_v51, %v8563_v48  ;;  %v2541_v56 = vrot.slane %v2533_v60, %v8563_v48  ;;  %v2548_v34 = vrot.slane %v2534_v47, %v8563_v48 }
 0x42f   :  { %v2457_v2 = vrot.slane %v2449_v55, %v8563_v48  ;;  %v2464_v1 = vrot.slane %v2450_v9, %v8563_v48  ;;  %v2473_v35 = vrot.slane %v2465_v6, %v8563_v48  ;;  %v2480_v39 = vrot.slane %v2466_v11, %v8563_v48 }
 0x430   :  { %v4973_v38 = vcombine.low %v2525_v33, %v2532_v57  ;;  %v7715_v63 = vcombine.high %v2525_v33, %v2532_v57  ;;  %v4989_v36 = vcombine.low %v2541_v56, %v2548_v34  ;;  %v7716_v10 = vcombine.high %v2541_v56, %v2548_v34 }
 0x431   :  { %v4905_v12 = vcombine.low %v2457_v2, %v2464_v1  ;;  %v7713_v40 = vcombine.high %v2457_v2, %v2464_v1  ;;  %v4921_v19 = vcombine.low %v2473_v35, %v2480_v39  ;;  %v7714_v21 = vcombine.high %v2473_v35, %v2480_v39  ;;  %v8227_v54 = vpop.eup %8226 }
 0x432   :  { %v4980_v59 = vrot.slane %v4973_v38, %v8556_v41  ;;  %v4988_v23 = vrot.slane %v7715_v63, %v8556_v41  ;;  %v4996_v43 = vrot.slane %v4989_v36, %v8556_v41  ;;  %v5004_v31 = vrot.slane %v7716_v10, %v8556_v41  ;;  %v8229_v22 = vpop.eup %8228 }
 0x433   :  { %v4912_v15 = vrot.slane %v4905_v12, %v8556_v41  ;;  %v4920_v5 = vrot.slane %v7713_v40, %v8556_v41  ;;  %v4928_v13 = vrot.slane %v4921_v19, %v8556_v41  ;;  %v4936_v25 = vrot.slane %v7714_v21, %v8556_v41  ;;  %v8231_v52 = vpop.eup %8230 }
 0x434   :  { %v5005_v18 = vcombine.low %v4980_v59, %v4988_v23  ;;  %v5021_v17 = vcombine.low %v4996_v43, %v5004_v31  ;;  %v5006_v60 = vcombine.high %v4980_v59, %v4988_v23  ;;  %v5022_v6 = vcombine.high %v4996_v43, %v5004_v31 }
 0x435   :  { %v4937_v0 = vcombine.low %v4912_v15, %v4920_v5  ;;  %v4953_v46 = vcombine.low %v4928_v13, %v4936_v25  ;;  %v4938_v49 = vcombine.high %v4912_v15, %v4920_v5  ;;  %v4954_v62 = vcombine.high %v4928_v13, %v4936_v25 }
 0x436   :  { %v5013_v28 = vrot.slane %v5005_v18, %v8563_v48  ;;  %v5029_v45 = vrot.slane %v5021_v17, %v8563_v48  ;;  %v6412_v11 = vmul.f32 %v8227_v54, %v11148_v32  ;;  %v6414_v33 = vmul.f32 %v8229_v22, %v11150_v20 }
 0x437   :  { %v4945_v58 = vrot.slane %v4937_v0, %v8563_v48  ;;  %v4961_v42 = vrot.slane %v4953_v46, %v8563_v48  ;;  %v4952_v51 = vrot.slane %v4938_v49, %v8563_v48  ;;  %v4968_v9 = vrot.slane %v4954_v62, %v8563_v48 }
 0x438   :  { %v5037_v50 = vcombine.low %v5013_v28, %v5029_v45  ;;  %v5038_v53 = vcombine.high %v5013_v28, %v5029_v45  ;;  %v5020_v57 = vrot.slane %v5006_v60, %v8563_v48  ;;  %v5036_v1 = vrot.slane %v5022_v6, %v8563_v48 }
 0x439   :  { %v4969_v47 = vcombine.low %v4945_v58, %v4961_v42  ;;  %v4970_v55 = vcombine.high %v4945_v58, %v4961_v42  ;;  %v4971_v2 = vcombine.low %v4952_v51, %v4968_v9  ;;  %v6411_v35 = vmul.f32 %v8231_v52, %v11142_v26 }
 0x43a   :  { %v6413_v39 = vmul.f32 %v8225_v16, %v11140_v14  ;;  %v4972_v38 = vcombine.high %v4952_v51, %v4968_v9  ;;  %v5039_v63 = vcombine.low %v5020_v57, %v5036_v1  ;;  %v5040_v36 = vcombine.high %v5020_v57, %v5036_v1 }
 0x43b   :  { %v6443_v56 = vpack.c.bf16 %v5037_v50, %v4969_v47  ;;  %v6447_v34 = vpack.c.bf16 %v5038_v53, %v4970_v55  ;;  %v6423_v10 = vpack.c.bf16 %v6412_v11, %v6411_v35 }
 0x43c   :  { %v6424_v32 = vpack.c.bf16 %v6414_v33, %v6413_v39  ;;  %v6451_v20 = vpack.c.bf16 %v5039_v63, %v4971_v2  ;;  %v6455_v12 = vpack.c.bf16 %v5040_v36, %v4972_v38 }
 0x43d   :  { %8042 = vmatpush3.bf16.msra.mxu0 %v6443_v56  ;;  %8054 = vmatpush3.bf16.msra.mxu1 %v6447_v34 }
 0x43e   :  { %8059 = vmatprep.subr.bf16.mxu0 %v11590_v61  ;;  %8071 = vmatprep.subr.bf16.mxu1 %v11590_v61 }
 0x440   :  { %8044 = vmatmul.mubr.msk.bf16.vlgmr.msra.gmra.mxu0 %vm6242_vm3, %v6423_v10  ;;  %8056 = vmatmul.mubr.msk.bf16.vlgmr.msra.gmra.mxu1 %vm6242_vm3, %v6424_v32 }
 0x441   :  { %8060 = vmatpush3.bf16.msra.mxu0 %v11054_v4  ;;  %8072 = vmatpush3.bf16.msra.mxu1 %v11056_v24 }
 0x442   :  { %8061 = vmatprep.subr.bf16.mxu0 %v11590_v61  ;;  %8073 = vmatprep.subr.bf16.mxu1 %v11590_v61 }
 0x443   :  { %8067 = vmatprep.mubr.msk.bf16.mxu0 %vm8270_vm1, %v11590_v61  ;;  %8079 = vmatprep.mubr.msk.bf16.mxu1 %vm8270_vm1, %v11590_v61 }
 0x445   :  { %8062 = vmatpush3.bf16.msra.mxu0 %v11071_v30  ;;  %8074 = vmatpush3.bf16.msra.mxu1 %v11073_v27 }
 0x446   :  { %8063 = vmatprep.subr.bf16.mxu0 %v11590_v61  ;;  %8075 = vmatprep.subr.bf16.mxu1 %v11590_v61 }
 0x449   :  { %8064 = vmatpush3.bf16.msra.mxu0 %v11080_v3  ;;  %8076 = vmatpush3.bf16.msra.mxu1 %v11082_v8 }
 0x44a   :  { %8065 = vmatprep.subr.bf16.mxu0 %v11590_v61  ;;  %8077 = vmatprep.subr.bf16.mxu1 %v11590_v61 }
 0x44d   :  { %8066 = vmatpush3.bf16.msra.mxu0 %v6451_v20  ;;  %8078 = vmatpush3.bf16.msra.mxu1 %v6455_v12 }
 0x458   :  { %v6380_v4 = vpop.xlane.xlu0 %6379 }
 0x459   :  { %8232 = vrcp.f32 %v6380_v4  ;;  %v6377_v24 = vpop.xlane.xlu1 %6376 }
 0x45a   :  { %8234 = vrcp.f32 %v6377_v24 }
 0x45c   :  { %v6383_v30 = vpop.xlane.xlu0 %6382 }
 0x45d   :  { %8236 = vrcp.f32 %v6383_v30  ;;  %v6386_v27 = vpop.xlane.xlu1 %6385 }
 0x45e   :  { %8238 = vrcp.f32 %v6386_v27 }
 0x466   :  { %v8233_v14 = vpop.eup %8232 }
 0x467   :  { %v8235_v26 = vpop.eup %8234  ;;  %v6416_v3 = vmul.f32 %v8233_v14, %v11164_v44 }
 0x468   :  { %v6415_v8 = vmul.f32 %v8235_v26, %v11166_v29 }
 0x46a   :  { %v8237_v40 = vpop.eup %8236  ;;  %v6425_v19 = vpack.c.bf16 %v6416_v3, %v6415_v8 }
 0x46b   :  { %v8239_v21 = vpop.eup %8238  ;;  %v6417_v61 = vmul.f32 %v8237_v40, %v11170_v7 }
 0x46c   :  { %8068 = vmatmul.mubr.msk.bf16.vlgmr.msra.gmra.mxu0 %vm6242_vm3, %v6425_v19  ;;  %v6418_v59 = vmul.f32 %v8239_v21, %v11174_v37 }
 0x46e   :  { %v6426_v23 = vpack.c.bf16 %v6418_v59, %v6417_v61 }
 0x470   :  { %8080 = vmatmul.mubr.msk.bf16.vlgmr.msra.gmra.mxu1 %vm6242_vm3, %v6426_v23 }
 0x4b4   :  { %v6496_v43 = vpop.f32.mrf.mxu1 }
 0x4b5   :  { %v6811_v0 = vadd.f32 3.0, %v6496_v43 }
 0x4b6   :  { %v7997_v31 = vpop.f32.mrf.mxu1 }
 0x4b7   :  { %v6827_v37 = vmax.f32 %v6811_v0, 0.0 }
 0x4b8   :  { %v6499_v15 = vpop.f32.mrf.mxu1 }
 0x4b9   :  { %v6812_v49 = vadd.f32 3.0, %v6499_v15  ;;  %v6843_v42 = vmin.f32 %v6827_v37, 6.0 }
 0x4ba   :  { %v7998_v5 = vpop.f32.mrf.mxu1 }
 0x4bb   :  { %v6828_v50 = vmax.f32 %v6812_v49, 0.0  ;;  %v6859_v55 = vmul.f32 %v6843_v42, %v6496_v43 }
 0x4bd   :  { %v6844_v57 = vmin.f32 %v6828_v50, 6.0  ;;  %v6875_v39 = vmul.f32 0.16666667, %v6859_v55 }
 0x4bf   :  { %v6860_v20 = vmul.f32 %v6844_v57, %v6499_v15 }
 0x4c1   :  { %v6876_v19 = vmul.f32 0.16666667, %v6860_v20 }
 0x4c2   :  { %v6584_v44 = vpop.f32.mrf.mxu0 }
 0x4c3   :  { %v6815_v17 = vadd.f32 3.0, %v6584_v44 }
 0x4c4   :  { %v6540_v13 = vpop.f32.mrf.mxu1  ;;  %v8021_v29 = vpop.f32.mrf.mxu0 }
 0x4c5   :  { %v6831_v54 = vmax.f32 %v6815_v17, 0.0  ;;  %v6813_v28 = vadd.f32 3.0, %v6540_v13 }
 0x4c6   :  { %v8009_v25 = vpop.f32.mrf.mxu1  ;;  %v6587_v16 = vpop.f32.mrf.mxu0 }
 0x4c7   :  { %v6816_v45 = vadd.f32 3.0, %v6587_v16  ;;  %v6847_v22 = vmin.f32 %v6831_v54, 6.0  ;;  %v6829_v58 = vmax.f32 %v6813_v28, 0.0 }
 0x4c8   :  { %v6543_v18 = vpop.f32.mrf.mxu1  ;;  %v8022_v46 = vpop.f32.mrf.mxu0 }
 0x4c9   :  { %v6814_v62 = vadd.f32 3.0, %v6543_v18  ;;  %v6832_v52 = vmax.f32 %v6816_v45, 0.0  ;;  %v6863_v53 = vmul.f32 %v6847_v22, %v6584_v44  ;;  %v6845_v60 = vmin.f32 %v6829_v58, 6.0 }
 0x4ca   :  { %v8010_v7 = vpop.f32.mrf.mxu1 }
 0x4cb   :  { %v6830_v9 = vmax.f32 %v6814_v62, 0.0  ;;  %v6848_v6 = vmin.f32 %v6832_v52, 6.0  ;;  %v6879_v56 = vmul.f32 0.16666667, %v6863_v53  ;;  %v6861_v2 = vmul.f32 %v6845_v60, %v6540_v13 }
 0x4cd   :  { %v6846_v38 = vmin.f32 %v6830_v9, 6.0  ;;  %v6864_v63 = vmul.f32 %v6848_v6, %v6587_v16  ;;  %v6891_v12 = vcombine.low %v6875_v39, %v6879_v56  ;;  %v6877_v4 = vmul.f32 0.16666667, %v6861_v2 }
 0x4ce   :  { %v6892_v24 = vcombine.high %v6875_v39, %v6879_v56 }
 0x4cf   :  { %v6862_v14 = vmul.f32 %v6846_v38, %v6543_v18  ;;  %v6880_v26 = vmul.f32 0.16666667, %v6864_v63  ;;  %v6899_v21 = vrot.slane %v6891_v12, %v8556_v41 }
 0x4d0   :  { %v6906_v61 = vrot.slane %v6892_v24, %v8556_v41 }
 0x4d1   :  { %v6878_v31 = vmul.f32 0.16666667, %v6862_v14  ;;  %v6959_v15 = vcombine.low %v6876_v19, %v6880_v26  ;;  %v6960_v5 = vcombine.high %v6876_v19, %v6880_v26 }
 0x4d3   :  { %v6967_v54 = vrot.slane %v6959_v15, %v8556_v41  ;;  %v6974_v28 = vrot.slane %v6960_v5, %v8556_v41 }
 0x4d4   :  { %v6628_v51 = vpop.f32.mrf.mxu1 }
 0x4d5   :  { %v6817_v47 = vadd.f32 3.0, %v6628_v51 }
 0x4d6   :  { %v8033_v11 = vpop.f32.mrf.mxu1 }
 0x4d7   :  { %v6833_v33 = vmax.f32 %v6817_v47, 0.0 }
 0x4d8   :  { %v6631_v34 = vpop.f32.mrf.mxu1 }
 0x4d9   :  { %v6849_v1 = vmin.f32 %v6833_v33, 6.0  ;;  %v6818_v35 = vadd.f32 3.0, %v6631_v34 }
 0x4da   :  { %v8034_v36 = vpop.f32.mrf.mxu1 }
 0x4db   :  { %v6865_v10 = vmul.f32 %v6849_v1, %v6628_v51  ;;  %v6834_v32 = vmax.f32 %v6818_v35, 0.0 }
 0x4dd   :  { %v6881_v30 = vmul.f32 0.16666667, %v6865_v10  ;;  %v6850_v27 = vmin.f32 %v6834_v32, 6.0 }
 0x4df   :  { %v6907_v3 = vcombine.low %v6877_v4, %v6881_v30  ;;  %v6908_v8 = vcombine.high %v6877_v4, %v6881_v30  ;;  %v6866_v40 = vmul.f32 %v6850_v27, %v6631_v34  ;;  %v8168_v30 = vld [vmem:[%s11455_s5 + $0x38] sm:$0xff]   ;;  %v8169_v27 = vld [vmem:[%s11455_s5 + $0x30] sm:$0xff]  }
 0x4e0   :  { %8083 = vmatprep.subr.bf16.mxu0 %v8168_v30 }
 0x4e1   :  { %v6915_v59 = vrot.slane %v6907_v3, %v8556_v41  ;;  %v6922_v23 = vrot.slane %v6908_v8, %v8556_v41  ;;  %v6882_v43 = vmul.f32 0.16666667, %v6866_v40  ;;  %8084 = vmatpush3.bf16.msra.mxu0 %v8168_v30 }
 0x4e2   :  { %8085 = vmatprep.subr.bf16.mxu0 %v8169_v27 }
 0x4e3   :  { %v6923_v13 = vcombine.low %v6899_v21, %v6915_v59  ;;  %v6924_v44 = vcombine.high %v6899_v21, %v6915_v59  ;;  %v6939_v25 = vcombine.low %v6906_v61, %v6922_v23  ;;  %v6940_v29 = vcombine.high %v6906_v61, %v6922_v23 }
 0x4e4   :  { %v6975_v18 = vcombine.low %v6878_v31, %v6882_v43  ;;  %v6976_v17 = vcombine.high %v6878_v31, %v6882_v43  ;;  %v8170_v43 = vld [vmem:[%s11455_s5 + $0x28] sm:$0xff]  }
 0x4e5   :  { %v6931_v16 = vrot.slane %v6923_v13, %v8563_v48  ;;  %v6938_v0 = vrot.slane %v6924_v44, %v8563_v48  ;;  %v6947_v7 = vrot.slane %v6939_v25, %v8563_v48  ;;  %v6954_v46 = vrot.slane %v6940_v29, %v8563_v48  ;;  %8086 = vmatpush3.bf16.msra.mxu0 %v8169_v27 }
 0x4e6   :  { %v6983_v37 = vrot.slane %v6975_v18, %v8556_v41  ;;  %v6990_v45 = vrot.slane %v6976_v17, %v8556_v41  ;;  %8087 = vmatprep.subr.bf16.mxu0 %v8170_v43 }
 0x4e7   :  { %v7163_v49 = vcombine.low %v6931_v16, %v6938_v0  ;;  %v7753_v22 = vcombine.high %v6931_v16, %v6938_v0  ;;  %v7179_v58 = vcombine.low %v6947_v7, %v6954_v46  ;;  %v7754_v42 = vcombine.high %v6947_v7, %v6954_v46  ;;  %v8171_v16 = vld [vmem:[%s11455_s5 + $0x20] sm:$0xff]   ;;  %v8172_v0 = vld [vmem:[%s11455_s5 + $0x18] sm:$0xff]   ;;  %v8173_v7 = vld [vmem:[%s11455_s5 + $0x10] sm:$0xff]  }
 0x4e8   :  { %v6991_v62 = vcombine.low %v6967_v54, %v6983_v37  ;;  %v6992_v52 = vcombine.high %v6967_v54, %v6983_v37  ;;  %v7007_v50 = vcombine.low %v6974_v28, %v6990_v45  ;;  %v7008_v53 = vcombine.high %v6974_v28, %v6990_v45 }
 0x4e9   :  { %v7170_v51 = vrot.slane %v7163_v49, %v8556_v41  ;;  %v7178_v60 = vrot.slane %v7753_v22, %v8556_v41  ;;  %v7186_v47 = vrot.slane %v7179_v58, %v8556_v41  ;;  %v7194_v55 = vrot.slane %v7754_v42, %v8556_v41  ;;  %8088 = vmatpush3.bf16.msra.mxu0 %v8170_v43 }
 0x4ea   :  { %v6999_v9 = vrot.slane %v6991_v62, %v8563_v48  ;;  %v7006_v6 = vrot.slane %v6992_v52, %v8563_v48  ;;  %v7015_v11 = vrot.slane %v7007_v50, %v8563_v48  ;;  %v7022_v33 = vrot.slane %v7008_v53, %v8563_v48  ;;  %8089 = vmatprep.subr.bf16.mxu0 %v8171_v16 }
 0x4eb   :  { %v7196_v57 = vcombine.high %v7170_v51, %v7178_v60  ;;  %v7212_v56 = vcombine.high %v7186_v47, %v7194_v55  ;;  %v7195_v34 = vcombine.low %v7170_v51, %v7178_v60  ;;  %v7211_v2 = vcombine.low %v7186_v47, %v7194_v55 }
 0x4ec   :  { %v7231_v1 = vcombine.low %v6999_v9, %v7006_v6  ;;  %v7755_v35 = vcombine.high %v6999_v9, %v7006_v6  ;;  %v7247_v39 = vcombine.low %v7015_v11, %v7022_v33  ;;  %v7756_v38 = vcombine.high %v7015_v11, %v7022_v33 }
 0x4ed   :  { %v7210_v63 = vrot.slane %v7196_v57, %v8563_v48  ;;  %v7226_v36 = vrot.slane %v7212_v56, %v8563_v48  ;;  %v11336_v10 = vrot.slane %v7195_v34, %v8563_v48  ;;  %v11339_v32 = vrot.slane %v7211_v2, %v8563_v48  ;;  %8090 = vmatpush3.bf16.msra.mxu0 %v8171_v16 }
 0x4ee   :  { %v7238_v20 = vrot.slane %v7231_v1, %v8556_v41  ;;  %v7246_v12 = vrot.slane %v7755_v35, %v8556_v41  ;;  %v7254_v4 = vrot.slane %v7247_v39, %v8556_v41  ;;  %v7262_v24 = vrot.slane %v7756_v38, %v8556_v41  ;;  %8091 = vmatprep.subr.bf16.mxu0 %v8172_v0 }
 0x4ef   :  { %v7230_v14 = vcombine.high %v7210_v63, %v7226_v36  ;;  %v7227_v26 = vcombine.low %v11336_v10, %v11339_v32  ;;  %v7229_v31 = vcombine.low %v7210_v63, %v7226_v36  ;;  %v7228_v15 = vcombine.high %v11336_v10, %v11339_v32 }
 0x4f0   :  { %v7264_v3 = vcombine.high %v7238_v20, %v7246_v12  ;;  %v7280_v8 = vcombine.high %v7254_v4, %v7262_v24  ;;  %v7263_v40 = vcombine.low %v7238_v20, %v7246_v12  ;;  %v7279_v19 = vcombine.low %v7254_v4, %v7262_v24 }
 0x4f1   :  { %8092 = vmatpush3.bf16.msra.mxu0 %v8172_v0 }
 0x4f2   :  { %v7278_v21 = vrot.slane %v7264_v3, %v8563_v48  ;;  %v7294_v61 = vrot.slane %v7280_v8, %v8563_v48  ;;  %v11356_v59 = vrot.slane %v7263_v40, %v8563_v48  ;;  %v11359_v23 = vrot.slane %v7279_v19, %v8563_v48  ;;  %8093 = vmatprep.subr.bf16.mxu0 %v8173_v7 }
 0x4f4   :  { %v7297_v5 = vcombine.low %v7278_v21, %v7294_v61  ;;  %v7296_v13 = vcombine.high %v11356_v59, %v11359_v23  ;;  %v7298_v44 = vcombine.high %v7278_v21, %v7294_v61  ;;  %v7295_v25 = vcombine.low %v11356_v59, %v11359_v23 }
 0x4f5   :  { %8094 = vmatpush3.bf16.msra.mxu0 %v8173_v7 }
 0x4f6   :  { %v8125_v29 = vpack.i.bf16 %v7297_v5, %v7229_v31  ;;  %v8120_v18 = vpack.i.bf16 %v7296_v13, %v7228_v15  ;;  %v11370_v17 = vpack.i.bf16 %v7298_v44, %v7230_v14 }
 0x4f8   :  { %8126 = vrot.lane.b32.xlu1 %v8125_v29, %s8262_s25  ;;  %8121 = vrot.lane.b32.xlu0 %v8120_v18, %s8271_s11 }
 0x500   :  { %v6672_v46 = vpop.f32.mrf.mxu0  ;;  %v6716_v54 = vpop.f32.mrf.mxu1 }
 0x501   :  { %v6819_v42 = vadd.f32 3.0, %v6672_v46  ;;  %v6821_v62 = vadd.f32 3.0, %v6716_v54 }
 0x502   :  { %v8045_v28 = vpop.f32.mrf.mxu0  ;;  %v8057_v37 = vpop.f32.mrf.mxu1 }
 0x503   :  { %v6835_v52 = vmax.f32 %v6819_v42, 0.0  ;;  %v6837_v50 = vmax.f32 %v6821_v62, 0.0 }
 0x504   :  { %v6675_v45 = vpop.f32.mrf.mxu0  ;;  %v6719_v49 = vpop.f32.mrf.mxu1 }
 0x505   :  { %v6820_v53 = vadd.f32 3.0, %v6675_v45  ;;  %v6822_v47 = vadd.f32 3.0, %v6719_v49  ;;  %v6851_v9 = vmin.f32 %v6835_v52, 6.0  ;;  %v6853_v11 = vmin.f32 %v6837_v50, 6.0 }
 0x506   :  { %v8046_v22 = vpop.f32.mrf.mxu0  ;;  %v8058_v58 = vpop.f32.mrf.mxu1 }
 0x507   :  { %v6836_v33 = vmax.f32 %v6820_v53, 0.0  ;;  %v6838_v35 = vmax.f32 %v6822_v47, 0.0  ;;  %v6867_v63 = vmul.f32 %v6851_v9, %v6672_v46  ;;  %v6869_v4 = vmul.f32 %v6853_v11, %v6716_v54 }
 0x509   :  { %v6852_v24 = vmin.f32 %v6836_v33, 6.0  ;;  %v6854_v40 = vmin.f32 %v6838_v35, 6.0  ;;  %v6883_v21 = vmul.f32 0.16666667, %v6867_v63  ;;  %v6885_v5 = vmul.f32 0.16666667, %v6869_v4 }
 0x50b   :  { %v6868_v31 = vmul.f32 %v6852_v24, %v6675_v45  ;;  %v6870_v18 = vmul.f32 %v6854_v40, %v6719_v49 }
 0x50d   :  { %v6884_v54 = vmul.f32 0.16666667, %v6868_v31  ;;  %v6886_v42 = vmul.f32 0.16666667, %v6870_v18  ;;  %v8174_v18 = vld [vmem:[%s11455_s5 + $0x8] sm:$0xff]  }
 0x50e   :  { %8095 = vmatprep.subr.bf16.mxu0 %v8174_v18 }
 0x50f   :  { %8096 = vmatpush3.bf16.msra.mxu0 %v8174_v18 }
 0x52c   :  { %v6760_v51 = vpop.f32.mrf.mxu0 }
 0x52d   :  { %v6823_v60 = vadd.f32 3.0, %v6760_v51 }
 0x52e   :  { %v8069_v55 = vpop.f32.mrf.mxu0 }
 0x52f   :  { %v6839_v6 = vmax.f32 %v6823_v60, 0.0 }
 0x530   :  { %v6763_v57 = vpop.f32.mrf.mxu0  ;;  %v6804_v56 = vpop.f32.mrf.mxu1 }
 0x531   :  { %v6855_v34 = vmin.f32 %v6839_v6, 6.0  ;;  %v6824_v2 = vadd.f32 3.0, %v6763_v57  ;;  %v6825_v1 = vadd.f32 3.0, %v6804_v56 }
 0x532   :  { %v8070_v39 = vpop.f32.mrf.mxu0  ;;  %v8081_v38 = vpop.f32.mrf.mxu1 }
 0x533   :  { %v6871_v36 = vmul.f32 %v6855_v34, %v6760_v51  ;;  %v6840_v20 = vmax.f32 %v6824_v2, 0.0  ;;  %v6841_v12 = vmax.f32 %v6825_v1, 0.0 }
 0x534   :  { %v6807_v30 = vpop.f32.mrf.mxu1 }
 0x535   :  { %v6887_v27 = vmul.f32 0.16666667, %v6871_v36  ;;  %v6856_v14 = vmin.f32 %v6840_v20, 6.0  ;;  %v6857_v3 = vmin.f32 %v6841_v12, 6.0  ;;  %v6826_v8 = vadd.f32 3.0, %v6807_v30 }
 0x536   :  { %v8082_v19 = vpop.f32.mrf.mxu1 }
 0x537   :  { %v6872_v61 = vmul.f32 %v6856_v14, %v6763_v57  ;;  %v6873_v43 = vmul.f32 %v6857_v3, %v6804_v56  ;;  %v6842_v15 = vmax.f32 %v6826_v8, 0.0  ;;  %v7027_v13 = vcombine.low %v6883_v21, %v6887_v27 }
 0x538   :  { %v7028_v44 = vcombine.high %v6883_v21, %v6887_v27 }
 0x539   :  { %v6889_v29 = vmul.f32 0.16666667, %v6873_v43  ;;  %v6888_v16 = vmul.f32 0.16666667, %v6872_v61  ;;  %v6858_v0 = vmin.f32 %v6842_v15, 6.0  ;;  %v7035_v37 = vrot.slane %v7027_v13, %v8556_v41 }
 0x53a   :  { %v7042_v22 = vrot.slane %v7028_v44, %v8556_v41 }
 0x53b   :  { %v7043_v7 = vcombine.low %v6885_v5, %v6889_v29  ;;  %v7044_v46 = vcombine.high %v6885_v5, %v6889_v29  ;;  %v6874_v28 = vmul.f32 %v6858_v0, %v6807_v30  ;;  %v7095_v62 = vcombine.low %v6884_v54, %v6888_v16 }
 0x53c   :  { %v7096_v52 = vcombine.high %v6884_v54, %v6888_v16 }
 0x53d   :  { %v7051_v58 = vrot.slane %v7043_v7, %v8556_v41  ;;  %v7058_v45 = vrot.slane %v7044_v46, %v8556_v41  ;;  %v6890_v50 = vmul.f32 0.16666667, %v6874_v28  ;;  %v7103_v57 = vrot.slane %v7095_v62, %v8556_v41 }
 0x53e   :  { %v7110_v56 = vrot.slane %v7096_v52, %v8556_v41 }
 0x53f   :  { %v7059_v53 = vcombine.low %v7035_v37, %v7051_v58  ;;  %v7060_v49 = vcombine.high %v7035_v37, %v7051_v58  ;;  %v7075_v51 = vcombine.low %v7042_v22, %v7058_v45  ;;  %v7076_v60 = vcombine.high %v7042_v22, %v7058_v45 }
 0x540   :  { %v7111_v47 = vcombine.low %v6886_v42, %v6890_v50  ;;  %v7112_v55 = vcombine.high %v6886_v42, %v6890_v50 }
 0x541   :  { %v7067_v9 = vrot.slane %v7059_v53, %v8563_v48  ;;  %v7074_v6 = vrot.slane %v7060_v49, %v8563_v48  ;;  %v7083_v11 = vrot.slane %v7075_v51, %v8563_v48  ;;  %v7090_v33 = vrot.slane %v7076_v60, %v8563_v48 }
 0x542   :  { %v7119_v34 = vrot.slane %v7111_v47, %v8556_v41  ;;  %v7126_v2 = vrot.slane %v7112_v55, %v8556_v41 }
 0x543   :  { %v7299_v1 = vcombine.low %v7067_v9, %v7074_v6  ;;  %v7757_v35 = vcombine.high %v7067_v9, %v7074_v6  ;;  %v7315_v39 = vcombine.low %v7083_v11, %v7090_v33  ;;  %v7758_v38 = vcombine.high %v7083_v11, %v7090_v33 }
 0x544   :  { %v7127_v63 = vcombine.low %v7103_v57, %v7119_v34  ;;  %v7128_v36 = vcombine.high %v7103_v57, %v7119_v34  ;;  %v7143_v20 = vcombine.low %v7110_v56, %v7126_v2  ;;  %v7144_v12 = vcombine.high %v7110_v56, %v7126_v2 }
 0x545   :  { %v7306_v4 = vrot.slane %v7299_v1, %v8556_v41  ;;  %v7314_v24 = vrot.slane %v7757_v35, %v8556_v41  ;;  %v7322_v30 = vrot.slane %v7315_v39, %v8556_v41  ;;  %v7330_v27 = vrot.slane %v7758_v38, %v8556_v41 }
 0x546   :  { %v7135_v14 = vrot.slane %v7127_v63, %v8563_v48  ;;  %v7142_v3 = vrot.slane %v7128_v36, %v8563_v48  ;;  %v7151_v8 = vrot.slane %v7143_v20, %v8563_v48  ;;  %v7158_v40 = vrot.slane %v7144_v12, %v8563_v48 }
 0x547   :  { %v7332_v19 = vcombine.high %v7306_v4, %v7314_v24  ;;  %v7348_v21 = vcombine.high %v7322_v30, %v7330_v27  ;;  %v7331_v61 = vcombine.low %v7306_v4, %v7314_v24  ;;  %v7347_v43 = vcombine.low %v7322_v30, %v7330_v27 }
 0x548   :  { %v7367_v31 = vcombine.low %v7135_v14, %v7142_v3  ;;  %v7759_v15 = vcombine.high %v7135_v14, %v7142_v3  ;;  %v7383_v5 = vcombine.low %v7151_v8, %v7158_v40  ;;  %v7760_v13 = vcombine.high %v7151_v8, %v7158_v40 }
 0x549   :  { %v7339_v44 = vrot.slane %v7331_v61, %v8563_v48  ;;  %v7355_v29 = vrot.slane %v7347_v43, %v8563_v48  ;;  %v7346_v54 = vrot.slane %v7332_v19, %v8563_v48  ;;  %v7362_v28 = vrot.slane %v7348_v21, %v8563_v48 }
 0x54a   :  { %v7374_v16 = vrot.slane %v7367_v31, %v8556_v41  ;;  %v7382_v0 = vrot.slane %v7759_v15, %v8556_v41  ;;  %v7390_v7 = vrot.slane %v7383_v5, %v8556_v41  ;;  %v7398_v46 = vrot.slane %v7760_v13, %v8556_v41  ;;  %v8175_v41 = vld [vmem:[%s11455_s5] sm:$0xff]  }
 0x54b   :  { %v7363_v37 = vcombine.low %v7339_v44, %v7355_v29  ;;  %v7365_v49 = vcombine.low %v7346_v54, %v7362_v28  ;;  %v7364_v60 = vcombine.high %v7339_v44, %v7355_v29  ;;  %8097 = vmatprep.subr.bf16.mxu0 %v8175_v41  ;;  %v7366_v33 = vcombine.high %v7346_v54, %v7362_v28  ;;  %v7761_v15 = vld [vmem:[%s11453_s3 + $0x2] ss:$0 sm:$0xff] }
 0x54c   :  { %v7400_v22 = vcombine.high %v7374_v16, %v7382_v0  ;;  %v7416_v58 = vcombine.high %v7390_v7, %v7398_v46  ;;  %v7399_v45 = vcombine.low %v7374_v16, %v7382_v0  ;;  %v7415_v42 = vcombine.low %v7390_v7, %v7398_v46  ;;  %8098 = vmatpush3.bf16.msra.mxu0 %v8175_v41 }
 0x54e   :  { %v7414_v62 = vrot.slane %v7400_v22, %v8563_v48  ;;  %v7430_v52 = vrot.slane %v7416_v58, %v8563_v48  ;;  %v7407_v50 = vrot.slane %v7399_v45, %v8563_v48  ;;  %v7423_v53 = vrot.slane %v7415_v42, %v8563_v48 }
 0x550   :  { %v7433_v51 = vcombine.low %v7414_v62, %v7430_v52  ;;  %v7432_v47 = vcombine.high %v7407_v50, %v7423_v53  ;;  %v7431_v55 = vcombine.low %v7407_v50, %v7423_v53  ;;  %v7434_v11 = vcombine.high %v7414_v62, %v7430_v52 }
 0x552   :  { %v8135_v9 = vpack.i.bf16 %v7433_v51, %v7365_v49  ;;  %v8130_v6 = vpack.i.bf16 %v7432_v47, %v7364_v60  ;;  %v8145_v48 = vpack.i.bf16 %v7434_v11, %v7366_v33 }
 0x554   :  { %8136 = vrot.lane.b32.xlu0 %v8135_v9, %s8262_s25  ;;  %8131 = vrot.lane.b32.xlu1 %v8130_v6, %s8271_s11 }
 0x558   :  { %8146 = vrot.lane.b32.xlu0 %v8145_v48, %s8265_s9  ;;  %8141 = vrot.lane.b32.xlu1 %v11370_v17, %s8265_s9  ;;  %s8272_s9 = smov [#allocation2]  }
 0x559   :  { %s7627_s10 = sshll.u32 %s8272_s9, 4  ;;  %s7628_s10 = int_to_ptr.vmem [resolvable:$true] %s7627_s10 }
 0x55a   :  { %s8240_s3 = scalar_lea.vmem %s7628_s10, 512  ;;  %p8245_p1 = scmp.lt.s32.totalorder %s7628_s10, %s7628_s10 }
 0x55b   :  { %p8241_p0 = scmp.ne.s32.totalorder %s7628_s10, %s8240_s3  ;;  %p8246_p2 = scmp.lt.s32.totalorder %s8240_s3, %s8240_s3 }
 0x55d   :  { %p8247_p3 = por %p8246_p2, %p8245_p1 }
 0x55f   :  { %p8248_p4 = pnand %p8247_p3, %p8241_p0 }
 0x56a   :  { %v8122_v57 = vpop.permute.xlu0 %8121  ;;  %v8127_v56 = vpop.permute.xlu1 %8126 }
 0x56b   :  { %v8124_v34 = vunpack.i.h.bf16 %v8122_v57  ;;  %v8123_v2 = vunpack.i.l.bf16 %v8122_v57  ;;  %v8129_v63 = vunpack.i.h.bf16 %v8127_v56  ;;  %v8128_v36 = vunpack.i.l.bf16 %v8127_v56 }
 0x56d   :  { %v7483_v4 = vsel %vm121_vm0, %v7227_v26, %v8123_v2  ;;  %v7484_v17 = vsel %vm121_vm0, %v7295_v25, %v8124_v34 }
 0x56e   :  { %v7488_v10 = vsel %vm6242_vm3, %v7484_v17, %v8129_v63  ;;  %v7487_v32 = vsel %vm6242_vm3, %v7483_v4, %v8128_v36 }
 0x5c6   :  { %v8137_v1 = vpop.permute.xlu0 %8136  ;;  %v8132_v35 = vpop.permute.xlu1 %8131 }
 0x5c7   :  { %v8134_v39 = vunpack.i.h.bf16 %v8132_v35  ;;  %v8133_v38 = vunpack.i.l.bf16 %v8132_v35  ;;  %v8139_v20 = vunpack.i.h.bf16 %v8137_v1  ;;  %v8138_v12 = vunpack.i.l.bf16 %v8137_v1 }
 0x5c9   :  { %v7486_v24 = vsel %vm121_vm0, %v7431_v55, %v8134_v39  ;;  %v7485_v30 = vsel %vm121_vm0, %v7363_v37, %v8133_v38 }
 0x5ca   :  { %v8147_v27 = vpop.permute.xlu0 %8146  ;;  %v8142_v14 = vpop.permute.xlu1 %8141  ;;  %v7489_v26 = vsel %vm6242_vm3, %v7485_v30, %v8138_v12  ;;  %v7490_v59 = vsel %vm6242_vm3, %v7486_v24, %v8139_v20 }
 0x5cb   :  { %v8149_v3 = vunpack.i.h.bf16 %v8147_v27  ;;  %v8148_v8 = vunpack.i.l.bf16 %v8147_v27  ;;  %v8144_v40 = vunpack.i.h.bf16 %v8142_v14  ;;  %v8143_v19 = vunpack.i.l.bf16 %v8142_v14 }
 0x5cd   :  { %v7494_v23 = vsel %vm7491_vm4, %v7489_v26, %v8148_v8  ;;  %v7495_v25 = vsel %vm7491_vm4, %v7490_v59, %v8149_v3  ;;  %v7492_v21 = vsel %vm7491_vm4, %v7487_v32, %v8143_v19  ;;  %v7493_v61 = vsel %vm7491_vm4, %v7488_v10, %v8144_v40 }
 0x5ce   :  { %v7497_v43 = vpack.c.bf16 %v7495_v25, %v7494_v23  ;;  %v7496_v31 = vpack.c.bf16 %v7493_v61, %v7492_v21 }
 0x5d0   :  { %8099 = vmatprep.mubr.bf16.mxu0 %v7496_v31 }
 0x5d1   :  { %8100 = vmatmul.mubr.bf16.vlgmr.msra.gmra.mxu0 %v7497_v43 }
 0x691   :  { %v8101_v5 = vpop.f32.mrf.mxu0 }
 0x692   :  { %v7612_v13 = vadd.f32 %v8101_v5, %v7761_v15 }
 0x693   :  { %v7603_v44 = vpop.f32.mrf.mxu0 }
 0x694   :  { %7620 = vst.msk [vmem:[#allocation2 + $0x10] sm:$0xff] %vm121_vm0, %v7612_v13  ;;  %v7604_v29 = vadd.f32 %v7761_v15, %v7603_v44 }
 0x695   :  { %v8102_v18 = vpop.f32.mrf.mxu0 }
 0x696   :  { %7618 = vst.msk [vmem:[#allocation2] sm:$0xff] %vm121_vm0, %v7604_v29  ;;  %v7615_v16 = vadd.f32 %v8102_v18, %v7761_v15 }
 0x697   :  { %v7606_v0 = vpop.f32.mrf.mxu0 }
 0x698   :  { %7621 = vst.msk [vmem:[#allocation2 + $0x18] sm:$0xff] %vm121_vm0, %v7615_v16  ;;  %v7607_v7 = vadd.f32 %v7761_v15, %v7606_v0 }
 0x69a   :  { %7619 = vst.msk [vmem:[#allocation2 + $0x8] sm:$0xff] %vm121_vm0, %v7607_v7 }
 0x69b   :  { %8251 = shalt.err (!%p8248_p4)
}
 0x69c   :  { %s8273_s11 = smov 128   ;;  %s8274_s12 = smov 8  }
 0x69d   :  { %7633 = dma.vmem_to_hbm [thread:$0]  %s7628_s10, 512, %s11456_s6, [#allocation3], %s8273_s11, %s8273_s11, %s8274_s12  }
 0x69e   :  { %8260 = dma.done.wait [#allocation3], 512  }
 0x69f   :  { %8261 = vsyncadd [#allocation3], 4294966784 }
 0x6a0   :  { %7637 = vsyncpa [#allocation3], 1 }

</bundles_post_ra>
